<compile_context>
chip_gen: v6e
topology: v6e:2x2x1
jax: 0.10.0
libtpu: 0.0.40
codegen_flags: <defaults>
</compile_context>

<pallas_src>
import functools

import numpy as np
import jax
import jax.numpy as jnp
from jax import lax
from jax.experimental import pallas as pl
from jax.experimental.pallas import tpu as pltpu


def _round_up(x, m):
    return ((x + m - 1) // m) * m


@functools.lru_cache(maxsize=1)
def _chip_tuning():
    """(tm_max, vmem_cap_bytes) tuned per TPU generation."""
    try:
        vmem = int(getattr(pltpu.get_tpu_info(), "vmem_capacity_bytes", 64 << 20))
    except Exception:
        vmem = 64 << 20
    if vmem <= (64 << 20):          # v7x-class: 64 MiB per TensorCore
        return 256, 32 << 20
    return 512, 96 << 20            # v5e / v6e: 128 MiB


# -----------------------------------------------------------------------------
# Pallas kernel: fused row-shifted-tap conv matmul + shift + activation
# -----------------------------------------------------------------------------
def _conv_taps_kernel(xa_ref, xb_ref, w_ref, shift_ref, o_ref, xwin_ref, acc_ref,
                      *, tap_offsets, tm, act, slope):
    # xa_ref/xb_ref : (tm, Ep) bf16   row-blocks i and i+1 of the flat slab
    # w_ref         : (ntaps, Ep, Coutp) bf16 (grid-invariant, BN scale folded)
    # shift_ref     : (1, Coutp) f32  (BN shift + folded conv bias)
    # xwin_ref      : (2*tm, Ep) bf16 VMEM scratch tap window
    # acc_ref       : (tm, Coutp) f32 VMEM scratch accumulator
    xwin_ref[:tm, :] = xa_ref[...]
    xwin_ref[tm:, :] = xb_ref[...]
    for t, off in enumerate(tap_offsets):            # static unroll (4 or 9 taps)
        part = jnp.dot(xwin_ref[off:off + tm, :], w_ref[t],
                       preferred_element_type=jnp.float32)
        if t == 0:
            acc_ref[...] = part
        else:
            acc_ref[...] += part
    y = acc_ref[...] + shift_ref[...]
    if act == "leaky_relu":
        y = jnp.where(y >= 0.0, y, slope * y)
    o_ref[...] = y.astype(o_ref.dtype)


def _conv_rows_matmul(x_rows, wt, shift, tap_offsets, *, act, slope, out_dtype):
    """out[r, :] = act( sum_t x_rows[r + tap_offsets[t], :] @ wt[t] + shift ).

    x_rows: (M, E) flat slab; the first M output rows are returned (rows whose
    taps run past M are spatially invalid and sliced away by the caller).
    """
    M, E = x_rows.shape
    ntaps, Kt, coutp = wt.shape
    assert Kt == E and coutp % 128 == 0

    tm_max, vmem_cap = _chip_tuning()
    Ep = _round_up(E, 16)
    maxoff = max(tap_offsets)
    ntiles_target = max(4, pl.cdiv(M, tm_max))       # >= 2 steps per TC (megacore)
    tm = _round_up(max(pl.cdiv(M, ntiles_target), maxoff, 16), 16)
    ntiles = pl.cdiv(M, tm)
    R = (ntiles + 1) * tm                            # spare block for the i+1 window

    xf = jnp.pad(x_rows.astype(jnp.bfloat16), ((0, R - M), (0, Ep - E)))
    wtp = jnp.pad(wt.astype(jnp.bfloat16), ((0, 0), (0, Ep - E), (0, 0)))
    shift = shift.reshape(1, coutp).astype(jnp.float32)

    # VMEM budget from actual buffer sizes, capped per chip generation.
    ob = jnp.dtype(out_dtype).itemsize
    need = (2 * 2 * tm * Ep * 2            # two x inputs, double buffered
            + 2 * ntaps * Ep * coutp * 2   # weights
            + 2 * 8 * coutp * 4            # shift
            + 2 * tm * coutp * ob          # output
            + 2 * tm * Ep * 2              # window scratch
            + tm * coutp * 4)              # accumulator scratch
    vmem_budget = int(min(max(2 * need, 8 << 20), vmem_cap))

    kernel = functools.partial(_conv_taps_kernel, tap_offsets=tuple(tap_offsets),
                               tm=tm, act=act, slope=slope)
    out = pl.pallas_call(
        kernel,
        out_shape=jax.ShapeDtypeStruct((ntiles * tm, coutp), out_dtype),
        grid=(ntiles,),
        in_specs=[
            pl.BlockSpec((tm, Ep), lambda i: (i, 0)),        # slab block i
            pl.BlockSpec((tm, Ep), lambda i: (i + 1, 0)),    # slab block i+1
            pl.BlockSpec((ntaps, Ep, coutp), lambda i: (0, 0, 0)),
            pl.BlockSpec((1, coutp), lambda i: (0, 0)),
        ],
        out_specs=pl.BlockSpec((tm, coutp), lambda i: (i, 0)),  # lane-dense store
        scratch_shapes=[pltpu.VMEM((2 * tm, Ep), jnp.bfloat16),
                        pltpu.VMEM((tm, coutp), jnp.float32)],
        compiler_params=pltpu.CompilerParams(
            dimension_semantics=("parallel",),
            vmem_limit_bytes=vmem_budget),
    )(xf, xf, wtp, shift)
    return out[:M]


# -----------------------------------------------------------------------------
# Wrapper glue: space-to-depth, weight/BN folding
# -----------------------------------------------------------------------------
def conv4s2_bn_lrelu(x, w, bias, gamma, beta, mean, var, *, eps=1e-5, slope=0.01):
    """Conv2d(k=4, s=2, p=1) + bias + BatchNorm2d(eval) + LeakyReLU, NHWC in/out."""
    N, H, W, C = x.shape
    assert H % 2 == 0 and W % 2 == 0, "stride-2 block expects even spatial dims"
    cout, cin = w.shape[0], w.shape[1]
    assert cin == C
    coutp = _round_up(cout, 128)
    Hs, Ws = (H + 2) // 2, (W + 2) // 2
    Ho, Wo = H // 2, W // 2

    # Fold eval-mode BN (+ conv bias) into weight-column scale and a shift.
    scale = gamma / jnp.sqrt(var + eps)
    shift = jnp.pad(beta + (bias - mean) * scale, (0, coutp - cout))

    # Weight -> (tap=(ty,tx), K=(py,px,ci), co); co padded to a multiple of 128.
    w6 = w.reshape(cout, cin, 2, 2, 2, 2)                    # (co, ci, ty, py, tx, px)
    wt = jnp.transpose(w6, (2, 4, 3, 5, 1, 0)).reshape(4, 4 * cin, cout)
    wt = wt * scale[None, None, :]
    wt = jnp.pad(wt, ((0, 0), (0, 0), (0, coutp - cout)))

    # Data: pad=1 -> space-to-depth(2) -> flat (N*Hs*Ws, 4*cin) rows.
    xp = jnp.pad(x, ((0, 0), (1, 1), (1, 1), (0, 0)))
    xs = xp.reshape(N, Hs, 2, Ws, 2, cin).transpose(0, 1, 3, 2, 4, 5)
    xs = xs.reshape(N * Hs * Ws, 4 * cin)

    tap_offsets = [ty * Ws + tx for ty in range(2) for tx in range(2)]
    out = _conv_rows_matmul(xs, wt, shift, tap_offsets,
                            act="leaky_relu", slope=slope, out_dtype=jnp.bfloat16)
    # Slice away invalid rows AND padded channels (next layer sees real cout).
    return out.reshape(N, Hs, Ws, coutp)[:, :Ho, :Wo, :cout]


def conv3s1_head(x, w):
    """Conv2d(k=3, s=1, p=1, bias=False), NHWC in/out."""
    N, H, W, C = x.shape
    cout, cin = w.shape[0], w.shape[1]
    assert cin == C
    coutp = _round_up(cout, 128)

    wt = jnp.transpose(w, (2, 3, 1, 0)).reshape(9, cin, cout)  # (ky*3+kx, ci, co)
    wt = jnp.pad(wt, ((0, 0), (0, 0), (0, coutp - cout)))
    shift = jnp.zeros((coutp,), jnp.float32)

    xp = jnp.pad(x, ((0, 0), (1, 1), (1, 1), (0, 0)))
    Hp, Wp = H + 2, W + 2
    xs = xp.reshape(N * Hp * Wp, cin)

    tap_offsets = [ky * Wp + kx for ky in range(3) for kx in range(3)]
    out = _conv_rows_matmul(xs, wt, shift, tap_offsets,
                            act=None, slope=0.0, out_dtype=jnp.float32)
    return out.reshape(N, Hp, Wp, coutp)[:, :H, :W, :cout]


def discriminator_forward(params, x_nchw):
    h = jnp.transpose(x_nchw, (0, 2, 3, 1)).astype(jnp.bfloat16)   # NCHW -> NHWC once
    for blk in params["blocks"]:
        h = conv4s2_bn_lrelu(h, blk["w"], blk["b"], blk["gamma"], blk["beta"],
                             blk["mean"], blk["var"])
    out = conv3s1_head(h, params["w_out"])
    return jnp.transpose(out, (0, 3, 1, 2))                        # NHWC -> NCHW


# -----------------------------------------------------------------------------
# Pure-JAX (XLA conv) reference for numerical verification
# -----------------------------------------------------------------------------
def discriminator_reference(params, x_nchw, *, eps=1e-5, slope=0.01):
    hp = lax.Precision.HIGHEST
    dn = ("NCHW", "OIHW", "NCHW")
    h = x_nchw
    for blk in params["blocks"]:
        h = lax.conv_general_dilated(h, blk["w"], (2, 2), [(1, 1), (1, 1)],
                                     dimension_numbers=dn, precision=hp)
        h = h + blk["b"][None, :, None, None]
        s = blk["gamma"] / jnp.sqrt(blk["var"] + eps)
        b = blk["beta"] - blk["mean"] * s
        h = h * s[None, :, None, None] + b[None, :, None, None]
        h = jnp.where(h >= 0.0, h, slope * h)
    return lax.conv_general_dilated(h, params["w_out"], (1, 1), [(1, 1), (1, 1)],
                                    dimension_numbers=dn, precision=hp)


# -----------------------------------------------------------------------------
if __name__ == "__main__":
    key = jax.random.PRNGKey(0)
    # Small Discriminator config: image_size=32, conv_dim=64, repeat_num=3.
    B, image_size, conv_dim, repeat_num = 2, 32, 64, 3
    chans = [3] + [conv_dim * (2 ** i) for i in range(repeat_num)]   # 3,64,128,256

    keys = iter(jax.random.split(key, 6 * repeat_num + 2))
    blocks = []
    for i in range(repeat_num):
        cin, cout = chans[i], chans[i + 1]
        blocks.append({
            "w": jax.random.normal(next(keys), (cout, cin, 4, 4), jnp.float32) * 0.05,
            "b": jax.random.normal(next(keys), (cout,), jnp.float32) * 0.1,
            "gamma": jax.random.uniform(next(keys), (cout,), jnp.float32, 0.5, 1.5),
            "beta": jax.random.normal(next(keys), (cout,), jnp.float32) * 0.1,
            "mean": jax.random.normal(next(keys), (cout,), jnp.float32) * 0.1,
            "var": jax.random.uniform(next(keys), (cout,), jnp.float32, 0.5, 1.5),
        })
    params = {
        "blocks": blocks,
        "w_out": jax.random.normal(next(keys), (1, chans[-1], 3, 3), jnp.float32) * 0.05,
    }
    x = jax.random.normal(next(keys), (B, 3, image_size, image_size), jnp.float32)

    out = jax.jit(discriminator_forward)(params, x)
    out = jax.block_until_ready(out)
    sp = image_size // (2 ** repeat_num)
    assert out.shape == (B, 1, sp, sp), out.shape

    ref = discriminator_reference(params, x)
    np.testing.assert_allclose(np.asarray(out), np.asarray(ref),
                               rtol=5e-2, atol=5e-2)
    print("KERNEL_OK")
</pallas_src>

<mosaic_0001>
module attributes {stable_mosaic.version = 11 : i64} {
  func.func @_conv_taps_kernel(%arg0: i32, %arg1: memref<160x16xbf16, #tpu.memory_space<vmem>>, %arg2: memref<160x16xbf16, #tpu.memory_space<vmem>>, %arg3: memref<4x16x128xbf16, #tpu.memory_space<vmem>>, %arg4: memref<1x128xf32, #tpu.memory_space<vmem>>, %arg5: memref<160x128xbf16, #tpu.memory_space<vmem>>, %arg6: memref<320x16xbf16, #tpu.memory_space<vmem>>, %arg7: memref<160x128xf32, #tpu.memory_space<vmem>>) attributes {dimension_semantics = [#tpu.dimension_semantics<parallel>], iteration_bounds = array<i64: 4>, scalar_prefetch = 0 : i64, scratch_operands = 2 : i64, tpu.core_type = #tpu.core_type<tc>, window_params = [{transform_indices = @transform_0, window_bounds = array<i64: 160, 16>}, {transform_indices = @transform_1, window_bounds = array<i64: 160, 16>}, {pipeline_mode = #tpu.pipeline_mode<synchronous>, transform_indices = @transform_2, window_bounds = array<i64: 4, 16, 128>}, {pipeline_mode = #tpu.pipeline_mode<synchronous>, transform_indices = @transform_3, window_bounds = array<i64: 1, 128>}, {transform_indices = @transform_4, window_bounds = array<i64: 160, 128>}]} {
    %c0 = arith.constant 0 : index
    %c0_0 = arith.constant 0 : index
    %0 = vector.load %arg1[%c0, %c0_0] : memref<160x16xbf16, #tpu.memory_space<vmem>>, vector<160x16xbf16>
    %c0_1 = arith.constant 0 : index
    %c0_2 = arith.constant 0 : index
    %1 = vector.load %arg6[%c0_1, %c0_2] : memref<320x16xbf16, #tpu.memory_space<vmem>>, vector<160x16xbf16>
    tpu.vector_store %arg6[%c0_1, %c0_2], %0 {strides = array<i32>} : memref<320x16xbf16, #tpu.memory_space<vmem>>, vector<160x16xbf16>,
    %c0_3 = arith.constant 0 : index
    %c0_4 = arith.constant 0 : index
    %2 = vector.load %arg2[%c0_3, %c0_4] : memref<160x16xbf16, #tpu.memory_space<vmem>>, vector<160x16xbf16>
    %c160 = arith.constant 160 : index
    %c0_5 = arith.constant 0 : index
    %3 = vector.load %arg6[%c160, %c0_5] : memref<320x16xbf16, #tpu.memory_space<vmem>>, vector<160x16xbf16>
    tpu.vector_store %arg6[%c160, %c0_5], %2 {strides = array<i32>} : memref<320x16xbf16, #tpu.memory_space<vmem>>, vector<160x16xbf16>,
    %c0_6 = arith.constant 0 : index
    %c0_7 = arith.constant 0 : index
    %4 = vector.load %arg6[%c0_6, %c0_7] : memref<320x16xbf16, #tpu.memory_space<vmem>>, vector<160x16xbf16>
    %c0_8 = arith.constant 0 : index
    %c0_9 = arith.constant 0 : index
    %c0_10 = arith.constant 0 : index
    %5 = vector.load %arg3[%c0_8, %c0_9, %c0_10] : memref<4x16x128xbf16, #tpu.memory_space<vmem>>, vector<1x16x128xbf16>
    %6 = vector.shape_cast %5 : vector<1x16x128xbf16> to vector<16x128xbf16>
    %cst = arith.constant dense<0.000000e+00> : vector<160x128xf32>
    %7 = tpu.matmul %4, %6, %cst {dimension_numbers = #tpu.dot_dimension_numbers<[1], [0], [0], [1], [0, 0, 1, 1], [], []>} : vector<160x16xbf16>, vector<16x128xbf16>, vector<160x128xf32> -> vector<160x128xf32>
    %c0_11 = arith.constant 0 : index
    %c0_12 = arith.constant 0 : index
    %8 = vector.load %arg7[%c0_11, %c0_12] : memref<160x128xf32, #tpu.memory_space<vmem>>, vector<160x128xf32>
    tpu.vector_store %arg7[%c0_11, %c0_12], %7 {strides = array<i32>} : memref<160x128xf32, #tpu.memory_space<vmem>>, vector<160x128xf32>,
    %c1 = arith.constant 1 : index
    %c0_13 = arith.constant 0 : index
    %9 = vector.load %arg6[%c1, %c0_13] : memref<320x16xbf16, #tpu.memory_space<vmem>>, vector<160x16xbf16>
    %c1_14 = arith.constant 1 : index
    %c0_15 = arith.constant 0 : index
    %c0_16 = arith.constant 0 : index
    %10 = vector.load %arg3[%c1_14, %c0_15, %c0_16] : memref<4x16x128xbf16, #tpu.memory_space<vmem>>, vector<1x16x128xbf16>
    %11 = vector.shape_cast %10 : vector<1x16x128xbf16> to vector<16x128xbf16>
    %cst_17 = arith.constant dense<0.000000e+00> : vector<160x128xf32>
    %12 = tpu.matmul %9, %11, %cst_17 {dimension_numbers = #tpu.dot_dimension_numbers<[1], [0], [0], [1], [0, 0, 1, 1], [], []>} : vector<160x16xbf16>, vector<16x128xbf16>, vector<160x128xf32> -> vector<160x128xf32>
    %c0_18 = arith.constant 0 : index
    %c0_19 = arith.constant 0 : index
    %13 = vector.load %arg7[%c0_18, %c0_19] : memref<160x128xf32, #tpu.memory_space<vmem>>, vector<160x128xf32>
    %14 = arith.addf %13, %12 : vector<160x128xf32>
    %c0_20 = arith.constant 0 : index
    %c0_21 = arith.constant 0 : index
    %15 = vector.load %arg7[%c0_20, %c0_21] : memref<160x128xf32, #tpu.memory_space<vmem>>, vector<160x128xf32>
    tpu.vector_store %arg7[%c0_20, %c0_21], %14 {strides = array<i32>} : memref<160x128xf32, #tpu.memory_space<vmem>>, vector<160x128xf32>,
    %c17 = arith.constant 17 : index
    %c0_22 = arith.constant 0 : index
    %16 = vector.load %arg6[%c17, %c0_22] : memref<320x16xbf16, #tpu.memory_space<vmem>>, vector<160x16xbf16>
    %c2 = arith.constant 2 : index
    %c0_23 = arith.constant 0 : index
    %c0_24 = arith.constant 0 : index
    %17 = vector.load %arg3[%c2, %c0_23, %c0_24] : memref<4x16x128xbf16, #tpu.memory_space<vmem>>, vector<1x16x128xbf16>
    %18 = vector.shape_cast %17 : vector<1x16x128xbf16> to vector<16x128xbf16>
    %cst_25 = arith.constant dense<0.000000e+00> : vector<160x128xf32>
    %19 = tpu.matmul %16, %18, %cst_25 {dimension_numbers = #tpu.dot_dimension_numbers<[1], [0], [0], [1], [0, 0, 1, 1], [], []>} : vector<160x16xbf16>, vector<16x128xbf16>, vector<160x128xf32> -> vector<160x128xf32>
    %c0_26 = arith.constant 0 : index
    %c0_27 = arith.constant 0 : index
    %20 = vector.load %arg7[%c0_26, %c0_27] : memref<160x128xf32, #tpu.memory_space<vmem>>, vector<160x128xf32>
    %21 = arith.addf %20, %19 : vector<160x128xf32>
    %c0_28 = arith.constant 0 : index
    %c0_29 = arith.constant 0 : index
    %22 = vector.load %arg7[%c0_28, %c0_29] : memref<160x128xf32, #tpu.memory_space<vmem>>, vector<160x128xf32>
    tpu.vector_store %arg7[%c0_28, %c0_29], %21 {strides = array<i32>} : memref<160x128xf32, #tpu.memory_space<vmem>>, vector<160x128xf32>,
    %c18 = arith.constant 18 : index
    %c0_30 = arith.constant 0 : index
    %23 = vector.load %arg6[%c18, %c0_30] : memref<320x16xbf16, #tpu.memory_space<vmem>>, vector<160x16xbf16>
    %c3 = arith.constant 3 : index
    %c0_31 = arith.constant 0 : index
    %c0_32 = arith.constant 0 : index
    %24 = vector.load %arg3[%c3, %c0_31, %c0_32] : memref<4x16x128xbf16, #tpu.memory_space<vmem>>, vector<1x16x128xbf16>
    %25 = vector.shape_cast %24 : vector<1x16x128xbf16> to vector<16x128xbf16>
    %cst_33 = arith.constant dense<0.000000e+00> : vector<160x128xf32>
    %26 = tpu.matmul %23, %25, %cst_33 {dimension_numbers = #tpu.dot_dimension_numbers<[1], [0], [0], [1], [0, 0, 1, 1], [], []>} : vector<160x16xbf16>, vector<16x128xbf16>, vector<160x128xf32> -> vector<160x128xf32>
    %c0_34 = arith.constant 0 : index
    %c0_35 = arith.constant 0 : index
    %27 = vector.load %arg7[%c0_34, %c0_35] : memref<160x128xf32, #tpu.memory_space<vmem>>, vector<160x128xf32>
    %28 = arith.addf %27, %26 : vector<160x128xf32>
    %c0_36 = arith.constant 0 : index
    %c0_37 = arith.constant 0 : index
    %29 = vector.load %arg7[%c0_36, %c0_37] : memref<160x128xf32, #tpu.memory_space<vmem>>, vector<160x128xf32>
    tpu.vector_store %arg7[%c0_36, %c0_37], %28 {strides = array<i32>} : memref<160x128xf32, #tpu.memory_space<vmem>>, vector<160x128xf32>,
    %c0_38 = arith.constant 0 : index
    %c0_39 = arith.constant 0 : index
    %30 = vector.load %arg7[%c0_38, %c0_39] : memref<160x128xf32, #tpu.memory_space<vmem>>, vector<160x128xf32>
    %c0_40 = arith.constant 0 : index
    %c0_41 = arith.constant 0 : index
    %31 = vector.load %arg4[%c0_40, %c0_41] : memref<1x128xf32, #tpu.memory_space<vmem>>, vector<1x128xf32>
    %32 = vector.broadcast %31 : vector<1x128xf32> to vector<160x128xf32>
    %33 = arith.addf %30, %32 : vector<160x128xf32>
    %cst_42 = arith.constant 0.000000e+00 : f32
    %34 = vector.broadcast %cst_42 : f32 to vector<160x128xf32>
    %35 = arith.cmpf oge, %33, %34 : vector<160x128xf32>
    %cst_43 = arith.constant 0.00999999977 : f32
    %36 = vector.broadcast %cst_43 : f32 to vector<160x128xf32>
    %37 = arith.mulf %36, %33 : vector<160x128xf32>
    %38 = arith.select %35, %33, %37 : vector<160x128xi1>, vector<160x128xf32>
    %39 = arith.truncf %38 : vector<160x128xf32> to vector<160x128xbf16>
    %c0_44 = arith.constant 0 : index
    %c0_45 = arith.constant 0 : index
    %40 = vector.load %arg5[%c0_44, %c0_45] : memref<160x128xbf16, #tpu.memory_space<vmem>>, vector<160x128xbf16>
    tpu.vector_store %arg5[%c0_44, %c0_45], %39 {strides = array<i32>} : memref<160x128xbf16, #tpu.memory_space<vmem>>, vector<160x128xbf16>,
    return
  }
  func.func @transform_0(%arg0: i32) -> (i32, i32) {
    %c0_i32 = arith.constant 0 : i32
    %c0_i32_0 = arith.constant 0 : i32
    return %arg0, %c0_i32 : i32, i32
  }
  func.func @transform_1(%arg0: i32) -> (i32, i32) {
    %c1_i32 = arith.constant 1 : i32
    %0 = arith.addi %arg0, %c1_i32 : i32
    %c0_i32 = arith.constant 0 : i32
    %c0_i32_0 = arith.constant 0 : i32
    return %0, %c0_i32 : i32, i32
  }
  func.func @transform_2(%arg0: i32) -> (i32, i32, i32) {
    %c0_i32 = arith.constant 0 : i32
    %c0_i32_0 = arith.constant 0 : i32
    %c0_i32_1 = arith.constant 0 : i32
    %c0_i32_2 = arith.constant 0 : i32
    return %c0_i32, %c0_i32_0, %c0_i32_1 : i32, i32, i32
  }
  func.func @transform_3(%arg0: i32) -> (i32, i32) {
    %c0_i32 = arith.constant 0 : i32
    %c0_i32_0 = arith.constant 0 : i32
    %c0_i32_1 = arith.constant 0 : i32
    return %c0_i32, %c0_i32_0 : i32, i32
  }
  func.func @transform_4(%arg0: i32) -> (i32, i32) {
    %c0_i32 = arith.constant 0 : i32
    %c0_i32_0 = arith.constant 0 : i32
    return %arg0, %c0_i32 : i32, i32
  }
}

module attributes {stable_mosaic.version = 11 : i64} {
  func.func @_conv_taps_kernel(%arg0: i32, %arg1: memref<48x256xbf16, #tpu.memory_space<vmem>>, %arg2: memref<48x256xbf16, #tpu.memory_space<vmem>>, %arg3: memref<4x256x128xbf16, #tpu.memory_space<vmem>>, %arg4: memref<1x128xf32, #tpu.memory_space<vmem>>, %arg5: memref<48x128xbf16, #tpu.memory_space<vmem>>, %arg6: memref<96x256xbf16, #tpu.memory_space<vmem>>, %arg7: memref<48x128xf32, #tpu.memory_space<vmem>>) attributes {dimension_semantics = [#tpu.dimension_semantics<parallel>], iteration_bounds = array<i64: 4>, scalar_prefetch = 0 : i64, scratch_operands = 2 : i64, tpu.core_type = #tpu.core_type<tc>, window_params = [{transform_indices = @transform_0, window_bounds = array<i64: 48, 256>}, {transform_indices = @transform_1, window_bounds = array<i64: 48, 256>}, {pipeline_mode = #tpu.pipeline_mode<synchronous>, transform_indices = @transform_2, window_bounds = array<i64: 4, 256, 128>}, {pipeline_mode = #tpu.pipeline_mode<synchronous>, transform_indices = @transform_3, window_bounds = array<i64: 1, 128>}, {transform_indices = @transform_4, window_bounds = array<i64: 48, 128>}]} {
    %c0 = arith.constant 0 : index
    %c0_0 = arith.constant 0 : index
    %0 = vector.load %arg1[%c0, %c0_0] : memref<48x256xbf16, #tpu.memory_space<vmem>>, vector<48x256xbf16>
    %c0_1 = arith.constant 0 : index
    %c0_2 = arith.constant 0 : index
    %1 = vector.load %arg6[%c0_1, %c0_2] : memref<96x256xbf16, #tpu.memory_space<vmem>>, vector<48x256xbf16>
    tpu.vector_store %arg6[%c0_1, %c0_2], %0 {strides = array<i32>} : memref<96x256xbf16, #tpu.memory_space<vmem>>, vector<48x256xbf16>,
    %c0_3 = arith.constant 0 : index
    %c0_4 = arith.constant 0 : index
    %2 = vector.load %arg2[%c0_3, %c0_4] : memref<48x256xbf16, #tpu.memory_space<vmem>>, vector<48x256xbf16>
    %c48 = arith.constant 48 : index
    %c0_5 = arith.constant 0 : index
    %3 = vector.load %arg6[%c48, %c0_5] : memref<96x256xbf16, #tpu.memory_space<vmem>>, vector<48x256xbf16>
    tpu.vector_store %arg6[%c48, %c0_5], %2 {strides = array<i32>} : memref<96x256xbf16, #tpu.memory_space<vmem>>, vector<48x256xbf16>,
    %c0_6 = arith.constant 0 : index
    %c0_7 = arith.constant 0 : index
    %4 = vector.load %arg6[%c0_6, %c0_7] : memref<96x256xbf16, #tpu.memory_space<vmem>>, vector<48x256xbf16>
    %c0_8 = arith.constant 0 : index
    %c0_9 = arith.constant 0 : index
    %c0_10 = arith.constant 0 : index
    %5 = vector.load %arg3[%c0_8, %c0_9, %c0_10] : memref<4x256x128xbf16, #tpu.memory_space<vmem>>, vector<1x256x128xbf16>
    %6 = vector.shape_cast %5 : vector<1x256x128xbf16> to vector<256x128xbf16>
    %cst = arith.constant dense<0.000000e+00> : vector<48x128xf32>
    %7 = tpu.matmul %4, %6, %cst {dimension_numbers = #tpu.dot_dimension_numbers<[1], [0], [0], [1], [0, 0, 1, 1], [], []>} : vector<48x256xbf16>, vector<256x128xbf16>, vector<48x128xf32> -> vector<48x128xf32>
    %c0_11 = arith.constant 0 : index
    %c0_12 = arith.constant 0 : index
    %8 = vector.load %arg7[%c0_11, %c0_12] : memref<48x128xf32, #tpu.memory_space<vmem>>, vector<48x128xf32>
    tpu.vector_store %arg7[%c0_11, %c0_12], %7 {strides = array<i32>} : memref<48x128xf32, #tpu.memory_space<vmem>>, vector<48x128xf32>,
    %c1 = arith.constant 1 : index
    %c0_13 = arith.constant 0 : index
    %9 = vector.load %arg6[%c1, %c0_13] : memref<96x256xbf16, #tpu.memory_space<vmem>>, vector<48x256xbf16>
    %c1_14 = arith.constant 1 : index
    %c0_15 = arith.constant 0 : index
    %c0_16 = arith.constant 0 : index
    %10 = vector.load %arg3[%c1_14, %c0_15, %c0_16] : memref<4x256x128xbf16, #tpu.memory_space<vmem>>, vector<1x256x128xbf16>
    %11 = vector.shape_cast %10 : vector<1x256x128xbf16> to vector<256x128xbf16>
    %cst_17 = arith.constant dense<0.000000e+00> : vector<48x128xf32>
    %12 = tpu.matmul %9, %11, %cst_17 {dimension_numbers = #tpu.dot_dimension_numbers<[1], [0], [0], [1], [0, 0, 1, 1], [], []>} : vector<48x256xbf16>, vector<256x128xbf16>, vector<48x128xf32> -> vector<48x128xf32>
    %c0_18 = arith.constant 0 : index
    %c0_19 = arith.constant 0 : index
    %13 = vector.load %arg7[%c0_18, %c0_19] : memref<48x128xf32, #tpu.memory_space<vmem>>, vector<48x128xf32>
    %14 = arith.addf %13, %12 : vector<48x128xf32>
    %c0_20 = arith.constant 0 : index
    %c0_21 = arith.constant 0 : index
    %15 = vector.load %arg7[%c0_20, %c0_21] : memref<48x128xf32, #tpu.memory_space<vmem>>, vector<48x128xf32>
    tpu.vector_store %arg7[%c0_20, %c0_21], %14 {strides = array<i32>} : memref<48x128xf32, #tpu.memory_space<vmem>>, vector<48x128xf32>,
    %c9 = arith.constant 9 : index
    %c0_22 = arith.constant 0 : index
    %16 = vector.load %arg6[%c9, %c0_22] : memref<96x256xbf16, #tpu.memory_space<vmem>>, vector<48x256xbf16>
    %c2 = arith.constant 2 : index
    %c0_23 = arith.constant 0 : index
    %c0_24 = arith.constant 0 : index
    %17 = vector.load %arg3[%c2, %c0_23, %c0_24] : memref<4x256x128xbf16, #tpu.memory_space<vmem>>, vector<1x256x128xbf16>
    %18 = vector.shape_cast %17 : vector<1x256x128xbf16> to vector<256x128xbf16>
    %cst_25 = arith.constant dense<0.000000e+00> : vector<48x128xf32>
    %19 = tpu.matmul %16, %18, %cst_25 {dimension_numbers = #tpu.dot_dimension_numbers<[1], [0], [0], [1], [0, 0, 1, 1], [], []>} : vector<48x256xbf16>, vector<256x128xbf16>, vector<48x128xf32> -> vector<48x128xf32>
    %c0_26 = arith.constant 0 : index
    %c0_27 = arith.constant 0 : index
    %20 = vector.load %arg7[%c0_26, %c0_27] : memref<48x128xf32, #tpu.memory_space<vmem>>, vector<48x128xf32>
    %21 = arith.addf %20, %19 : vector<48x128xf32>
    %c0_28 = arith.constant 0 : index
    %c0_29 = arith.constant 0 : index
    %22 = vector.load %arg7[%c0_28, %c0_29] : memref<48x128xf32, #tpu.memory_space<vmem>>, vector<48x128xf32>
    tpu.vector_store %arg7[%c0_28, %c0_29], %21 {strides = array<i32>} : memref<48x128xf32, #tpu.memory_space<vmem>>, vector<48x128xf32>,
    %c10 = arith.constant 10 : index
    %c0_30 = arith.constant 0 : index
    %23 = vector.load %arg6[%c10, %c0_30] : memref<96x256xbf16, #tpu.memory_space<vmem>>, vector<48x256xbf16>
    %c3 = arith.constant 3 : index
    %c0_31 = arith.constant 0 : index
    %c0_32 = arith.constant 0 : index
    %24 = vector.load %arg3[%c3, %c0_31, %c0_32] : memref<4x256x128xbf16, #tpu.memory_space<vmem>>, vector<1x256x128xbf16>
    %25 = vector.shape_cast %24 : vector<1x256x128xbf16> to vector<256x128xbf16>
    %cst_33 = arith.constant dense<0.000000e+00> : vector<48x128xf32>
    %26 = tpu.matmul %23, %25, %cst_33 {dimension_numbers = #tpu.dot_dimension_numbers<[1], [0], [0], [1], [0, 0, 1, 1], [], []>} : vector<48x256xbf16>, vector<256x128xbf16>, vector<48x128xf32> -> vector<48x128xf32>
    %c0_34 = arith.constant 0 : index
    %c0_35 = arith.constant 0 : index
    %27 = vector.load %arg7[%c0_34, %c0_35] : memref<48x128xf32, #tpu.memory_space<vmem>>, vector<48x128xf32>
    %28 = arith.addf %27, %26 : vector<48x128xf32>
    %c0_36 = arith.constant 0 : index
    %c0_37 = arith.constant 0 : index
    %29 = vector.load %arg7[%c0_36, %c0_37] : memref<48x128xf32, #tpu.memory_space<vmem>>, vector<48x128xf32>
    tpu.vector_store %arg7[%c0_36, %c0_37], %28 {strides = array<i32>} : memref<48x128xf32, #tpu.memory_space<vmem>>, vector<48x128xf32>,
    %c0_38 = arith.constant 0 : index
    %c0_39 = arith.constant 0 : index
    %30 = vector.load %arg7[%c0_38, %c0_39] : memref<48x128xf32, #tpu.memory_space<vmem>>, vector<48x128xf32>
    %c0_40 = arith.constant 0 : index
    %c0_41 = arith.constant 0 : index
    %31 = vector.load %arg4[%c0_40, %c0_41] : memref<1x128xf32, #tpu.memory_space<vmem>>, vector<1x128xf32>
    %32 = vector.broadcast %31 : vector<1x128xf32> to vector<48x128xf32>
    %33 = arith.addf %30, %32 : vector<48x128xf32>
    %cst_42 = arith.constant 0.000000e+00 : f32
    %34 = vector.broadcast %cst_42 : f32 to vector<48x128xf32>
    %35 = arith.cmpf oge, %33, %34 : vector<48x128xf32>
    %cst_43 = arith.constant 0.00999999977 : f32
    %36 = vector.broadcast %cst_43 : f32 to vector<48x128xf32>
    %37 = arith.mulf %36, %33 : vector<48x128xf32>
    %38 = arith.select %35, %33, %37 : vector<48x128xi1>, vector<48x128xf32>
    %39 = arith.truncf %38 : vector<48x128xf32> to vector<48x128xbf16>
    %c0_44 = arith.constant 0 : index
    %c0_45 = arith.constant 0 : index
    %40 = vector.load %arg5[%c0_44, %c0_45] : memref<48x128xbf16, #tpu.memory_space<vmem>>, vector<48x128xbf16>
    tpu.vector_store %arg5[%c0_44, %c0_45], %39 {strides = array<i32>} : memref<48x128xbf16, #tpu.memory_space<vmem>>, vector<48x128xbf16>,
    return
  }
  func.func @transform_0(%arg0: i32) -> (i32, i32) {
    %c0_i32 = arith.constant 0 : i32
    %c0_i32_0 = arith.constant 0 : i32
    return %arg0, %c0_i32 : i32, i32
  }
  func.func @transform_1(%arg0: i32) -> (i32, i32) {
    %c1_i32 = arith.constant 1 : i32
    %0 = arith.addi %arg0, %c1_i32 : i32
    %c0_i32 = arith.constant 0 : i32
    %c0_i32_0 = arith.constant 0 : i32
    return %0, %c0_i32 : i32, i32
  }
  func.func @transform_2(%arg0: i32) -> (i32, i32, i32) {
    %c0_i32 = arith.constant 0 : i32
    %c0_i32_0 = arith.constant 0 : i32
    %c0_i32_1 = arith.constant 0 : i32
    %c0_i32_2 = arith.constant 0 : i32
    return %c0_i32, %c0_i32_0, %c0_i32_1 : i32, i32, i32
  }
  func.func @transform_3(%arg0: i32) -> (i32, i32) {
    %c0_i32 = arith.constant 0 : i32
    %c0_i32_0 = arith.constant 0 : i32
    %c0_i32_1 = arith.constant 0 : i32
    return %c0_i32, %c0_i32_0 : i32, i32
  }
  func.func @transform_4(%arg0: i32) -> (i32, i32) {
    %c0_i32 = arith.constant 0 : i32
    %c0_i32_0 = arith.constant 0 : i32
    return %arg0, %c0_i32 : i32, i32
  }
}

module attributes {stable_mosaic.version = 11 : i64} {
  func.func @_conv_taps_kernel(%arg0: i32, %arg1: memref<16x512xbf16, #tpu.memory_space<vmem>>, %arg2: memref<16x512xbf16, #tpu.memory_space<vmem>>, %arg3: memref<4x512x256xbf16, #tpu.memory_space<vmem>>, %arg4: memref<1x256xf32, #tpu.memory_space<vmem>>, %arg5: memref<16x256xbf16, #tpu.memory_space<vmem>>, %arg6: memref<32x512xbf16, #tpu.memory_space<vmem>>, %arg7: memref<16x256xf32, #tpu.memory_space<vmem>>) attributes {dimension_semantics = [#tpu.dimension_semantics<parallel>], iteration_bounds = array<i64: 4>, scalar_prefetch = 0 : i64, scratch_operands = 2 : i64, tpu.core_type = #tpu.core_type<tc>, window_params = [{transform_indices = @transform_0, window_bounds = array<i64: 16, 512>}, {transform_indices = @transform_1, window_bounds = array<i64: 16, 512>}, {pipeline_mode = #tpu.pipeline_mode<synchronous>, transform_indices = @transform_2, window_bounds = array<i64: 4, 512, 256>}, {pipeline_mode = #tpu.pipeline_mode<synchronous>, transform_indices = @transform_3, window_bounds = array<i64: 1, 256>}, {transform_indices = @transform_4, window_bounds = array<i64: 16, 256>}]} {
    %c0 = arith.constant 0 : index
    %c0_0 = arith.constant 0 : index
    %0 = vector.load %arg1[%c0, %c0_0] : memref<16x512xbf16, #tpu.memory_space<vmem>>, vector<16x512xbf16>
    %c0_1 = arith.constant 0 : index
    %c0_2 = arith.constant 0 : index
    %1 = vector.load %arg6[%c0_1, %c0_2] : memref<32x512xbf16, #tpu.memory_space<vmem>>, vector<16x512xbf16>
    tpu.vector_store %arg6[%c0_1, %c0_2], %0 {strides = array<i32>} : memref<32x512xbf16, #tpu.memory_space<vmem>>, vector<16x512xbf16>,
    %c0_3 = arith.constant 0 : index
    %c0_4 = arith.constant 0 : index
    %2 = vector.load %arg2[%c0_3, %c0_4] : memref<16x512xbf16, #tpu.memory_space<vmem>>, vector<16x512xbf16>
    %c16 = arith.constant 16 : index
    %c0_5 = arith.constant 0 : index
    %3 = vector.load %arg6[%c16, %c0_5] : memref<32x512xbf16, #tpu.memory_space<vmem>>, vector<16x512xbf16>
    tpu.vector_store %arg6[%c16, %c0_5], %2 {strides = array<i32>} : memref<32x512xbf16, #tpu.memory_space<vmem>>, vector<16x512xbf16>,
    %c0_6 = arith.constant 0 : index
    %c0_7 = arith.constant 0 : index
    %4 = vector.load %arg6[%c0_6, %c0_7] : memref<32x512xbf16, #tpu.memory_space<vmem>>, vector<16x512xbf16>
    %c0_8 = arith.constant 0 : index
    %c0_9 = arith.constant 0 : index
    %c0_10 = arith.constant 0 : index
    %5 = vector.load %arg3[%c0_8, %c0_9, %c0_10] : memref<4x512x256xbf16, #tpu.memory_space<vmem>>, vector<1x512x256xbf16>
    %6 = vector.shape_cast %5 : vector<1x512x256xbf16> to vector<512x256xbf16>
    %cst = arith.constant dense<0.000000e+00> : vector<16x256xf32>
    %7 = tpu.matmul %4, %6, %cst {dimension_numbers = #tpu.dot_dimension_numbers<[1], [0], [0], [1], [0, 0, 1, 1], [], []>} : vector<16x512xbf16>, vector<512x256xbf16>, vector<16x256xf32> -> vector<16x256xf32>
    %c0_11 = arith.constant 0 : index
    %c0_12 = arith.constant 0 : index
    %8 = vector.load %arg7[%c0_11, %c0_12] : memref<16x256xf32, #tpu.memory_space<vmem>>, vector<16x256xf32>
    tpu.vector_store %arg7[%c0_11, %c0_12], %7 {strides = array<i32>} : memref<16x256xf32, #tpu.memory_space<vmem>>, vector<16x256xf32>,
    %c1 = arith.constant 1 : index
    %c0_13 = arith.constant 0 : index
    %9 = vector.load %arg6[%c1, %c0_13] : memref<32x512xbf16, #tpu.memory_space<vmem>>, vector<16x512xbf16>
    %c1_14 = arith.constant 1 : index
    %c0_15 = arith.constant 0 : index
    %c0_16 = arith.constant 0 : index
    %10 = vector.load %arg3[%c1_14, %c0_15, %c0_16] : memref<4x512x256xbf16, #tpu.memory_space<vmem>>, vector<1x512x256xbf16>
    %11 = vector.shape_cast %10 : vector<1x512x256xbf16> to vector<512x256xbf16>
    %cst_17 = arith.constant dense<0.000000e+00> : vector<16x256xf32>
    %12 = tpu.matmul %9, %11, %cst_17 {dimension_numbers = #tpu.dot_dimension_numbers<[1], [0], [0], [1], [0, 0, 1, 1], [], []>} : vector<16x512xbf16>, vector<512x256xbf16>, vector<16x256xf32> -> vector<16x256xf32>
    %c0_18 = arith.constant 0 : index
    %c0_19 = arith.constant 0 : index
    %13 = vector.load %arg7[%c0_18, %c0_19] : memref<16x256xf32, #tpu.memory_space<vmem>>, vector<16x256xf32>
    %14 = arith.addf %13, %12 : vector<16x256xf32>
    %c0_20 = arith.constant 0 : index
    %c0_21 = arith.constant 0 : index
    %15 = vector.load %arg7[%c0_20, %c0_21] : memref<16x256xf32, #tpu.memory_space<vmem>>, vector<16x256xf32>
    tpu.vector_store %arg7[%c0_20, %c0_21], %14 {strides = array<i32>} : memref<16x256xf32, #tpu.memory_space<vmem>>, vector<16x256xf32>,
    %c5 = arith.constant 5 : index
    %c0_22 = arith.constant 0 : index
    %16 = vector.load %arg6[%c5, %c0_22] : memref<32x512xbf16, #tpu.memory_space<vmem>>, vector<16x512xbf16>
    %c2 = arith.constant 2 : index
    %c0_23 = arith.constant 0 : index
    %c0_24 = arith.constant 0 : index
    %17 = vector.load %arg3[%c2, %c0_23, %c0_24] : memref<4x512x256xbf16, #tpu.memory_space<vmem>>, vector<1x512x256xbf16>
    %18 = vector.shape_cast %17 : vector<1x512x256xbf16> to vector<512x256xbf16>
    %cst_25 = arith.constant dense<0.000000e+00> : vector<16x256xf32>
    %19 = tpu.matmul %16, %18, %cst_25 {dimension_numbers = #tpu.dot_dimension_numbers<[1], [0], [0], [1], [0, 0, 1, 1], [], []>} : vector<16x512xbf16>, vector<512x256xbf16>, vector<16x256xf32> -> vector<16x256xf32>
    %c0_26 = arith.constant 0 : index
    %c0_27 = arith.constant 0 : index
    %20 = vector.load %arg7[%c0_26, %c0_27] : memref<16x256xf32, #tpu.memory_space<vmem>>, vector<16x256xf32>
    %21 = arith.addf %20, %19 : vector<16x256xf32>
    %c0_28 = arith.constant 0 : index
    %c0_29 = arith.constant 0 : index
    %22 = vector.load %arg7[%c0_28, %c0_29] : memref<16x256xf32, #tpu.memory_space<vmem>>, vector<16x256xf32>
    tpu.vector_store %arg7[%c0_28, %c0_29], %21 {strides = array<i32>} : memref<16x256xf32, #tpu.memory_space<vmem>>, vector<16x256xf32>,
    %c6 = arith.constant 6 : index
    %c0_30 = arith.constant 0 : index
    %23 = vector.load %arg6[%c6, %c0_30] : memref<32x512xbf16, #tpu.memory_space<vmem>>, vector<16x512xbf16>
    %c3 = arith.constant 3 : index
    %c0_31 = arith.constant 0 : index
    %c0_32 = arith.constant 0 : index
    %24 = vector.load %arg3[%c3, %c0_31, %c0_32] : memref<4x512x256xbf16, #tpu.memory_space<vmem>>, vector<1x512x256xbf16>
    %25 = vector.shape_cast %24 : vector<1x512x256xbf16> to vector<512x256xbf16>
    %cst_33 = arith.constant dense<0.000000e+00> : vector<16x256xf32>
    %26 = tpu.matmul %23, %25, %cst_33 {dimension_numbers = #tpu.dot_dimension_numbers<[1], [0], [0], [1], [0, 0, 1, 1], [], []>} : vector<16x512xbf16>, vector<512x256xbf16>, vector<16x256xf32> -> vector<16x256xf32>
    %c0_34 = arith.constant 0 : index
    %c0_35 = arith.constant 0 : index
    %27 = vector.load %arg7[%c0_34, %c0_35] : memref<16x256xf32, #tpu.memory_space<vmem>>, vector<16x256xf32>
    %28 = arith.addf %27, %26 : vector<16x256xf32>
    %c0_36 = arith.constant 0 : index
    %c0_37 = arith.constant 0 : index
    %29 = vector.load %arg7[%c0_36, %c0_37] : memref<16x256xf32, #tpu.memory_space<vmem>>, vector<16x256xf32>
    tpu.vector_store %arg7[%c0_36, %c0_37], %28 {strides = array<i32>} : memref<16x256xf32, #tpu.memory_space<vmem>>, vector<16x256xf32>,
    %c0_38 = arith.constant 0 : index
    %c0_39 = arith.constant 0 : index
    %30 = vector.load %arg7[%c0_38, %c0_39] : memref<16x256xf32, #tpu.memory_space<vmem>>, vector<16x256xf32>
    %c0_40 = arith.constant 0 : index
    %c0_41 = arith.constant 0 : index
    %31 = vector.load %arg4[%c0_40, %c0_41] : memref<1x256xf32, #tpu.memory_space<vmem>>, vector<1x256xf32>
    %32 = vector.broadcast %31 : vector<1x256xf32> to vector<16x256xf32>
    %33 = arith.addf %30, %32 : vector<16x256xf32>
    %cst_42 = arith.constant 0.000000e+00 : f32
    %34 = vector.broadcast %cst_42 : f32 to vector<16x256xf32>
    %35 = arith.cmpf oge, %33, %34 : vector<16x256xf32>
    %cst_43 = arith.constant 0.00999999977 : f32
    %36 = vector.broadcast %cst_43 : f32 to vector<16x256xf32>
    %37 = arith.mulf %36, %33 : vector<16x256xf32>
    %38 = arith.select %35, %33, %37 : vector<16x256xi1>, vector<16x256xf32>
    %39 = arith.truncf %38 : vector<16x256xf32> to vector<16x256xbf16>
    %c0_44 = arith.constant 0 : index
    %c0_45 = arith.constant 0 : index
    %40 = vector.load %arg5[%c0_44, %c0_45] : memref<16x256xbf16, #tpu.memory_space<vmem>>, vector<16x256xbf16>
    tpu.vector_store %arg5[%c0_44, %c0_45], %39 {strides = array<i32>} : memref<16x256xbf16, #tpu.memory_space<vmem>>, vector<16x256xbf16>,
    return
  }
  func.func @transform_0(%arg0: i32) -> (i32, i32) {
    %c0_i32 = arith.constant 0 : i32
    %c0_i32_0 = arith.constant 0 : i32
    return %arg0, %c0_i32 : i32, i32
  }
  func.func @transform_1(%arg0: i32) -> (i32, i32) {
    %c1_i32 = arith.constant 1 : i32
    %0 = arith.addi %arg0, %c1_i32 : i32
    %c0_i32 = arith.constant 0 : i32
    %c0_i32_0 = arith.constant 0 : i32
    return %0, %c0_i32 : i32, i32
  }
  func.func @transform_2(%arg0: i32) -> (i32, i32, i32) {
    %c0_i32 = arith.constant 0 : i32
    %c0_i32_0 = arith.constant 0 : i32
    %c0_i32_1 = arith.constant 0 : i32
    %c0_i32_2 = arith.constant 0 : i32
    return %c0_i32, %c0_i32_0, %c0_i32_1 : i32, i32, i32
  }
  func.func @transform_3(%arg0: i32) -> (i32, i32) {
    %c0_i32 = arith.constant 0 : i32
    %c0_i32_0 = arith.constant 0 : i32
    %c0_i32_1 = arith.constant 0 : i32
    return %c0_i32, %c0_i32_0 : i32, i32
  }
  func.func @transform_4(%arg0: i32) -> (i32, i32) {
    %c0_i32 = arith.constant 0 : i32
    %c0_i32_0 = arith.constant 0 : i32
    return %arg0, %c0_i32 : i32, i32
  }
}

module attributes {stable_mosaic.version = 11 : i64} {
  func.func @_conv_taps_kernel(%arg0: i32, %arg1: memref<32x256xbf16, #tpu.memory_space<vmem>>, %arg2: memref<32x256xbf16, #tpu.memory_space<vmem>>, %arg3: memref<9x256x128xbf16, #tpu.memory_space<vmem>>, %arg4: memref<1x128xf32, #tpu.memory_space<vmem>>, %arg5: memref<32x128xf32, #tpu.memory_space<vmem>>, %arg6: memref<64x256xbf16, #tpu.memory_space<vmem>>, %arg7: memref<32x128xf32, #tpu.memory_space<vmem>>) attributes {dimension_semantics = [#tpu.dimension_semantics<parallel>], iteration_bounds = array<i64: 3>, scalar_prefetch = 0 : i64, scratch_operands = 2 : i64, tpu.core_type = #tpu.core_type<tc>, window_params = [{transform_indices = @transform_0, window_bounds = array<i64: 32, 256>}, {transform_indices = @transform_1, window_bounds = array<i64: 32, 256>}, {pipeline_mode = #tpu.pipeline_mode<synchronous>, transform_indices = @transform_2, window_bounds = array<i64: 9, 256, 128>}, {pipeline_mode = #tpu.pipeline_mode<synchronous>, transform_indices = @transform_3, window_bounds = array<i64: 1, 128>}, {transform_indices = @transform_4, window_bounds = array<i64: 32, 128>}]} {
    %c0 = arith.constant 0 : index
    %c0_0 = arith.constant 0 : index
    %0 = vector.load %arg1[%c0, %c0_0] : memref<32x256xbf16, #tpu.memory_space<vmem>>, vector<32x256xbf16>
    %c0_1 = arith.constant 0 : index
    %c0_2 = arith.constant 0 : index
    %1 = vector.load %arg6[%c0_1, %c0_2] : memref<64x256xbf16, #tpu.memory_space<vmem>>, vector<32x256xbf16>
    tpu.vector_store %arg6[%c0_1, %c0_2], %0 {strides = array<i32>} : memref<64x256xbf16, #tpu.memory_space<vmem>>, vector<32x256xbf16>,
    %c0_3 = arith.constant 0 : index
    %c0_4 = arith.constant 0 : index
    %2 = vector.load %arg2[%c0_3, %c0_4] : memref<32x256xbf16, #tpu.memory_space<vmem>>, vector<32x256xbf16>
    %c32 = arith.constant 32 : index
    %c0_5 = arith.constant 0 : index
    %3 = vector.load %arg6[%c32, %c0_5] : memref<64x256xbf16, #tpu.memory_space<vmem>>, vector<32x256xbf16>
    tpu.vector_store %arg6[%c32, %c0_5], %2 {strides = array<i32>} : memref<64x256xbf16, #tpu.memory_space<vmem>>, vector<32x256xbf16>,
    %c0_6 = arith.constant 0 : index
    %c0_7 = arith.constant 0 : index
    %4 = vector.load %arg6[%c0_6, %c0_7] : memref<64x256xbf16, #tpu.memory_space<vmem>>, vector<32x256xbf16>
    %c0_8 = arith.constant 0 : index
    %c0_9 = arith.constant 0 : index
    %c0_10 = arith.constant 0 : index
    %5 = vector.load %arg3[%c0_8, %c0_9, %c0_10] : memref<9x256x128xbf16, #tpu.memory_space<vmem>>, vector<1x256x128xbf16>
    %6 = vector.shape_cast %5 : vector<1x256x128xbf16> to vector<256x128xbf16>
    %cst = arith.constant dense<0.000000e+00> : vector<32x128xf32>
    %7 = tpu.matmul %4, %6, %cst {dimension_numbers = #tpu.dot_dimension_numbers<[1], [0], [0], [1], [0, 0, 1, 1], [], []>} : vector<32x256xbf16>, vector<256x128xbf16>, vector<32x128xf32> -> vector<32x128xf32>
    %c0_11 = arith.constant 0 : index
    %c0_12 = arith.constant 0 : index
    %8 = vector.load %arg7[%c0_11, %c0_12] : memref<32x128xf32, #tpu.memory_space<vmem>>, vector<32x128xf32>
    tpu.vector_store %arg7[%c0_11, %c0_12], %7 {strides = array<i32>} : memref<32x128xf32, #tpu.memory_space<vmem>>, vector<32x128xf32>,
    %c1 = arith.constant 1 : index
    %c0_13 = arith.constant 0 : index
    %9 = vector.load %arg6[%c1, %c0_13] : memref<64x256xbf16, #tpu.memory_space<vmem>>, vector<32x256xbf16>
    %c1_14 = arith.constant 1 : index
    %c0_15 = arith.constant 0 : index
    %c0_16 = arith.constant 0 : index
    %10 = vector.load %arg3[%c1_14, %c0_15, %c0_16] : memref<9x256x128xbf16, #tpu.memory_space<vmem>>, vector<1x256x128xbf16>
    %11 = vector.shape_cast %10 : vector<1x256x128xbf16> to vector<256x128xbf16>
    %cst_17 = arith.constant dense<0.000000e+00> : vector<32x128xf32>
    %12 = tpu.matmul %9, %11, %cst_17 {dimension_numbers = #tpu.dot_dimension_numbers<[1], [0], [0], [1], [0, 0, 1, 1], [], []>} : vector<32x256xbf16>, vector<256x128xbf16>, vector<32x128xf32> -> vector<32x128xf32>
    %c0_18 = arith.constant 0 : index
    %c0_19 = arith.constant 0 : index
    %13 = vector.load %arg7[%c0_18, %c0_19] : memref<32x128xf32, #tpu.memory_space<vmem>>, vector<32x128xf32>
    %14 = arith.addf %13, %12 : vector<32x128xf32>
    %c0_20 = arith.constant 0 : index
    %c0_21 = arith.constant 0 : index
    %15 = vector.load %arg7[%c0_20, %c0_21] : memref<32x128xf32, #tpu.memory_space<vmem>>, vector<32x128xf32>
    tpu.vector_store %arg7[%c0_20, %c0_21], %14 {strides = array<i32>} : memref<32x128xf32, #tpu.memory_space<vmem>>, vector<32x128xf32>,
    %c2 = arith.constant 2 : index
    %c0_22 = arith.constant 0 : index
    %16 = vector.load %arg6[%c2, %c0_22] : memref<64x256xbf16, #tpu.memory_space<vmem>>, vector<32x256xbf16>
    %c2_23 = arith.constant 2 : index
    %c0_24 = arith.constant 0 : index
    %c0_25 = arith.constant 0 : index
    %17 = vector.load %arg3[%c2_23, %c0_24, %c0_25] : memref<9x256x128xbf16, #tpu.memory_space<vmem>>, vector<1x256x128xbf16>
    %18 = vector.shape_cast %17 : vector<1x256x128xbf16> to vector<256x128xbf16>
    %cst_26 = arith.constant dense<0.000000e+00> : vector<32x128xf32>
    %19 = tpu.matmul %16, %18, %cst_26 {dimension_numbers = #tpu.dot_dimension_numbers<[1], [0], [0], [1], [0, 0, 1, 1], [], []>} : vector<32x256xbf16>, vector<256x128xbf16>, vector<32x128xf32> -> vector<32x128xf32>
    %c0_27 = arith.constant 0 : index
    %c0_28 = arith.constant 0 : index
    %20 = vector.load %arg7[%c0_27, %c0_28] : memref<32x128xf32, #tpu.memory_space<vmem>>, vector<32x128xf32>
    %21 = arith.addf %20, %19 : vector<32x128xf32>
    %c0_29 = arith.constant 0 : index
    %c0_30 = arith.constant 0 : index
    %22 = vector.load %arg7[%c0_29, %c0_30] : memref<32x128xf32, #tpu.memory_space<vmem>>, vector<32x128xf32>
    tpu.vector_store %arg7[%c0_29, %c0_30], %21 {strides = array<i32>} : memref<32x128xf32, #tpu.memory_space<vmem>>, vector<32x128xf32>,
    %c6 = arith.constant 6 : index
    %c0_31 = arith.constant 0 : index
    %23 = vector.load %arg6[%c6, %c0_31] : memref<64x256xbf16, #tpu.memory_space<vmem>>, vector<32x256xbf16>
    %c3 = arith.constant 3 : index
    %c0_32 = arith.constant 0 : index
    %c0_33 = arith.constant 0 : index
    %24 = vector.load %arg3[%c3, %c0_32, %c0_33] : memref<9x256x128xbf16, #tpu.memory_space<vmem>>, vector<1x256x128xbf16>
    %25 = vector.shape_cast %24 : vector<1x256x128xbf16> to vector<256x128xbf16>
    %cst_34 = arith.constant dense<0.000000e+00> : vector<32x128xf32>
    %26 = tpu.matmul %23, %25, %cst_34 {dimension_numbers = #tpu.dot_dimension_numbers<[1], [0], [0], [1], [0, 0, 1, 1], [], []>} : vector<32x256xbf16>, vector<256x128xbf16>, vector<32x128xf32> -> vector<32x128xf32>
    %c0_35 = arith.constant 0 : index
    %c0_36 = arith.constant 0 : index
    %27 = vector.load %arg7[%c0_35, %c0_36] : memref<32x128xf32, #tpu.memory_space<vmem>>, vector<32x128xf32>
    %28 = arith.addf %27, %26 : vector<32x128xf32>
    %c0_37 = arith.constant 0 : index
    %c0_38 = arith.constant 0 : index
    %29 = vector.load %arg7[%c0_37, %c0_38] : memref<32x128xf32, #tpu.memory_space<vmem>>, vector<32x128xf32>
    tpu.vector_store %arg7[%c0_37, %c0_38], %28 {strides = array<i32>} : memref<32x128xf32, #tpu.memory_space<vmem>>, vector<32x128xf32>,
    %c7 = arith.constant 7 : index
    %c0_39 = arith.constant 0 : index
    %30 = vector.load %arg6[%c7, %c0_39] : memref<64x256xbf16, #tpu.memory_space<vmem>>, vector<32x256xbf16>
    %c4 = arith.constant 4 : index
    %c0_40 = arith.constant 0 : index
    %c0_41 = arith.constant 0 : index
    %31 = vector.load %arg3[%c4, %c0_40, %c0_41] : memref<9x256x128xbf16, #tpu.memory_space<vmem>>, vector<1x256x128xbf16>
    %32 = vector.shape_cast %31 : vector<1x256x128xbf16> to vector<256x128xbf16>
    %cst_42 = arith.constant dense<0.000000e+00> : vector<32x128xf32>
    %33 = tpu.matmul %30, %32, %cst_42 {dimension_numbers = #tpu.dot_dimension_numbers<[1], [0], [0], [1], [0, 0, 1, 1], [], []>} : vector<32x256xbf16>, vector<256x128xbf16>, vector<32x128xf32> -> vector<32x128xf32>
    %c0_43 = arith.constant 0 : index
    %c0_44 = arith.constant 0 : index
    %34 = vector.load %arg7[%c0_43, %c0_44] : memref<32x128xf32, #tpu.memory_space<vmem>>, vector<32x128xf32>
    %35 = arith.addf %34, %33 : vector<32x128xf32>
    %c0_45 = arith.constant 0 : index
    %c0_46 = arith.constant 0 : index
    %36 = vector.load %arg7[%c0_45, %c0_46] : memref<32x128xf32, #tpu.memory_space<vmem>>, vector<32x128xf32>
    tpu.vector_store %arg7[%c0_45, %c0_46], %35 {strides = array<i32>} : memref<32x128xf32, #tpu.memory_space<vmem>>, vector<32x128xf32>,
    %c8 = arith.constant 8 : index
    %c0_47 = arith.constant 0 : index
    %37 = vector.load %arg6[%c8, %c0_47] : memref<64x256xbf16, #tpu.memory_space<vmem>>, vector<32x256xbf16>
    %c5 = arith.constant 5 : index
    %c0_48 = arith.constant 0 : index
    %c0_49 = arith.constant 0 : index
    %38 = vector.load %arg3[%c5, %c0_48, %c0_49] : memref<9x256x128xbf16, #tpu.memory_space<vmem>>, vector<1x256x128xbf16>
    %39 = vector.shape_cast %38 : vector<1x256x128xbf16> to vector<256x128xbf16>
    %cst_50 = arith.constant dense<0.000000e+00> : vector<32x128xf32>
    %40 = tpu.matmul %37, %39, %cst_50 {dimension_numbers = #tpu.dot_dimension_numbers<[1], [0], [0], [1], [0, 0, 1, 1], [], []>} : vector<32x256xbf16>, vector<256x128xbf16>, vector<32x128xf32> -> vector<32x128xf32>
    %c0_51 = arith.constant 0 : index
    %c0_52 = arith.constant 0 : index
    %41 = vector.load %arg7[%c0_51, %c0_52] : memref<32x128xf32, #tpu.memory_space<vmem>>, vector<32x128xf32>
    %42 = arith.addf %41, %40 : vector<32x128xf32>
    %c0_53 = arith.constant 0 : index
    %c0_54 = arith.constant 0 : index
    %43 = vector.load %arg7[%c0_53, %c0_54] : memref<32x128xf32, #tpu.memory_space<vmem>>, vector<32x128xf32>
    tpu.vector_store %arg7[%c0_53, %c0_54], %42 {strides = array<i32>} : memref<32x128xf32, #tpu.memory_space<vmem>>, vector<32x128xf32>,
    %c12 = arith.constant 12 : index
    %c0_55 = arith.constant 0 : index
    %44 = vector.load %arg6[%c12, %c0_55] : memref<64x256xbf16, #tpu.memory_space<vmem>>, vector<32x256xbf16>
    %c6_56 = arith.constant 6 : index
    %c0_57 = arith.constant 0 : index
    %c0_58 = arith.constant 0 : index
    %45 = vector.load %arg3[%c6_56, %c0_57, %c0_58] : memref<9x256x128xbf16, #tpu.memory_space<vmem>>, vector<1x256x128xbf16>
    %46 = vector.shape_cast %45 : vector<1x256x128xbf16> to vector<256x128xbf16>
    %cst_59 = arith.constant dense<0.000000e+00> : vector<32x128xf32>
    %47 = tpu.matmul %44, %46, %cst_59 {dimension_numbers = #tpu.dot_dimension_numbers<[1], [0], [0], [1], [0, 0, 1, 1], [], []>} : vector<32x256xbf16>, vector<256x128xbf16>, vector<32x128xf32> -> vector<32x128xf32>
    %c0_60 = arith.constant 0 : index
    %c0_61 = arith.constant 0 : index
    %48 = vector.load %arg7[%c0_60, %c0_61] : memref<32x128xf32, #tpu.memory_space<vmem>>, vector<32x128xf32>
    %49 = arith.addf %48, %47 : vector<32x128xf32>
    %c0_62 = arith.constant 0 : index
    %c0_63 = arith.constant 0 : index
    %50 = vector.load %arg7[%c0_62, %c0_63] : memref<32x128xf32, #tpu.memory_space<vmem>>, vector<32x128xf32>
    tpu.vector_store %arg7[%c0_62, %c0_63], %49 {strides = array<i32>} : memref<32x128xf32, #tpu.memory_space<vmem>>, vector<32x128xf32>,
    %c13 = arith.constant 13 : index
    %c0_64 = arith.constant 0 : index
    %51 = vector.load %arg6[%c13, %c0_64] : memref<64x256xbf16, #tpu.memory_space<vmem>>, vector<32x256xbf16>
    %c7_65 = arith.constant 7 : index
    %c0_66 = arith.constant 0 : index
    %c0_67 = arith.constant 0 : index
    %52 = vector.load %arg3[%c7_65, %c0_66, %c0_67] : memref<9x256x128xbf16, #tpu.memory_space<vmem>>, vector<1x256x128xbf16>
    %53 = vector.shape_cast %52 : vector<1x256x128xbf16> to vector<256x128xbf16>
    %cst_68 = arith.constant dense<0.000000e+00> : vector<32x128xf32>
    %54 = tpu.matmul %51, %53, %cst_68 {dimension_numbers = #tpu.dot_dimension_numbers<[1], [0], [0], [1], [0, 0, 1, 1], [], []>} : vector<32x256xbf16>, vector<256x128xbf16>, vector<32x128xf32> -> vector<32x128xf32>
    %c0_69 = arith.constant 0 : index
    %c0_70 = arith.constant 0 : index
    %55 = vector.load %arg7[%c0_69, %c0_70] : memref<32x128xf32, #tpu.memory_space<vmem>>, vector<32x128xf32>
    %56 = arith.addf %55, %54 : vector<32x128xf32>
    %c0_71 = arith.constant 0 : index
    %c0_72 = arith.constant 0 : index
    %57 = vector.load %arg7[%c0_71, %c0_72] : memref<32x128xf32, #tpu.memory_space<vmem>>, vector<32x128xf32>
    tpu.vector_store %arg7[%c0_71, %c0_72], %56 {strides = array<i32>} : memref<32x128xf32, #tpu.memory_space<vmem>>, vector<32x128xf32>,
    %c14 = arith.constant 14 : index
    %c0_73 = arith.constant 0 : index
    %58 = vector.load %arg6[%c14, %c0_73] : memref<64x256xbf16, #tpu.memory_space<vmem>>, vector<32x256xbf16>
    %c8_74 = arith.constant 8 : index
    %c0_75 = arith.constant 0 : index
    %c0_76 = arith.constant 0 : index
    %59 = vector.load %arg3[%c8_74, %c0_75, %c0_76] : memref<9x256x128xbf16, #tpu.memory_space<vmem>>, vector<1x256x128xbf16>
    %60 = vector.shape_cast %59 : vector<1x256x128xbf16> to vector<256x128xbf16>
    %cst_77 = arith.constant dense<0.000000e+00> : vector<32x128xf32>
    %61 = tpu.matmul %58, %60, %cst_77 {dimension_numbers = #tpu.dot_dimension_numbers<[1], [0], [0], [1], [0, 0, 1, 1], [], []>} : vector<32x256xbf16>, vector<256x128xbf16>, vector<32x128xf32> -> vector<32x128xf32>
    %c0_78 = arith.constant 0 : index
    %c0_79 = arith.constant 0 : index
    %62 = vector.load %arg7[%c0_78, %c0_79] : memref<32x128xf32, #tpu.memory_space<vmem>>, vector<32x128xf32>
    %63 = arith.addf %62, %61 : vector<32x128xf32>
    %c0_80 = arith.constant 0 : index
    %c0_81 = arith.constant 0 : index
    %64 = vector.load %arg7[%c0_80, %c0_81] : memref<32x128xf32, #tpu.memory_space<vmem>>, vector<32x128xf32>
    tpu.vector_store %arg7[%c0_80, %c0_81], %63 {strides = array<i32>} : memref<32x128xf32, #tpu.memory_space<vmem>>, vector<32x128xf32>,
    %c0_82 = arith.constant 0 : index
    %c0_83 = arith.constant 0 : index
    %65 = vector.load %arg7[%c0_82, %c0_83] : memref<32x128xf32, #tpu.memory_space<vmem>>, vector<32x128xf32>
    %c0_84 = arith.constant 0 : index
    %c0_85 = arith.constant 0 : index
    %66 = vector.load %arg4[%c0_84, %c0_85] : memref<1x128xf32, #tpu.memory_space<vmem>>, vector<1x128xf32>
    %67 = vector.broadcast %66 : vector<1x128xf32> to vector<32x128xf32>
    %68 = arith.addf %65, %67 : vector<32x128xf32>
    %c0_86 = arith.constant 0 : index
    %c0_87 = arith.constant 0 : index
    %69 = vector.load %arg5[%c0_86, %c0_87] : memref<32x128xf32, #tpu.memory_space<vmem>>, vector<32x128xf32>
    tpu.vector_store %arg5[%c0_86, %c0_87], %68 {strides = array<i32>} : memref<32x128xf32, #tpu.memory_space<vmem>>, vector<32x128xf32>,
    return
  }
  func.func @transform_0(%arg0: i32) -> (i32, i32) {
    %c0_i32 = arith.constant 0 : i32
    %c0_i32_0 = arith.constant 0 : i32
    return %arg0, %c0_i32 : i32, i32
  }
  func.func @transform_1(%arg0: i32) -> (i32, i32) {
    %c1_i32 = arith.constant 1 : i32
    %0 = arith.addi %arg0, %c1_i32 : i32
    %c0_i32 = arith.constant 0 : i32
    %c0_i32_0 = arith.constant 0 : i32
    return %0, %c0_i32 : i32, i32
  }
  func.func @transform_2(%arg0: i32) -> (i32, i32, i32) {
    %c0_i32 = arith.constant 0 : i32
    %c0_i32_0 = arith.constant 0 : i32
    %c0_i32_1 = arith.constant 0 : i32
    %c0_i32_2 = arith.constant 0 : i32
    return %c0_i32, %c0_i32_0, %c0_i32_1 : i32, i32, i32
  }
  func.func @transform_3(%arg0: i32) -> (i32, i32) {
    %c0_i32 = arith.constant 0 : i32
    %c0_i32_0 = arith.constant 0 : i32
    %c0_i32_1 = arith.constant 0 : i32
    return %c0_i32, %c0_i32_0 : i32, i32
  }
  func.func @transform_4(%arg0: i32) -> (i32, i32) {
    %c0_i32 = arith.constant 0 : i32
    %c0_i32_0 = arith.constant 0 : i32
    return %arg0, %c0_i32 : i32, i32
  }
}

</mosaic_0001>

<bundles_post_ra>
// kernel: discriminator_forward.4
= control target key start
LH: loop header
LB: loop body
LE: loop exit
PB: predicated region body
PF: predicated region fallthrough
CT: control target
= control target key end

     0   :  { %s2301_s15 = smov 0   ;;  %s2604_s0 = inlined_call_operand.vmem [shape: bf16[800,16], index: 0, kind: input, shape index: {}, may-alias: {0,1}]   ;;  %s2605_s1 = inlined_call_operand.vmem [shape: bf16[800,16], index: 1, kind: input, shape index: {}, may-alias: {0,1}]   ;;  %s2606_s2 = inlined_call_operand.vmem [shape: bf16[4,16,128], index: 2, kind: input, shape index: {}]   ;;  %s2607_s3 = inlined_call_operand.vmem [shape: f32[1,128], index: 3, kind: input, shape index: {}]   ;;  %s2608_s4 = inlined_call_operand.vmem [shape: bf16[640,128], index: 4, kind: output, shape index: {}]  }
   0x1 LB: > { %s1878_s16 = sadd.s32 4294967295, %s2274_s15   ;;  %p1882_p0 = scmp.ge.s32.totalorder %s2274_s15, 1  ;;  %s2274_s15 = sphi %s2301_s15, %s14_s15  }
   0x2   : > { %p178_p1 = scmp.lt.s32.totalorder %s2274_s15, 5 }
   0x4   : > { %p179_p2 = pnand %p1882_p0, %p178_p1 }
   0x5   : > { %s2312_s19 = smul.u32 (!%p179_p2), 20, %s1878_s16  ;;  %s2327_s27 = sadd.s32 (!%p179_p2), 1, %s1878_s16 }
   0x6   : > { %182 = sbr.rel (%p179_p2) target bundleno = 319 (0x13f), region = 36 }
   0x7   : > { %p211_p3 = scmp.lt.s32.totalorder (!%p179_p2), %s2312_s19, 99  ;;  %s217_s6 = smul.u32 (!%p179_p2), 20, %s2327_s27 }
   0x8   : > { %p225_p5 = scmp.lt.s32.totalorder (!%p179_p2), %s2312_s19, 79 }
   0x9   : > { %p2378_p4 = scmp.lt.s32.totalorder (!%p179_p2), %s217_s6, 99 }
   0xb   : > { %v2221_v0 = vld [vmem:[%s2606_s2] sm:$0xff]   ;;  %v2224_v1 = vld [vmem:[%s2606_s2 + $0x8] sm:$0xff]   ;;  %v2225_v2 = vld [vmem:[%s2606_s2 + $0x10] sm:$0xff]   ;;  %s212_s26 = scalar_select %p211_p3, %s2312_s19, 99  ;;  %vm251_vm0 = vcmask 125952   ;;  %vm390_vm1 = vcmask 130048  }
   0xc   : > { %2125 = vmatprep.subr.bf16.mxu0 %v2221_v0  ;;  %v2324_v3 = vld [vmem:[%s2606_s2 + $0x18] sm:$0xff]   ;;  %2147 = vmatprep.subr.bf16.mxu1 %v2224_v1  ;;  %vm631_vm2 = vsmask.f32 7424  ;;  %s2611_s6 = smov (!%p2378_p4, %s217_s6), 99  ;;  %vm1372_vm3 = vcmask 1046528   ;;  %s2613_s19 = smov (!%p225_p5, %s2312_s19), 79 }
   0xd   : > { %2126 = vmatpush3.bf16.msra.mxu0 %v2221_v0  ;;  %2148 = vmatpush3.bf16.msra.mxu1 %v2224_v1  ;;  %s1883_s28 = sshll.u32 %s212_s26, 2  ;;  %s1884_s8 = sshll.u32 %s2611_s6, 2 }
   0xe   : > { %2169 = vmatprep.subr.bf16.mxu0 %v2225_v2  ;;  %2191 = vmatprep.subr.bf16.mxu1 %v2324_v3  ;;  %s2333_s5 = scalar_lea.vmem %s2604_s0, %s1883_s28  ;;  %s2407_s11 = scalar_lea.vmem %s2605_s1, %s1884_s8 }
   0xf   : > { %v231_v4 = vld [vmem:[%s2333_s5] sm:$0xf]  ;;  %v232_v5 = vld [vmem:[%s2333_s5 + $0x4] sm:$0xf]  ;;  %v233_v6 = vld [vmem:[%s2333_s5 + $0x8] sm:$0xf] }
  0x10   : > { %252 = vst.msk [vmem:[#allocation2] sm:$0xf] %vm251_vm0, %v231_v4  ;;  %253 = vst.msk [vmem:[#allocation2 + $0x4] sm:$0xf] %vm251_vm0, %v232_v5  ;;  %v234_v7 = vld [vmem:[%s2333_s5 + $0xc] sm:$0xf] }
  0x11   : > { %254 = vst.msk [vmem:[#allocation2 + $0x8] sm:$0xf] %vm251_vm0, %v233_v6  ;;  %v235_v8 = vld [vmem:[%s2333_s5 + $0x10] sm:$0xf]  ;;  %v236_v9 = vld [vmem:[%s2333_s5 + $0x14] sm:$0xf] }
  0x12   : > { %255 = vst.msk [vmem:[#allocation2 + $0xc] sm:$0xf] %vm251_vm0, %v234_v7  ;;  %256 = vst.msk [vmem:[#allocation2 + $0x10] sm:$0xf] %vm251_vm0, %v235_v8  ;;  %v237_v10 = vld [vmem:[%s2333_s5 + $0x18] sm:$0xf] }
  0x13   : > { %257 = vst.msk [vmem:[#allocation2 + $0x14] sm:$0xf] %vm251_vm0, %v236_v9  ;;  %v238_v11 = vld [vmem:[%s2333_s5 + $0x1c] sm:$0xf]  ;;  %v239_v12 = vld [vmem:[%s2333_s5 + $0x20] sm:$0xf] }
  0x14   : > { %258 = vst.msk [vmem:[#allocation2 + $0x18] sm:$0xf] %vm251_vm0, %v237_v10  ;;  %259 = vst.msk [vmem:[#allocation2 + $0x1c] sm:$0xf] %vm251_vm0, %v238_v11  ;;  %v240_v13 = vld [vmem:[%s2333_s5 + $0x24] sm:$0xf] }
  0x15   : > { %260 = vst.msk [vmem:[#allocation2 + $0x20] sm:$0xf] %vm251_vm0, %v239_v12  ;;  %v241_v14 = vld [vmem:[%s2333_s5 + $0x28] sm:$0xf]  ;;  %v242_v15 = vld [vmem:[%s2333_s5 + $0x2c] sm:$0xf] }
  0x16   : > { %261 = vst.msk [vmem:[#allocation2 + $0x24] sm:$0xf] %vm251_vm0, %v240_v13  ;;  %262 = vst.msk [vmem:[#allocation2 + $0x28] sm:$0xf] %vm251_vm0, %v241_v14  ;;  %v243_v16 = vld [vmem:[%s2333_s5 + $0x30] sm:$0xf] }
  0x17   : > { %263 = vst.msk [vmem:[#allocation2 + $0x2c] sm:$0xf] %vm251_vm0, %v242_v15  ;;  %v244_v17 = vld [vmem:[%s2333_s5 + $0x34] sm:$0xf]  ;;  %v245_v18 = vld [vmem:[%s2333_s5 + $0x38] sm:$0xf] }
  0x18   : > { %264 = vst.msk [vmem:[#allocation2 + $0x30] sm:$0xf] %vm251_vm0, %v243_v16  ;;  %265 = vst.msk [vmem:[#allocation2 + $0x34] sm:$0xf] %vm251_vm0, %v244_v17  ;;  %v246_v19 = vld [vmem:[%s2333_s5 + $0x3c] sm:$0xf] }
  0x19   : > { %266 = vst.msk [vmem:[#allocation2 + $0x38] sm:$0xf] %vm251_vm0, %v245_v18  ;;  %v247_v20 = vld [vmem:[%s2333_s5 + $0x40] sm:$0xf]  ;;  %v248_v21 = vld [vmem:[%s2333_s5 + $0x44] sm:$0xf] }
  0x1a   : > { %267 = vst.msk [vmem:[#allocation2 + $0x3c] sm:$0xf] %vm251_vm0, %v246_v19  ;;  %268 = vst.msk [vmem:[#allocation2 + $0x40] sm:$0xf] %vm251_vm0, %v247_v20  ;;  %v249_v22 = vld [vmem:[%s2333_s5 + $0x48] sm:$0xf] }
  0x1b   : > { %269 = vst.msk [vmem:[#allocation2 + $0x44] sm:$0xf] %vm251_vm0, %v248_v21  ;;  %v250_v23 = vld [vmem:[%s2333_s5 + $0x4c] sm:$0xf]  ;;  %270 = vst.msk [vmem:[#allocation2 + $0x48] sm:$0xf] %vm251_vm0, %v249_v22 }
  0x1c   : > { %271 = vst.msk [vmem:[#allocation2 + $0x4c] sm:$0xf] %vm251_vm0, %v250_v23  ;;  %v2222_v24 = vld [vmem:[#allocation2] sm:$0xff]   ;;  %v2223_v25 = vld [vmem:[#allocation2 + $0x8] sm:$0xff]   ;;  %v2229_v28 = vld [vmem:[#allocation2 + $0x10] sm:$0xff]   ;;  %s1885_s14 = sshll.u32 %s2613_s19, 2 }
  0x1d   : > { %2127 = vmatprep.mubr.msk.bf16.mxu0 %vm390_vm1, %v2222_v24  ;;  %v2226_v26 = vld [vmem:[#allocation2] sm:$0xff]   ;;  %v2227_v27 = vld [vmem:[#allocation2 + $0x8] sm:$0xff]   ;;  %v2230_v33 = vld [vmem:[#allocation2 + $0x10] sm:$0xff]   ;;  %s2546_s18 = scalar_lea.vmem %s2608_s4, %s1885_s14 }
  0x1e   : > { %2128 = vmatmul.mubr.msk.bf16.vlgmr.msra.gmra.mxu0 %vm390_vm1, %v2223_v25  ;;  %v633_v29 = vshrl.u32 %v2226_v26, 16  ;;  %v635_v30 = vshll.u32 %v2226_v26, 16  ;;  %v640_v31 = vshll.u32 %v2227_v27, 16  ;;  %v644_v32 = vshrl.u32 %v2227_v27, 16  ;;  %v2231_v36 = vld [vmem:[#allocation2 + $0x18] sm:$0xff]   ;;  %v2233_v43 = vld [vmem:[#allocation2 + $0x20] sm:$0xff]  }
  0x1f   : > { %2170 = vmatpush3.bf16.msra.mxu0 %v2225_v2  ;;  %2131 = vmatprep.mubr.msk.bf16.mxu0 %vm390_vm1, %v2229_v28  ;;  %v2232_v37 = vld [vmem:[#allocation2 + $0x18] sm:$0xff]   ;;  %v648_v38 = vshll.u32 %v2230_v33, 16  ;;  %v652_v39 = vshrl.u32 %v2230_v33, 16  ;;  %v2234_v45 = vld [vmem:[#allocation2 + $0x20] sm:$0xff]   ;;  %v2236_v52 = vld [vmem:[#allocation2 + $0x28] sm:$0xff]  }
  0x20   : > { %v637_v34 = vrot.slane %v635_v30, 1  ;;  %v642_v35 = vrot.slane %v640_v31, 1  ;;  %v656_v42 = vshll.u32 %v2232_v37, 16  ;;  %v660_v48 = vshrl.u32 %v2232_v37, 16  ;;  %v2235_v57 = vld [vmem:[#allocation2 + $0x28] sm:$0xff]   ;;  %v2237_v59 = vld [vmem:[#allocation2 + $0x30] sm:$0xff]  }
  0x21   : > { %v650_v44 = vrot.slane %v648_v38, 1  ;;  %v664_v51 = vshll.u32 %v2234_v45, 16  ;;  %v668_v53 = vshrl.u32 %v2234_v45, 16  ;;  %v672_v58 = vshll.u32 %v2236_v52, 16  ;;  %v2238_v60 = vld [vmem:[#allocation2 + $0x30] sm:$0xff]   ;;  %v2240_v0 = vld [vmem:[#allocation2 + $0x38] sm:$0xff]  }
  0x22   : > { %v638_v40 = vor.u32 %v637_v34, %v633_v29  ;;  %v646_v41 = vor.u32 %v644_v32, %v642_v35  ;;  %v658_v47 = vrot.slane %v656_v42, 1  ;;  %v680_v63 = vshll.u32 %v2238_v60, 16  ;;  %v2242_v6 = vld [vmem:[#allocation2 + $0x40] sm:$0xff]   ;;  %v2239_v9 = vld [vmem:[#allocation2 + $0x38] sm:$0xff]   ;;  %v2246_v21 = vld [vmem:[#allocation2 + $0x8] sm:$0xff]  }
  0x23   : > { %v654_v50 = vor.u32 %v652_v39, %v650_v44  ;;  %v666_v56 = vrot.slane %v664_v51, 1  ;;  %v674_v62 = vrot.slane %v672_v58, 1  ;;  %v676_v2 = vshrl.u32 %v2236_v52, 16  ;;  %v2244_v7 = vld [vmem:[#allocation2 + $0x48] sm:$0xff]   ;;  %v2241_v12 = vld [vmem:[#allocation2 + $0x40] sm:$0xff]   ;;  %v2247_v27 = vld [vmem:[#allocation2 + $0x10] sm:$0xff]  }
  0x24   : > { %v643_v46 = vsel %vm631_vm2, %v638_v40, %v642_v35  ;;  %v651_v49 = vsel %vm631_vm2, %v646_v41, %v650_v44  ;;  %v662_v55 = vor.u32 %v660_v48, %v658_v47  ;;  %v684_v4 = vshrl.u32 %v2238_v60, 16  ;;  %v272_v15 = vld [vmem:[%s2407_s11] sm:$0xf]  ;;  %v2243_v24 = vld [vmem:[#allocation2 + $0x48] sm:$0xff]   ;;  %v2248_v33 = vld [vmem:[#allocation2 + $0x18] sm:$0xff]  }
  0x25   : > { %2149 = vmatprep.mubr.msk.bf16.mxu1 %vm390_vm1, %v643_v46  ;;  %v659_v54 = vsel %vm631_vm2, %v654_v50, %v658_v47  ;;  %v670_v61 = vor.u32 %v668_v53, %v666_v56  ;;  %v688_v5 = vshll.u32 %v2240_v0, 16  ;;  %v682_v8 = vrot.slane %v680_v63, 1  ;;  %292 = vst.msk [vmem:[#allocation2 + $0x50] sm:$0xf] %vm251_vm0, %v272_v15  ;;  %v2251_v40 = vld [vmem:[#allocation2 + $0x20] sm:$0xff]   ;;  %v2250_v44 = vld [vmem:[#allocation2 + $0x10] sm:$0xff]  }
  0x26   : > { %2132 = vmatmul.mubr.msk.bf16.gmra.mxu0 %vm390_vm1, %v2231_v36  ;;  %2150 = vmatmul.mubr.msk.bf16.vlgmr.msra.gmra.mxu1 %vm390_vm1, %v651_v49  ;;  %v667_v1 = vsel %vm631_vm2, %v662_v55, %v666_v56  ;;  %v696_v10 = vshll.u32 %v2242_v6, 16  ;;  %v678_v11 = vor.u32 %v676_v2, %v674_v62  ;;  %v692_v13 = vshrl.u32 %v2240_v0, 16  ;;  %v2252_v0 = vld [vmem:[#allocation2 + $0x18] sm:$0xff]   ;;  %v2254_v2 = vld [vmem:[#allocation2 + $0x20] sm:$0xff]  }
  0x27   : > { %2135 = vmatprep.mubr.msk.bf16.mxu0 %vm390_vm1, %v2233_v43  ;;  %2192 = vmatpush3.bf16.msra.mxu1 %v2324_v3  ;;  %v675_v3 = vsel %vm631_vm2, %v670_v61, %v674_v62  ;;  %v704_v14 = vshll.u32 %v2244_v7, 16  ;;  %v686_v16 = vor.u32 %v684_v4, %v682_v8  ;;  %v690_v17 = vrot.slane %v688_v5, 1  ;;  %v2249_v43 = vld [vmem:[#allocation2 + $0x8] sm:$0xfe]   ;;  %v2255_v61 = vld [vmem:[#allocation2 + $0x30] sm:$0xff]   ;;  %v2257_v5 = vld [vmem:[#allocation2 + $0x38] sm:$0xff]  }
  0x28   : > { %2153 = vmatprep.mubr.msk.bf16.mxu1 %vm390_vm1, %v659_v54  ;;  %v700_v18 = vshrl.u32 %v2242_v6, 16  ;;  %v698_v19 = vrot.slane %v696_v10, 1  ;;  %v683_v22 = vsel %vm631_vm2, %v678_v11, %v682_v8  ;;  %v1003_v29 = vshrl.u32 %v2246_v21, 16  ;;  %v2253_v54 = vld [vmem:[#allocation2 + $0x28] sm:$0xff]  }
  0x29   : > { %v706_v20 = vrot.slane %v704_v14, 1  ;;  %v691_v23 = vsel %vm631_vm2, %v686_v16, %v690_v17  ;;  %v694_v25 = vor.u32 %v692_v13, %v690_v17  ;;  %v1005_v30 = vshll.u32 %v2246_v21, 16  ;;  %v2258_v21 = vld [vmem:[#allocation2 + $0x30] sm:$0xff]  }
  0x2a   : > { %v702_v28 = vor.u32 %v700_v18, %v698_v19  ;;  %v1010_v31 = vshll.u32 %v2247_v27, 16  ;;  %v1014_v32 = vshrl.u32 %v2247_v27, 16  ;;  %v708_v37 = vshrl.u32 %v2244_v7, 16  ;;  %v273_v18 = vld [vmem:[%s2407_s11 + $0x4] sm:$0xf] }
  0x2b   : > { %v1007_v35 = vrot.slane %v1005_v30, 1  ;;  %v699_v36 = vsel %vm631_vm2, %v694_v25, %v698_v19  ;;  %v1018_v39 = vshll.u32 %v2248_v33, 16  ;;  %v1022_v45 = vshrl.u32 %v2248_v33, 16  ;;  %293 = vst.msk [vmem:[#allocation2 + $0x54] sm:$0xf] %vm251_vm0, %v273_v18 }
  0x2c   : > { %v2245_v26 = vld [vmem:[#allocation2 + $0x50] ss:$0 sps:$4 sm:$0x11]   ;;  %v1012_v38 = vrot.slane %v1010_v31, 1  ;;  %v707_v41 = vsel %vm631_vm2, %v702_v28, %v706_v20  ;;  %v1026_v48 = vshll.u32 %v2251_v40, 16  ;;  %v710_v51 = vor.u32 %v708_v37, %v706_v20  ;;  %v2256_v20 = vld [vmem:[#allocation2 + $0x28] sm:$0xff]  }
  0x2d   : > { %v712_v34 = vshll.u32 %v2245_v26, 16  ;;  %v1008_v42 = vor.u32 %v1007_v35, %v1003_v29  ;;  %v1020_v47 = vrot.slane %v1018_v39, 1  ;;  %v1373_v55 = vrot.slane %v2249_v43, 1  ;;  %v274_v26 = vld [vmem:[%s2407_s11 + $0x8] sm:$0xf] }
  0x2e   : > { %2136 = vmatmul.mubr.msk.bf16.gmra.mxu0 %vm390_vm1, %v2235_v57  ;;  %2154 = vmatmul.mubr.msk.bf16.gmra.mxu1 %vm390_vm1, %v667_v1  ;;  %v1016_v46 = vor.u32 %v1014_v32, %v1012_v38  ;;  %v1028_v53 = vrot.slane %v1026_v48, 1  ;;  %v1374_v56 = vrot.slane %v2250_v44, 1  ;;  %v1030_v58 = vshrl.u32 %v2251_v40, 16  ;;  %294 = vst.msk [vmem:[#allocation2 + $0x58] sm:$0xf] %vm251_vm0, %v274_v26 }
  0x2f   : > { %2139 = vmatprep.mubr.msk.bf16.mxu0 %vm390_vm1, %v2237_v59  ;;  %2157 = vmatprep.mubr.msk.bf16.mxu1 %vm390_vm1, %v675_v3  ;;  %v714_v49 = vrot.slane %v712_v34, 1  ;;  %v1013_v50 = vsel %vm631_vm2, %v1008_v42, %v1012_v38  ;;  %v1024_v52 = vor.u32 %v1022_v45, %v1020_v47  ;;  %v1034_v59 = vshll.u32 %v2253_v54, 16  ;;  %v2260_v38 = vld [vmem:[#allocation2 + $0x38] sm:$0xff]  }
  0x30   : > { %v1021_v57 = vsel %vm631_vm2, %v1016_v46, %v1020_v47  ;;  %v1038_v62 = vshrl.u32 %v2253_v54, 16  ;;  %v1375_v3 = vsel %vm1372_vm3, %v1373_v55, %v1374_v56  ;;  %v1042_v4 = vshll.u32 %v2255_v61, 16  ;;  %v2264_v54 = vld [vmem:[#allocation2 + $0x48] sm:$0xff]  }
  0x31   : > { %v1029_v60 = vsel %vm631_vm2, %v1024_v52, %v1028_v53  ;;  %v715_v63 = vsel %vm631_vm2, %v710_v51, %v714_v49  ;;  %v1036_v1 = vrot.slane %v1034_v59, 1  ;;  %v1032_v6 = vor.u32 %v1030_v58, %v1028_v53 }
  0x32   : > { %v1044_v8 = vrot.slane %v1042_v4, 1  ;;  %v1376_v10 = vrot.slane %v2252_v0, 1  ;;  %v1378_v11 = vrot.slane %v2254_v2, 1  ;;  %v1046_v14 = vshrl.u32 %v2255_v61, 16  ;;  %v2263_v35 = vld [vmem:[#allocation2 + $0x50] sm:$0xff]  }
  0x33   : > { %v1040_v7 = vor.u32 %v1038_v62, %v1036_v1  ;;  %v1037_v13 = vsel %vm631_vm2, %v1032_v6, %v1036_v1  ;;  %v1054_v16 = vshrl.u32 %v2257_v5, 16  ;;  %v1380_v29 = vrot.slane %v2256_v20, 1 }
  0x34   : > { %v1377_v19 = vsel %vm1372_vm3, %v1374_v56, %v1376_v10  ;;  %v1048_v25 = vor.u32 %v1046_v14, %v1044_v8  ;;  %v1382_v30 = vrot.slane %v2258_v21, 1  ;;  %v1074_v42 = vshll.u32 %v2263_v35, 16  ;;  %v2266_v56 = vld [vmem:[#allocation2 + $0x50] sm:$0xff]  }
  0x35   : > { %v1045_v15 = vsel %vm631_vm2, %v1040_v7, %v1044_v8  ;;  %v1381_v37 = vsel %vm1372_vm3, %v1378_v11, %v1380_v29  ;;  %v2265_v44 = vld [vmem:[#allocation2 + $0x58] ss:$0 sps:$4 sm:$0x11]   ;;  %v1384_v47 = vrot.slane %v2260_v38, 1  ;;  %v1388_v59 = vrot.slane %v2264_v54, 1 }
  0x36   : > { %2140 = vmatmul.mubr.msk.bf16.gmra.mxu0 %vm390_vm1, %v2239_v9  ;;  %2158 = vmatmul.mubr.msk.bf16.gmra.mxu1 %vm390_vm1, %v683_v22  ;;  %v2259_v9 = vld [vmem:[#allocation2 + $0x40] sm:$0xff]   ;;  %v1379_v22 = vsel %vm1372_vm3, %v1376_v10, %v1378_v11  ;;  %v1383_v39 = vsel %vm1372_vm3, %v1380_v29, %v1382_v30  ;;  %v1076_v46 = vrot.slane %v1074_v42, 1  ;;  %v1082_v51 = vshll.u32 %v2265_v44, 16 }
  0x37   : > { %2143 = vmatprep.mubr.msk.bf16.mxu0 %vm390_vm1, %v2241_v12  ;;  %2161 = vmatprep.mubr.msk.bf16.mxu1 %vm390_vm1, %v691_v23  ;;  %v1050_v12 = vshll.u32 %v2257_v5, 16  ;;  %v1058_v17 = vshll.u32 %v2259_v9, 16  ;;  %v1062_v33 = vshrl.u32 %v2259_v9, 16  ;;  %v1385_v53 = vsel %vm1372_vm3, %v1382_v30, %v1384_v47 }
  0x38   : > { %v1084_v58 = vrot.slane %v1082_v51, 1 }
  0x39   : > { %v1052_v23 = vrot.slane %v1050_v12, 1  ;;  %v1060_v28 = vrot.slane %v1058_v17, 1 }
  0x3b   : > { %v1056_v27 = vor.u32 %v1054_v16, %v1052_v23  ;;  %v1053_v32 = vsel %vm631_vm2, %v1048_v25, %v1052_v23  ;;  %v1064_v43 = vor.u32 %v1062_v33, %v1060_v28 }
  0x3d   : > { %v1061_v34 = vsel %vm631_vm2, %v1056_v27, %v1060_v28 }
  0x3e   : > { %2144 = vmatmul.mubr.msk.bf16.gmra.mxu0 %vm390_vm1, %v2243_v24  ;;  %2162 = vmatmul.mubr.msk.bf16.gmra.mxu1 %vm390_vm1, %v699_v36  ;;  %v2261_v24 = vld [vmem:[#allocation2 + $0x48] sm:$0xff]  }
  0x3f   : > { %2165 = vmatprep.mubr.msk.bf16.mxu1 %vm390_vm1, %v707_v41  ;;  %2171 = vmatprep.mubr.msk.bf16.mxu0 %vm390_vm1, %v1013_v50  ;;  %v1066_v31 = vshll.u32 %v2261_v24, 16  ;;  %v1070_v36 = vshrl.u32 %v2261_v24, 16  ;;  %v2262_v41 = vld [vmem:[#allocation2 + $0x40] sm:$0xff]   ;;  %v1078_v50 = vshrl.u32 %v2263_v35, 16 }
  0x40   : > { %v1386_v48 = vrot.slane %v2262_v41, 1 }
  0x41   : > { %v1068_v40 = vrot.slane %v1066_v31, 1 }
  0x42   : > { %v1387_v55 = vsel %vm1372_vm3, %v1384_v47, %v1386_v48  ;;  %v1389_v62 = vsel %vm1372_vm3, %v1386_v48, %v1388_v59 }
  0x43   : > { %v1072_v45 = vor.u32 %v1070_v36, %v1068_v40  ;;  %v1069_v49 = vsel %vm631_vm2, %v1064_v43, %v1068_v40 }
  0x45   : > { %v1077_v52 = vsel %vm631_vm2, %v1072_v45, %v1076_v46 }
  0x46   : > { %2172 = vmatmul.mubr.msk.bf16.vlgmr.msra.gmra.mxu0 %vm390_vm1, %v1021_v57  ;;  %2166 = vmatmul.mubr.msk.bf16.gmra.mxu1 %vm390_vm1, %v715_v63  ;;  %v1080_v57 = vor.u32 %v1078_v50, %v1076_v46  ;;  %v2267_v63 = vld [vmem:[#allocation2 + $0x58] ss:$0 sps:$4 sm:$0x11]  }
  0x47   : > { %2175 = vmatprep.mubr.msk.bf16.mxu0 %vm390_vm1, %v1029_v60  ;;  %2193 = vmatprep.mubr.msk.bf16.mxu1 %vm390_vm1, %v1375_v3  ;;  %v1390_v60 = vrot.slane %v2266_v56, 1  ;;  %v1392_v1 = vrot.slane %v2267_v63, 1 }
  0x48   : > { %v1085_v61 = vsel %vm631_vm2, %v1080_v57, %v1084_v58 }
  0x49   : > { %v1391_v0 = vsel %vm1372_vm3, %v1388_v59, %v1390_v60  ;;  %v1393_v2 = vsel %vm1372_vm3, %v1390_v60, %v1392_v1 }
  0x4e   : > { %2176 = vmatmul.mubr.msk.bf16.gmra.mxu0 %vm390_vm1, %v1037_v13  ;;  %2194 = vmatmul.mubr.msk.bf16.vlgmr.msra.gmra.mxu1 %vm390_vm1, %v1377_v19 }
  0x4f   : > { %2179 = vmatprep.mubr.msk.bf16.mxu0 %vm390_vm1, %v1045_v15  ;;  %2197 = vmatprep.mubr.msk.bf16.mxu1 %vm390_vm1, %v1379_v22 }
  0x56   : > { %2180 = vmatmul.mubr.msk.bf16.gmra.mxu0 %vm390_vm1, %v1053_v32  ;;  %2198 = vmatmul.mubr.msk.bf16.gmra.mxu1 %vm390_vm1, %v1381_v37 }
  0x57   : > { %2183 = vmatprep.mubr.msk.bf16.mxu0 %vm390_vm1, %v1061_v34  ;;  %2201 = vmatprep.mubr.msk.bf16.mxu1 %vm390_vm1, %v1383_v39 }
  0x5e   : > { %2184 = vmatmul.mubr.msk.bf16.gmra.mxu0 %vm390_vm1, %v1069_v49  ;;  %2202 = vmatmul.mubr.msk.bf16.gmra.mxu1 %vm390_vm1, %v1385_v53 }
  0x5f   : > { %2187 = vmatprep.mubr.msk.bf16.mxu0 %vm390_vm1, %v1077_v52  ;;  %2205 = vmatprep.mubr.msk.bf16.mxu1 %vm390_vm1, %v1387_v55  ;;  %v2530_v52 = vld [vmem:[%s2607_s3] ss:$0 sm:$0xff] }
  0x66   : > { %2188 = vmatmul.mubr.msk.bf16.gmra.mxu0 %vm390_vm1, %v1085_v61  ;;  %2206 = vmatmul.mubr.msk.bf16.gmra.mxu1 %vm390_vm1, %v1389_v62 }
  0x67   : > { %2209 = vmatprep.mubr.msk.bf16.mxu1 %vm390_vm1, %v1391_v0 }
  0x6e   : > { %2210 = vmatmul.mubr.msk.bf16.gmra.mxu1 %vm390_vm1, %v1393_v2 }
  0xde   : > { %v2129_v3 = vpop.f32.mrf.mxu0 }
  0xe0   : > { %v455_v4 = vpop.f32.mrf.mxu0 }
  0xe2   : > { %v2130_v5 = vpop.f32.mrf.mxu0 }
  0xe4   : > { %v458_v6 = vpop.f32.mrf.mxu0 }
  0xe6   : > { %v2133_v7 = vpop.f32.mrf.mxu0  ;;  %v2151_v8 = vpop.f32.mrf.mxu1 }
  0xe7   : > { %v887_v46 = vadd.f32 %v2151_v8, %v2129_v3 }
  0xe8   : > { %v2471_v9 = vpop.f32.mrf.mxu0  ;;  %v786_v10 = vpop.f32.mrf.mxu1 }
  0xe9   : > { %v885_v49 = vadd.f32 %v786_v10, %v455_v4 }
  0xea   : > { %v2473_v11 = vpop.f32.mrf.mxu0  ;;  %v2152_v12 = vpop.f32.mrf.mxu1 }
  0xeb   : > { %v888_v54 = vadd.f32 %v2152_v12, %v2130_v5 }
  0xec   : > { %v2475_v13 = vpop.f32.mrf.mxu0  ;;  %v789_v14 = vpop.f32.mrf.mxu1 }
  0xed   : > { %v886_v62 = vadd.f32 %v789_v14, %v458_v6 }
  0xee   : > { %v2477_v15 = vpop.f32.mrf.mxu0  ;;  %v2155_v16 = vpop.f32.mrf.mxu1 }
  0xef   : > { %v891_v1 = vadd.f32 %v2155_v16, %v2133_v7 }
  0xf0   : > { %v2479_v17 = vpop.f32.mrf.mxu0  ;;  %v802_v18 = vpop.f32.mrf.mxu1 }
  0xf1   : > { %v889_v12 = vadd.f32 %v802_v18, %v2471_v9 }
  0xf2   : > { %v2481_v19 = vpop.f32.mrf.mxu0  ;;  %v2156_v20 = vpop.f32.mrf.mxu1 }
  0xf3   : > { %v892_v6 = vadd.f32 %v2156_v20, %v2473_v11 }
  0xf4   : > { %v2483_v21 = vpop.f32.mrf.mxu0  ;;  %v2485_v22 = vpop.f32.mrf.mxu1 }
  0xf6   : > { %v2487_v23 = vpop.f32.mrf.mxu0  ;;  %v2489_v24 = vpop.f32.mrf.mxu1 }
  0xf8   : > { %v2491_v25 = vpop.f32.mrf.mxu0  ;;  %v2493_v26 = vpop.f32.mrf.mxu1 }
  0xfa   : > { %v2495_v27 = vpop.f32.mrf.mxu0  ;;  %v2497_v28 = vpop.f32.mrf.mxu1 }
  0xfc   : > { %v2499_v29 = vpop.f32.mrf.mxu0  ;;  %v2501_v30 = vpop.f32.mrf.mxu1 }
  0xfe   : > { %v2503_v31 = vpop.f32.mrf.mxu0  ;;  %v2505_v32 = vpop.f32.mrf.mxu1 }
 0x100   : > { %v2507_v33 = vpop.f32.mrf.mxu0  ;;  %v2509_v34 = vpop.f32.mrf.mxu1 }
 0x102   : > { %v2511_v35 = vpop.f32.mrf.mxu0  ;;  %v2513_v36 = vpop.f32.mrf.mxu1 }
 0x104   : > { %v2515_v37 = vpop.f32.mrf.mxu0  ;;  %v2517_v38 = vpop.f32.mrf.mxu1 }
 0x106   : > { %v2173_v39 = vpop.f32.mrf.mxu0  ;;  %v2519_v40 = vpop.f32.mrf.mxu1 }
 0x107   : > { %v1257_v50 = vadd.f32 %v2173_v39, %v887_v46 }
 0x108   : > { %v1156_v41 = vpop.f32.mrf.mxu0  ;;  %v2521_v42 = vpop.f32.mrf.mxu1 }
 0x109   : > { %v1255_v55 = vadd.f32 %v1156_v41, %v885_v49 }
 0x10a   : > { %v2174_v43 = vpop.f32.mrf.mxu0  ;;  %v2523_v44 = vpop.f32.mrf.mxu1 }
 0x10b   : > { %v1258_v59 = vadd.f32 %v2174_v43, %v888_v54 }
 0x10c   : > { %v1159_v45 = vpop.f32.mrf.mxu0  ;;  %v2525_v47 = vpop.f32.mrf.mxu1 }
 0x10d   : > { %v1256_v3 = vadd.f32 %v1159_v45, %v886_v62 }
 0x10e   : > { %v2177_v48 = vpop.f32.mrf.mxu0  ;;  %v2195_v51 = vpop.f32.mrf.mxu1 }
 0x10f   : > { %v1565_v56 = vadd.f32 %v2195_v51, %v1257_v50  ;;  %v1261_v39 = vadd.f32 %v2177_v48, %v891_v1 }
 0x110   : > { %v1172_v53 = vpop.f32.mrf.mxu0  ;;  %v1464_v57 = vpop.f32.mrf.mxu1 }
 0x111   : > { %v1632_v60 = vadd.f32 %v2530_v52, %v1565_v56  ;;  %v1563_v61 = vadd.f32 %v1464_v57, %v1255_v55  ;;  %v1259_v7 = vadd.f32 %v1172_v53, %v889_v12  ;;  %v890_v53 = vadd.f32 %v2485_v22, %v2475_v13 }
 0x112   : > { %v2178_v58 = vpop.f32.mrf.mxu0  ;;  %v2196_v63 = vpop.f32.mrf.mxu1  ;;  %v893_v13 = vadd.f32 %v2493_v26, %v2479_v17 }
 0x113   : > { %v1566_v2 = vadd.f32 %v2196_v63, %v1258_v59  ;;  %v1672_v4 = vmul.f32 0.01, %v1632_v60  ;;  %v1630_v5 = vadd.f32 %v2530_v52, %v1563_v61  ;;  %vm1652_vm4 = vcmp.ge.f32.partialorder %v1632_v60, 0.0 }
 0x114   : > { %v1175_v0 = vpop.f32.mrf.mxu0  ;;  %v1467_v8 = vpop.f32.mrf.mxu1  ;;  %v1262_v51 = vadd.f32 %v2178_v58, %v892_v6  ;;  %v895_v59 = vadd.f32 %v2489_v24, %v2477_v15 }
 0x115   : > { %v1633_v41 = vadd.f32 %v2530_v52, %v1566_v2  ;;  %v1564_v14 = vadd.f32 %v1467_v8, %v1256_v3  ;;  %v1692_v49 = vsel %vm1652_vm4, %v1632_v60, %v1672_v4  ;;  %v1670_v50 = vmul.f32 0.01, %v1630_v5 }
 0x116   : > { %v2181_v10 = vpop.f32.mrf.mxu0  ;;  %v2199_v43 = vpop.f32.mrf.mxu1  ;;  %vm1650_vm6 = vcmp.ge.f32.partialorder %v1630_v5, 0.0  ;;  %v1260_v63 = vadd.f32 %v1175_v0, %v890_v53  ;;  %v894_v0 = vadd.f32 %v2501_v30, %v2483_v21  ;;  %v897_v53 = vadd.f32 %v2509_v34, %v2491_v25 }
 0x117   : > { %vm1653_vm5 = vcmp.ge.f32.partialorder %v1633_v41, 0.0  ;;  %v1673_v16 = vmul.f32 0.01, %v1633_v41  ;;  %v1569_v45 = vadd.f32 %v2199_v43, %v1261_v39  ;;  %v1631_v54 = vadd.f32 %v2530_v52, %v1564_v14 }
 0x118   : > { %v1188_v46 = vpop.f32.mrf.mxu0  ;;  %v1480_v9 = vpop.f32.mrf.mxu1  ;;  %v1690_v61 = vsel %vm1650_vm6, %v1630_v5, %v1670_v50  ;;  %v1265_v8 = vadd.f32 %v2181_v10, %v895_v59  ;;  %v896_v39 = vadd.f32 %v2497_v28, %v2481_v19 }
 0x119   : > { %v1693_v11 = vsel %vm1653_vm5, %v1633_v41, %v1673_v16  ;;  %v1636_v20 = vadd.f32 %v2530_v52, %v1569_v45  ;;  %v1567_v48 = vadd.f32 %v1480_v9, %v1259_v7  ;;  %vm1651_vm7 = vcmp.ge.f32.partialorder %v1631_v54, 0.0 }
 0x11a   : > { %v2182_v18 = vpop.f32.mrf.mxu0  ;;  %v2030_v55 = vpack.c.bf16 %v1693_v11, %v1692_v49  ;;  %v1671_v56 = vmul.f32 0.01, %v1631_v54  ;;  %v2200_v57 = vpop.f32.mrf.mxu1  ;;  %v1263_v41 = vadd.f32 %v1188_v46, %v893_v13  ;;  %v899_v46 = vadd.f32 %v2505_v32, %v2487_v23 }
 0x11b   : > { %v1570_v60 = vadd.f32 %v2200_v57, %v1262_v51  ;;  %v1634_v1 = vadd.f32 %v2530_v52, %v1567_v48  ;;  %v1676_v4 = vmul.f32 0.01, %v1636_v20  ;;  %vm1656_vm8 = vcmp.ge.f32.partialorder %v1636_v20, 0.0 }
 0x11c   : > { %v1191_v58 = vpop.f32.mrf.mxu0  ;;  %2072 = vst [vmem:[%s2546_s18 + $0x8] sm:$0xff] %v2030_v55   ;;  %v1691_v62 = vsel %vm1651_vm7, %v1631_v54, %v1671_v56  ;;  %v1483_v2 = vpop.f32.mrf.mxu1  ;;  %v1266_v16 = vadd.f32 %v2182_v18, %v896_v39  ;;  %v900_v57 = vadd.f32 %v2513_v36, %v2495_v27 }
 0x11d   : > { %v2025_v22 = vpack.c.bf16 %v1691_v62, %v1690_v61  ;;  %v1637_v12 = vadd.f32 %v2530_v52, %v1570_v60  ;;  %v1568_v15 = vadd.f32 %v1483_v2, %v1260_v63  ;;  %v1674_v14 = vmul.f32 0.01, %v1634_v1 }
 0x11e   : > { %v2185_v3 = vpop.f32.mrf.mxu0  ;;  %v2203_v24 = vpop.f32.mrf.mxu1  ;;  %v1696_v7 = vsel %vm1656_vm8, %v1636_v20, %v1676_v4  ;;  %vm1654_vm10 = vcmp.ge.f32.partialorder %v1634_v1, 0.0  ;;  %v1264_v51 = vadd.f32 %v1191_v58, %v894_v0  ;;  %v898_v60 = vadd.f32 %v2517_v38, %v2499_v29 }
 0x11f   : > { %2026 = vst [vmem:[%s2546_s18] sm:$0xff] %v2025_v22   ;;  %v1573_v6 = vadd.f32 %v2203_v24, %v1265_v8  ;;  %vm1657_vm9 = vcmp.ge.f32.partialorder %v1637_v12, 0.0  ;;  %v1677_v17 = vmul.f32 0.01, %v1637_v12  ;;  %v1635_v26 = vadd.f32 %v2530_v52, %v1568_v15 }
 0x120   : > { %v1204_v5 = vpop.f32.mrf.mxu0  ;;  %v1496_v10 = vpop.f32.mrf.mxu1  ;;  %v1694_v54 = vsel %vm1654_vm10, %v1634_v1, %v1674_v14  ;;  %v1269_v56 = vadd.f32 %v2185_v3, %v899_v46  ;;  %v903_v4 = vadd.f32 %v2519_v40, %v2503_v31 }
 0x121   : > { %v1571_v45 = vadd.f32 %v1496_v10, %v1263_v41  ;;  %v1697_v49 = vsel %vm1657_vm9, %v1637_v12, %v1677_v17  ;;  %vm1655_vm11 = vcmp.ge.f32.partialorder %v1635_v26, 0.0  ;;  %v1675_v19 = vmul.f32 0.01, %v1635_v26 }
 0x122   : > { %v2186_v43 = vpop.f32.mrf.mxu0  ;;  %v1640_v21 = vadd.f32 %v2530_v52, %v1573_v6  ;;  %v2204_v28 = vpop.f32.mrf.mxu1  ;;  %v2040_v50 = vpack.c.bf16 %v1697_v49, %v1696_v7  ;;  %v1267_v61 = vadd.f32 %v1204_v5, %v897_v53  ;;  %v901_v6 = vadd.f32 %v2521_v42, %v2507_v33 }
 0x123   : > { %v1695_v9 = vsel %vm1655_vm11, %v1635_v26, %v1675_v19  ;;  %v1638_v11 = vadd.f32 %v2530_v52, %v1571_v45  ;;  %v1574_v18 = vadd.f32 %v2204_v28, %v1266_v16  ;;  %v1270_v27 = vadd.f32 %v2186_v43, %v900_v57 }
 0x124   : > { %v1207_v30 = vpop.f32.mrf.mxu0  ;;  %v1499_v20 = vpop.f32.mrf.mxu1  ;;  %2074 = vst [vmem:[%s2546_s18 + $0x18] sm:$0xff] %v2040_v50   ;;  %v2035_v55 = vpack.c.bf16 %v1695_v9, %v1694_v54  ;;  %v1680_v23 = vmul.f32 0.01, %v1640_v21  ;;  %vm1660_vm12 = vcmp.ge.f32.partialorder %v1640_v21, 0.0  ;;  %v904_v43 = vadd.f32 %v2523_v44, %v2511_v35 }
 0x125   : > { %v1641_v32 = vadd.f32 %v2530_v52, %v1574_v18  ;;  %v1572_v58 = vadd.f32 %v1499_v20, %v1264_v51  ;;  %v1678_v63 = vmul.f32 0.01, %v1638_v11  ;;  %vm1658_vm14 = vcmp.ge.f32.partialorder %v1638_v11, 0.0 }
 0x126   : > { %v2189_v48 = vpop.f32.mrf.mxu0  ;;  %v2207_v59 = vpop.f32.mrf.mxu1  ;;  %2073 = vst [vmem:[%s2546_s18 + $0x10] sm:$0xff] %v2035_v55   ;;  %v1700_v13 = vsel %vm1660_vm12, %v1640_v21, %v1680_v23  ;;  %v1268_v12 = vadd.f32 %v1207_v30, %v898_v60  ;;  %v902_v7 = vadd.f32 %v2525_v47, %v2515_v37 }
 0x127   : > { %v1577_v62 = vadd.f32 %v2207_v59, %v1269_v56  ;;  %vm1661_vm13 = vcmp.ge.f32.partialorder %v1641_v32, 0.0  ;;  %v1681_v25 = vmul.f32 0.01, %v1641_v32  ;;  %v1639_v34 = vadd.f32 %v2530_v52, %v1572_v58 }
 0x128   : > { %v1512_v1 = vpop.f32.mrf.mxu1  ;;  %v1220_v2 = vpop.f32.mrf.mxu0  ;;  %v1698_v15 = vsel %vm1658_vm14, %v1638_v11, %v1678_v63  ;;  %v1273_v26 = vadd.f32 %v2189_v48, %v903_v4 }
 0x129   : > { %v1644_v36 = vadd.f32 %v2530_v52, %v1577_v62  ;;  %v1575_v3 = vadd.f32 %v1512_v1, %v1267_v61  ;;  %v1701_v22 = vsel %vm1661_vm13, %v1641_v32, %v1681_v25  ;;  %vm1659_vm15 = vcmp.ge.f32.partialorder %v1639_v34, 0.0 }
 0x12a   : > { %v1679_v29 = vmul.f32 0.01, %v1639_v34  ;;  %v2208_v38 = vpop.f32.mrf.mxu1  ;;  %v2050_v8 = vpack.c.bf16 %v1701_v22, %v1700_v13  ;;  %v2190_v0 = vpop.f32.mrf.mxu0  ;;  %v1271_v16 = vadd.f32 %v1220_v2, %v901_v6 }
 0x12b   : > { %v1642_v5 = vadd.f32 %v2530_v52, %v1575_v3  ;;  %v1578_v39 = vadd.f32 %v2208_v38, %v1270_v27  ;;  %v1684_v17 = vmul.f32 0.01, %v1644_v36  ;;  %vm1664_vm0 = vcmp.ge.f32.partialorder %v1644_v36, 0.0 }
 0x12c   : > { %v1699_v24 = vsel %vm1659_vm15, %v1639_v34, %v1679_v29  ;;  %v1515_v41 = vpop.f32.mrf.mxu1  ;;  %2076 = vst [vmem:[%s2546_s18 + $0x28] sm:$0xff] %v2050_v8   ;;  %v1223_v19 = vpop.f32.mrf.mxu0  ;;  %v1274_v30 = vadd.f32 %v2190_v0, %v904_v43 }
 0x12d   : > { %v2045_v14 = vpack.c.bf16 %v1699_v24, %v1698_v15  ;;  %v1645_v31 = vadd.f32 %v2530_v52, %v1578_v39  ;;  %v1576_v40 = vadd.f32 %v1515_v41, %v1268_v12  ;;  %v1682_v49 = vmul.f32 0.01, %v1642_v5 }
 0x12e   : > { %v2211_v10 = vpop.f32.mrf.mxu1  ;;  %v1704_v28 = vsel %vm1664_vm0, %v1644_v36, %v1684_v17  ;;  %vm1662_vm2 = vcmp.ge.f32.partialorder %v1642_v5, 0.0  ;;  %v1272_v51 = vadd.f32 %v1223_v19, %v902_v7 }
 0x12f   : > { %2075 = vst [vmem:[%s2546_s18 + $0x20] sm:$0xff] %v2045_v14   ;;  %v1581_v45 = vadd.f32 %v2211_v10, %v1273_v26  ;;  %vm1665_vm1 = vcmp.ge.f32.partialorder %v1645_v31, 0.0  ;;  %v1685_v33 = vmul.f32 0.01, %v1645_v31  ;;  %v1643_v42 = vadd.f32 %v2530_v52, %v1576_v40 }
 0x130   : > { %v1528_v21 = vpop.f32.mrf.mxu1  ;;  %v1702_v54 = vsel %vm1662_vm2, %v1642_v5, %v1682_v49 }
 0x131   : > { %v1579_v46 = vadd.f32 %v1528_v21, %v1271_v16  ;;  %v1705_v50 = vsel %vm1665_vm1, %v1645_v31, %v1685_v33  ;;  %vm1663_vm3 = vcmp.ge.f32.partialorder %v1643_v42, 0.0  ;;  %v1683_v35 = vmul.f32 0.01, %v1643_v42 }
 0x132   : > { %v1648_v37 = vadd.f32 %v2530_v52, %v1581_v45  ;;  %v2212_v44 = vpop.f32.mrf.mxu1  ;;  %v2060_v47 = vpack.c.bf16 %v1705_v50, %v1704_v28 }
 0x133   : > { %v1703_v9 = vsel %vm1663_vm3, %v1643_v42, %v1683_v35  ;;  %v1646_v11 = vadd.f32 %v2530_v52, %v1579_v46  ;;  %v1582_v18 = vadd.f32 %v2212_v44, %v1274_v30 }
 0x134   : > { %v1531_v20 = vpop.f32.mrf.mxu1  ;;  %2078 = vst [vmem:[%s2546_s18 + $0x38] sm:$0xff] %v2060_v47   ;;  %v2055_v48 = vpack.c.bf16 %v1703_v9, %v1702_v54  ;;  %v1688_v53 = vmul.f32 0.01, %v1648_v37  ;;  %vm1668_vm4 = vcmp.ge.f32.partialorder %v1648_v37, 0.0 }
 0x135   : > { %v1649_v55 = vadd.f32 %v2530_v52, %v1582_v18  ;;  %v1580_v56 = vadd.f32 %v1531_v20, %v1272_v51  ;;  %v1686_v57 = vmul.f32 0.01, %v1646_v11  ;;  %vm1666_vm6 = vcmp.ge.f32.partialorder %v1646_v11, 0.0 }
 0x136   : > { %2077 = vst [vmem:[%s2546_s18 + $0x30] sm:$0xff] %v2055_v48   ;;  %v1708_v58 = vsel %vm1668_vm4, %v1648_v37, %v1688_v53 }
 0x137   : > { %vm1669_vm5 = vcmp.ge.f32.partialorder %v1649_v55, 0.0  ;;  %v1689_v23 = vmul.f32 0.01, %v1649_v55  ;;  %v1647_v32 = vadd.f32 %v2530_v52, %v1580_v56  ;;  %v1706_v62 = vsel %vm1666_vm6, %v1646_v11, %v1686_v57 }
 0x139   : > { %v1709_v59 = vsel %vm1669_vm5, %v1649_v55, %v1689_v23  ;;  %vm1667_vm7 = vcmp.ge.f32.partialorder %v1647_v32, 0.0  ;;  %v1687_v60 = vmul.f32 0.01, %v1647_v32 }
 0x13a   : > { %v2070_v61 = vpack.c.bf16 %v1709_v59, %v1708_v58 }
 0x13b   : > { %v1707_v63 = vsel %vm1667_vm7, %v1647_v32, %v1687_v60 }
 0x13c   : > { %2080 = vst [vmem:[%s2546_s18 + $0x48] sm:$0xff] %v2070_v61   ;;  %v2065_v25 = vpack.c.bf16 %v1707_v63, %v1706_v62 }
 0x13e   : > { %2079 = vst [vmem:[%s2546_s18 + $0x40] sm:$0xff] %v2065_v25  }
 0x13f PF: > { %s14_s15 = sadd.s32 1, %s2274_s15  }
 0x140   : > { %p11_p6 = scmp.ge.s32.totalorder %s14_s15, 6  }
 0x142   :  { %13 = sbr.rel (!%p11_p6) target bundleno = 1 (0x1), region = 72 }

// kernel: discriminator_forward.5
= control target key start
LH: loop header
LB: loop body
LE: loop exit
PB: predicated region body
PF: predicated region fallthrough
CT: control target
= control target key end

     0   :  { %s1980_s15 = smov 0   ;;  %s2325_s0 = inlined_call_operand.vmem [shape: bf16[240,256], index: 0, kind: input, shape index: {}, may-alias: {0,1}]   ;;  %s2326_s1 = inlined_call_operand.vmem [shape: bf16[240,256], index: 1, kind: input, shape index: {}, may-alias: {0,1}]   ;;  %s2327_s2 = inlined_call_operand.vmem [shape: bf16[4,256,128], index: 2, kind: input, shape index: {}]   ;;  %s2328_s3 = inlined_call_operand.vmem [shape: f32[1,128], index: 3, kind: input, shape index: {}]   ;;  %s2329_s4 = inlined_call_operand.vmem [shape: bf16[192,128], index: 4, kind: output, shape index: {}]  }
   0x1 LB: > { %s1489_s16 = sadd.s32 4294967295, %s1953_s15   ;;  %p1493_p0 = scmp.ge.s32.totalorder %s1953_s15, 1  ;;  %s1953_s15 = sphi %s1980_s15, %s14_s15  }
   0x2   : > { %p180_p1 = scmp.lt.s32.totalorder %s1953_s15, 5 }
   0x4   : > { %p181_p2 = pnand %p1493_p0, %p180_p1 }
   0x5   : > { %s2035_s23 = smul.u32 (!%p181_p2), 6, %s1489_s16  ;;  %s2080_s29 = sadd.s32 (!%p181_p2), 1, %s1489_s16 }
   0x6   : > { %184 = sbr.rel (%p181_p2) target bundleno = 306 (0x132), region = 36 }
   0x7   : > { %p215_p3 = scmp.lt.s32.totalorder (!%p181_p2), %s2035_s23, 29  ;;  %s222_s12 = smul.u32 (!%p181_p2), 6, %s2080_s29 }
   0x8   : > { %p231_p5 = scmp.lt.s32.totalorder (!%p181_p2), %s2035_s23, 23 }
   0x9   : > { %p2117_p4 = scmp.lt.s32.totalorder (!%p181_p2), %s222_s12, 29 }
   0xb   : > { %v1867_v0 = vld [vmem:[%s2327_s2 + $0x78] sm:$0xff]   ;;  %v1871_v4 = vld [vmem:[%s2327_s2 + $0x70] sm:$0xff]   ;;  %v1875_v8 = vld [vmem:[%s2327_s2 + $0x68] sm:$0xff]   ;;  %s216_s14 = scalar_select %p215_p3, %s2035_s23, 29  ;;  %vm557_vm0 = vsmask.f32 7424 }
   0xc   : > { %v1868_v1 = vld [vmem:[%s2327_s2 + $0xf8] sm:$0xff]   ;;  %1723 = vmatprep.subr.bf16.mxu0 %v1867_v0  ;;  %v1872_v5 = vld [vmem:[%s2327_s2 + $0xf0] sm:$0xff]   ;;  %v1876_v9 = vld [vmem:[%s2327_s2 + $0xe8] sm:$0xff]   ;;  %s2332_s12 = smov (!%p2117_p4, %s222_s12), 29  ;;  %vm1162_vm1 = vcmask 1046528   ;;  %s2334_s23 = smov (!%p231_p5, %s2035_s23), 23 }
   0xd   : > { %v1869_v2 = vld [vmem:[%s2327_s2 + $0x38] sm:$0xff]   ;;  %1757 = vmatprep.subr.bf16.mxu1 %v1868_v1  ;;  %v1873_v6 = vld [vmem:[%s2327_s2 + $0x30] sm:$0xff]   ;;  %v1877_v10 = vld [vmem:[%s2327_s2 + $0x28] sm:$0xff]   ;;  %s1698_s26 = sshll.u32 %s216_s14, 3  ;;  %s1699_s18 = sshll.u32 %s2332_s12, 3 }
   0xe   : > { %v1870_v3 = vld [vmem:[%s2327_s2 + $0xb8] sm:$0xff]   ;;  %1724 = vmatpush3.bf16.msra.mxu0 %v1869_v2  ;;  %v1874_v7 = vld [vmem:[%s2327_s2 + $0xb0] sm:$0xff]   ;;  %v1878_v11 = vld [vmem:[%s2327_s2 + $0xa8] sm:$0xff]   ;;  %s2091_s10 = scalar_lea.vmem %s2325_s0, %s1698_s26  ;;  %s2195_s28 = scalar_lea.vmem %s2326_s1, %s1699_s18 }
   0xf   : > { %1758 = vmatpush3.bf16.msra.mxu1 %v1870_v3  ;;  %1725 = vmatprep.subr.bf16.mxu0 %v1871_v4  ;;  %v1879_v12 = vld [vmem:[%s2327_s2 + $0x60] sm:$0xff]   ;;  %v1883_v16 = vld [vmem:[%s2327_s2 + $0x58] sm:$0xff]   ;;  %v1887_v20 = vld [vmem:[%s2327_s2 + $0x50] sm:$0xff]   ;;  %s1498_s18 = sshll.u32 %s2334_s23, 2 }
  0x10   : > { %1759 = vmatprep.subr.bf16.mxu1 %v1872_v5  ;;  %v1880_v13 = vld [vmem:[%s2327_s2 + $0xe0] sm:$0xff]   ;;  %v1884_v17 = vld [vmem:[%s2327_s2 + $0xd8] sm:$0xff]   ;;  %v1888_v21 = vld [vmem:[%s2327_s2 + $0xd0] sm:$0xff]  }
  0x11   : > { %v1881_v14 = vld [vmem:[%s2327_s2 + $0x20] sm:$0xff]   ;;  %v1885_v18 = vld [vmem:[%s2327_s2 + $0x18] sm:$0xff]   ;;  %v1889_v22 = vld [vmem:[%s2327_s2 + $0x10] sm:$0xff]  }
  0x12   : > { %1726 = vmatpush3.bf16.msra.mxu0 %v1873_v6  ;;  %v1882_v15 = vld [vmem:[%s2327_s2 + $0xa0] sm:$0xff]   ;;  %v1886_v19 = vld [vmem:[%s2327_s2 + $0x98] sm:$0xff]   ;;  %v1890_v23 = vld [vmem:[%s2327_s2 + $0x90] sm:$0xff]  }
  0x13   : > { %1760 = vmatpush3.bf16.msra.mxu1 %v1874_v7  ;;  %1727 = vmatprep.subr.bf16.mxu0 %v1875_v8  ;;  %v1891_v24 = vld [vmem:[%s2327_s2 + $0x48] sm:$0xff]   ;;  %v1895_v28 = vld [vmem:[%s2327_s2 + $0x40] sm:$0xff]   ;;  %v2103_v34 = vld [vmem:[%s2091_s10 + $0x10] sm:$0xff] }
  0x14   : > { %1761 = vmatprep.subr.bf16.mxu1 %v1876_v9  ;;  %v1892_v25 = vld [vmem:[%s2327_s2 + $0xc8] sm:$0xff]   ;;  %v1896_v29 = vld [vmem:[%s2327_s2 + $0xc0] sm:$0xff]   ;;  %v2106_v37 = vld [vmem:[%s2091_s10 + $0x18] sm:$0xff] }
  0x15   : > { %v1893_v26 = vld [vmem:[%s2327_s2 + $0x8] sm:$0xff]   ;;  %v1897_v30 = vld [vmem:[%s2327_s2] sm:$0xff]   ;;  %v1556_v38 = vcombine.high %v2103_v34, %v2106_v37  ;;  %v1555_v39 = vcombine.low %v2103_v34, %v2106_v37  ;;  %v1903_v40 = vld [vmem:[%s2327_s2 + $0x178] sm:$0xff]  }
  0x16   : > { %1728 = vmatpush3.bf16.msra.mxu0 %v1877_v10  ;;  %v1894_v27 = vld [vmem:[%s2327_s2 + $0x88] sm:$0xff]   ;;  %v1898_v31 = vld [vmem:[%s2327_s2 + $0x80] sm:$0xff]   ;;  %v1904_v45 = vld [vmem:[%s2327_s2 + $0x1f8] sm:$0xff]  }
  0x17   : > { %1762 = vmatpush3.bf16.msra.mxu1 %v1878_v11  ;;  %1729 = vmatprep.subr.bf16.mxu0 %v1879_v12  ;;  %v237_v32 = vld [vmem:[%s2091_s10] sm:$0xff]  ;;  %v238_v33 = vld [vmem:[%s2091_s10 + $0x8] sm:$0xff]  ;;  %v1905_v46 = vld [vmem:[%s2327_s2 + $0x138] sm:$0xff]   ;;  %v578_v47 = vshll.u32 %v1556_v38, 16  ;;  %v566_v48 = vshll.u32 %v1555_v39, 16  ;;  %v590_v63 = vshrl.u32 %v1556_v38, 16 }
  0x18   : > { %1763 = vmatprep.subr.bf16.mxu1 %v1880_v13  ;;  %244 = vst [vmem:[#allocation2] sm:$0xff] %v238_v33  ;;  %v1499_v35 = vcombine.low %v237_v32, %v238_v33  ;;  %v1500_v36 = vcombine.high %v237_v32, %v238_v33  ;;  %v1906_v53 = vld [vmem:[%s2327_s2 + $0x1b8] sm:$0xff]   ;;  %v1907_v54 = vld [vmem:[%s2327_s2 + $0x170] sm:$0xff]   ;;  %v1610_v58 = vcombine.high %v238_v33, %v2103_v34  ;;  %v1911_v0 = vld [vmem:[%s2327_s2 + $0x168] sm:$0xff]   ;;  %v582_v1 = vshrl.u32 %v1555_v39, 16 }
  0x19   : > { %v580_v51 = vrot.slane %v578_v47, 1  ;;  %v568_v52 = vrot.slane %v566_v48, 1  ;;  %v1908_v57 = vld [vmem:[%s2327_s2 + $0x1f0] sm:$0xff]   ;;  %v1912_v2 = vld [vmem:[%s2327_s2 + $0x1e8] sm:$0xff]   ;;  %v241_v3 = vld [vmem:[%s2091_s10 + $0x20] sm:$0xff]  ;;  %v2175_v10 = vcombine.low %v238_v33, %v2103_v34 }
  0x1a   : > { %1730 = vmatpush3.bf16.msra.mxu0 %v1881_v14  ;;  %457 = vmatprep.mubr.bf16.mxu0 %v1500_v36  ;;  %v571_v41 = vshrl.u32 %v1500_v36, 16  ;;  %v573_v42 = vshll.u32 %v1500_v36, 16  ;;  %v559_v43 = vshrl.u32 %v1499_v35, 16  ;;  %v561_v44 = vshll.u32 %v1499_v35, 16  ;;  %v1909_v61 = vld [vmem:[%s2327_s2 + $0x130] sm:$0xff]   ;;  %v2159_v4 = vld [vmem:[%s2091_s10 + $0x28] sm:$0xff]  ;;  %s2313_s10 = scalar_lea.vmem %s2329_s4, %s1498_s18 }
  0x1b   : > { %1764 = vmatpush3.bf16.msra.mxu1 %v1882_v15  ;;  %1731 = vmatprep.subr.bf16.mxu0 %v1883_v16  ;;  %v1910_v62 = vld [vmem:[%s2327_s2 + $0x1b0] sm:$0xff]   ;;  %v875_v5 = vshll.u32 %v1610_v58, 16  ;;  %v2162_v6 = vcombine.high %v241_v3, %v2159_v4  ;;  %v1914_v7 = vld [vmem:[%s2327_s2 + $0x128] sm:$0xff]   ;;  %v2168_v8 = vcombine.low %v241_v3, %v2159_v4  ;;  %v873_v11 = vshrl.u32 %v1610_v58, 16  ;;  %v1917_v16 = vld [vmem:[%s2327_s2 + $0x160] sm:$0xff]  }
  0x1c   : > { %1765 = vmatprep.subr.bf16.mxu1 %v1884_v17  ;;  %v575_v49 = vrot.slane %v573_v42, 1  ;;  %v563_v50 = vrot.slane %v561_v44, 1  ;;  %v1915_v9 = vld [vmem:[%s2327_s2 + $0x1a8] sm:$0xff]   ;;  %v592_v12 = vor.u32 %v590_v63, %v580_v51  ;;  %v584_v14 = vor.u32 %v582_v1, %v568_v52  ;;  %v1924_v36 = vld [vmem:[%s2327_s2 + $0x118] sm:$0xff]   ;;  %v1928_v44 = vld [vmem:[%s2327_s2 + $0x1d0] sm:$0xff]  }
  0x1d   : > { %v594_v13 = vshll.u32 %v2162_v6, 16  ;;  %v586_v15 = vshll.u32 %v2168_v8, 16  ;;  %v2184_v17 = vcombine.high %v2106_v37, %v241_v3  ;;  %v2213_v32 = vcombine.low %v2106_v37, %v241_v3  ;;  %v1930_v48 = vld [vmem:[%s2327_s2 + $0x190] sm:$0xff]   ;;  %v1936_v3 = vld [vmem:[%s2327_s2 + $0x1c0] sm:$0xff]  }
  0x1e   : > { %1732 = vmatpush3.bf16.msra.mxu0 %v1885_v18  ;;  %v576_v55 = vor.u32 %v575_v49, %v571_v41  ;;  %v564_v56 = vor.u32 %v563_v50, %v559_v43  ;;  %v877_v18 = vrot.slane %v875_v5, 1  ;;  %v1925_v41 = vld [vmem:[%s2327_s2 + $0x198] sm:$0xff]   ;;  %v598_v42 = vshrl.u32 %v2168_v8, 16  ;;  %v1927_v43 = vld [vmem:[%s2327_s2 + $0x150] sm:$0xff]  }
  0x1f   : > { %1766 = vmatpush3.bf16.msra.mxu1 %v1886_v19  ;;  %1733 = vmatprep.subr.bf16.mxu0 %v1887_v20  ;;  %v596_v19 = vrot.slane %v594_v13, 1  ;;  %v588_v20 = vrot.slane %v586_v15, 1  ;;  %v892_v49 = vshrl.u32 %v2184_v17, 16  ;;  %v250_v13 = vld [vmem:[%s2195_s28 + $0x8] sm:$0xff] }
  0x20   : > { %1767 = vmatprep.subr.bf16.mxu1 %v1888_v21  ;;  %v581_v59 = vsel %vm557_vm0, %v576_v55, %v580_v51  ;;  %v569_v60 = vsel %vm557_vm0, %v564_v56, %v568_v52  ;;  %v1918_v21 = vld [vmem:[%s2327_s2 + $0x1e0] sm:$0xff]   ;;  %v1932_v55 = vld [vmem:[%s2327_s2 + $0x1c8] sm:$0xff]   ;;  %256 = vst [vmem:[#allocation2 + $0x38] sm:$0xff] %v250_v13 }
  0x21   : > { %748 = vmatprep.mubr.bf16.mxu1 %v581_v59  ;;  %v600_v59 = vor.u32 %v598_v42, %v588_v20 }
  0x22   : > { %1734 = vmatpush3.bf16.msra.mxu0 %v1889_v22  ;;  %v1919_v22 = vld [vmem:[%s2327_s2 + $0x120] sm:$0xff]  }
  0x23   : > { %1768 = vmatpush3.bf16.msra.mxu1 %v1890_v23  ;;  %1735 = vmatprep.subr.bf16.mxu0 %v1891_v24  ;;  %v597_v23 = vsel %vm557_vm0, %v592_v12, %v596_v19  ;;  %v589_v24 = vsel %vm557_vm0, %v584_v14, %v588_v20 }
  0x24   : > { %1769 = vmatprep.subr.bf16.mxu1 %v1892_v25  ;;  %v1920_v25 = vld [vmem:[%s2327_s2 + $0x1a0] sm:$0xff]  }
  0x26   : > { %1736 = vmatpush3.bf16.msra.mxu0 %v1893_v26  ;;  %v863_v26 = vshll.u32 %v2175_v10, 16 }
  0x27   : > { %1770 = vmatpush3.bf16.msra.mxu1 %v1894_v27  ;;  %1737 = vmatprep.subr.bf16.mxu0 %v1895_v28  ;;  %v1921_v27 = vld [vmem:[%s2327_s2 + $0x158] sm:$0xff]   ;;  %v878_v28 = vor.u32 %v877_v18, %v873_v11  ;;  %v884_v11 = vshrl.u32 %v2213_v32, 16 }
  0x28   : > { %1771 = vmatprep.subr.bf16.mxu1 %v1896_v29  ;;  %v880_v29 = vshll.u32 %v2184_v17, 16 }
  0x2a   : > { %1738 = vmatpush3.bf16.msra.mxu0 %v1897_v30  ;;  %v1922_v30 = vld [vmem:[%s2327_s2 + $0x1d8] sm:$0xff]   ;;  %v882_v33 = vrot.slane %v880_v29, 1 }
  0x2b   : > { %1772 = vmatpush3.bf16.msra.mxu1 %v1898_v31  ;;  %1791 = vmatprep.subr.bf16.mxu0 %v1903_v40  ;;  %v249_v31 = vld [vmem:[%s2195_s28] sm:$0xff]  ;;  %v606_v40 = vshrl.u32 %v2162_v6, 16  ;;  %v797_v29 = vld [vmem:[#allocation2 + $0x38] sm:$0x11] }
  0x2c   : > { %1825 = vmatprep.subr.bf16.mxu1 %v1904_v45  ;;  %255 = vst [vmem:[#allocation2 + $0x8] sm:$0xff] %v249_v31  ;;  %v883_v37 = vsel %vm557_vm0, %v878_v28, %v882_v33  ;;  %v868_v45 = vshll.u32 %v2213_v32, 16  ;;  %v2258_v63 = vcombine.low %v2159_v4, %v249_v31 }
  0x2d   : > { %458 = vmatmul.mubr.bf16.vlgmr.msra.gmra.mxu0 %v1499_v35  ;;  %v861_v35 = vshrl.u32 %v2175_v10, 16  ;;  %v1093_v10 = vld [vmem:[#allocation2] sm:$0xee] }
  0x2e   : > { %1792 = vmatpush3.bf16.msra.mxu0 %v1905_v46  ;;  %465 = vmatprep.mubr.bf16.mxu0 %v1556_v38  ;;  %v865_v38 = vrot.slane %v863_v26, 1  ;;  %v1929_v46 = vld [vmem:[%s2327_s2 + $0x110] sm:$0xff]   ;;  %v888_v12 = vshll.u32 %v2258_v63, 16  ;;  %v1665_v14 = vcombine.low %v1093_v10, %v2103_v34  ;;  %v1666_v15 = vcombine.high %v1093_v10, %v2103_v34 }
  0x2f   : > { %1793 = vmatprep.subr.bf16.mxu0 %v1907_v54  ;;  %749 = vmatmul.mubr.bf16.vlgmr.msra.gmra.mxu1 %v569_v60  ;;  %v870_v54 = vrot.slane %v868_v45, 1 }
  0x30   : > { %1826 = vmatpush3.bf16.msra.mxu1 %v1906_v53  ;;  %756 = vmatprep.mubr.bf16.mxu1 %v597_v23  ;;  %v1931_v53 = vld [vmem:[%s2327_s2 + $0x148] sm:$0xff]   ;;  %v866_v5 = vor.u32 %v865_v38, %v861_v35  ;;  %v900_v35 = vshrl.u32 %v2258_v63, 16 }
  0x31   : > { %1827 = vmatprep.subr.bf16.mxu1 %v1908_v57  ;;  %v608_v57 = vor.u32 %v606_v40, %v596_v19  ;;  %v1164_v19 = vrot.slane %v2213_v32, 1 }
  0x32   : > { %1794 = vmatpush3.bf16.msra.mxu0 %v1909_v61  ;;  %v1933_v61 = vld [vmem:[%s2327_s2 + $0x108] sm:$0xff]   ;;  %v871_v18 = vsel %vm557_vm0, %v866_v5, %v870_v54 }
  0x33   : > { %1795 = vmatprep.subr.bf16.mxu0 %v1911_v0  ;;  %v494_v50 = vld [vmem:[#allocation2 + $0x8] sm:$0x11] }
  0x34   : > { %1828 = vmatpush3.bf16.msra.mxu1 %v1910_v62  ;;  %v1560_v51 = vcombine.high %v494_v50, %v494_v50  ;;  %v1559_v52 = vcombine.low %v494_v50, %v494_v50  ;;  %v1934_v62 = vld [vmem:[%s2327_s2 + $0x188] sm:$0xff]  }
  0x35   : > { %466 = vmatmul.mubr.bf16.gmra.mxu0 %v1555_v39  ;;  %1829 = vmatprep.subr.bf16.mxu1 %v1912_v2  ;;  %v2220_v39 = vcombine.high %v2159_v4, %v249_v31  ;;  %v1935_v2 = vld [vmem:[%s2327_s2 + $0x140] sm:$0xff]   ;;  %v1616_v31 = vcombine.high %v797_v29, %v797_v29 }
  0x36   : > { %1796 = vmatpush3.bf16.msra.mxu0 %v1914_v7  ;;  %473 = vmatprep.mubr.bf16.mxu0 %v2162_v6  ;;  %v610_v58 = vshll.u32 %v1560_v51, 16  ;;  %v602_v60 = vshll.u32 %v1559_v52, 16  ;;  %v894_v6 = vor.u32 %v892_v49, %v882_v33  ;;  %v1937_v4 = vld [vmem:[%s2327_s2 + $0x100] sm:$0xff]   ;;  %v1615_v33 = vcombine.low %v797_v29, %v797_v29 }
  0x37   : > { %1797 = vmatprep.subr.bf16.mxu0 %v1917_v16  ;;  %757 = vmatmul.mubr.bf16.gmra.mxu1 %v589_v24  ;;  %v896_v47 = vshll.u32 %v2220_v39, 16  ;;  %v1167_v16 = vrot.slane %v2184_v17, 1  ;;  %v1171_v23 = vrot.slane %v2220_v39, 1  ;;  %v886_v24 = vor.u32 %v884_v11, %v870_v54  ;;  %v2301_v29 = vld [vmem:[%s2328_s3] ss:$0 sm:$0xff] }
  0x38   : > { %1830 = vmatpush3.bf16.msra.mxu1 %v1915_v9  ;;  %v612_v0 = vrot.slane %v610_v58, 1  ;;  %v604_v1 = vrot.slane %v602_v60, 1  ;;  %v1938_v9 = vld [vmem:[%s2327_s2 + $0x180] sm:$0xff]   ;;  %v912_v40 = vshll.u32 %v1616_v31, 16 }
  0x39   : > { %1831 = vmatprep.subr.bf16.mxu1 %v1918_v21  ;;  %v2249_v56 = vrot.slane %v896_v47, 1  ;;  %v1163_v21 = vrot.slane %v1665_v14, 1  ;;  %v1172_v26 = vsel %vm1162_vm1, %v1167_v16, %v1171_v23 }
  0x3a   : > { %1798 = vmatpush3.bf16.msra.mxu0 %v1919_v22  ;;  %v613_v7 = vsel %vm557_vm0, %v608_v57, %v612_v0  ;;  %v1166_v22 = vrot.slane %v1666_v15, 1 }
  0x3b   : > { %1799 = vmatprep.subr.bf16.mxu0 %v1921_v27  ;;  %764 = vmatprep.mubr.bf16.mxu1 %v613_v7  ;;  %v899_v20 = vsel %vm557_vm0, %v894_v6, %v2249_v56  ;;  %v1165_v17 = vsel %vm1162_vm1, %v1163_v21, %v1164_v19  ;;  %v908_v27 = vshrl.u32 %v2220_v39, 16  ;;  %v914_v39 = vrot.slane %v912_v40, 1 }
  0x3c   : > { %1832 = vmatpush3.bf16.msra.mxu1 %v1920_v25  ;;  %v890_v25 = vrot.slane %v888_v12, 1  ;;  %v1168_v34 = vsel %vm1162_vm1, %v1166_v22, %v1167_v16 }
  0x3d   : > { %474 = vmatmul.mubr.bf16.gmra.mxu0 %v2168_v8  ;;  %1833 = vmatprep.subr.bf16.mxu1 %v1922_v30  ;;  %v605_v8 = vsel %vm557_vm0, %v600_v59, %v604_v1  ;;  %v1099_v30 = vld [vmem:[#allocation2 + $0x38] sm:$0x11]  ;;  %v910_v38 = vor.u32 %v908_v27, %v2249_v56 }
  0x3e   : > { %1800 = vmatpush3.bf16.msra.mxu0 %v1924_v36  ;;  %1050 = vmatprep.mubr.bf16.mxu0 %v883_v37  ;;  %v891_v28 = vsel %vm557_vm0, %v886_v24, %v890_v25  ;;  %v1672_v32 = vcombine.high %v1099_v30, %v1099_v30  ;;  %v1169_v36 = vrot.slane %v2258_v63, 1  ;;  %v904_v37 = vshll.u32 %v1615_v33, 16 }
  0x3f   : > { %1801 = vmatprep.subr.bf16.mxu0 %v1927_v43  ;;  %765 = vmatmul.mubr.bf16.gmra.mxu1 %v605_v8  ;;  %v902_v42 = vor.u32 %v900_v35, %v890_v25  ;;  %v1671_v45 = vcombine.low %v1099_v30, %v1099_v30 }
  0x40   : > { %1834 = vmatpush3.bf16.msra.mxu1 %v1925_v41  ;;  %1311 = vmatprep.mubr.bf16.mxu1 %v1168_v34  ;;  %v1175_v41 = vrot.slane %v1672_v32, 1  ;;  %v906_v43 = vrot.slane %v904_v37, 1 }
  0x41   : > { %1835 = vmatprep.subr.bf16.mxu1 %v1928_v44  ;;  %v1170_v44 = vsel %vm1162_vm1, %v1164_v19, %v1169_v36  ;;  %v1173_v49 = vrot.slane %v1671_v45, 1 }
  0x42   : > { %1802 = vmatpush3.bf16.msra.mxu0 %v1929_v46  ;;  %v915_v46 = vsel %vm557_vm0, %v910_v38, %v914_v39  ;;  %v1176_v47 = vsel %vm1162_vm1, %v1171_v23, %v1175_v41 }
  0x43   : > { %1803 = vmatprep.subr.bf16.mxu0 %v1931_v53  ;;  %v1174_v50 = vsel %vm1162_vm1, %v1169_v36, %v1173_v49 }
  0x44   : > { %1836 = vmatpush3.bf16.msra.mxu1 %v1930_v48  ;;  %v907_v48 = vsel %vm557_vm0, %v902_v42, %v906_v43 }
  0x45   : > { %1837 = vmatprep.subr.bf16.mxu1 %v1932_v55 }
  0x46   : > { %1804 = vmatpush3.bf16.msra.mxu0 %v1933_v61 }
  0x47   : > { %1805 = vmatprep.subr.bf16.mxu0 %v1935_v2 }
  0x48   : > { %1838 = vmatpush3.bf16.msra.mxu1 %v1934_v62 }
  0x49   : > { %1839 = vmatprep.subr.bf16.mxu1 %v1936_v3 }
  0x4a   : > { %1806 = vmatpush3.bf16.msra.mxu0 %v1937_v4 }
  0x4c   : > { %1840 = vmatpush3.bf16.msra.mxu1 %v1938_v9 }
  0x4d   : > { %1051 = vmatmul.mubr.bf16.vlgmr.msra.gmra.mxu0 %v871_v18 }
  0x4e   : > { %1058 = vmatprep.mubr.bf16.mxu0 %v899_v20 }
  0x4f   : > { %1312 = vmatmul.mubr.bf16.vlgmr.msra.gmra.mxu1 %v1165_v17 }
  0x50   : > { %1319 = vmatprep.mubr.bf16.mxu1 %v1172_v26 }
  0x55   : > { %1059 = vmatmul.mubr.bf16.gmra.mxu0 %v891_v28 }
  0x56   : > { %1066 = vmatprep.mubr.bf16.mxu0 %v915_v46 }
  0x57   : > { %1320 = vmatmul.mubr.bf16.gmra.mxu1 %v1170_v44 }
  0x58   : > { %1327 = vmatprep.mubr.bf16.mxu1 %v1176_v47 }
  0x5d   : > { %1067 = vmatmul.mubr.bf16.gmra.mxu0 %v907_v48 }
  0x5f   : > { %1328 = vmatmul.mubr.bf16.gmra.mxu1 %v1174_v50 }
  0xed   : > { %v1739_v51 = vpop.f32.mrf.mxu0 }
  0xef   : > { %v1740_v52 = vpop.f32.mrf.mxu0  ;;  %v1773_v55 = vpop.f32.mrf.mxu1 }
  0xf0   : > { %v1741_v9 = vadd.f32 %v1740_v52, %v1739_v51 }
  0xf1   : > { %v1742_v53 = vpop.f32.mrf.mxu0  ;;  %v1774_v57 = vpop.f32.mrf.mxu1 }
  0xf2   : > { %v1775_v10 = vadd.f32 %v1774_v57, %v1773_v55 }
  0xf3   : > { %v1743_v54 = vpop.f32.mrf.mxu0  ;;  %v1776_v59 = vpop.f32.mrf.mxu1 }
  0xf4   : > { %v779_v16 = vadd.f32 %v1775_v10, %v1741_v9  ;;  %v1744_v18 = vadd.f32 %v1743_v54, %v1742_v53 }
  0xf5   : > { %v1745_v56 = vpop.f32.mrf.mxu0  ;;  %v1777_v61 = vpop.f32.mrf.mxu1 }
  0xf6   : > { %v1778_v19 = vadd.f32 %v1777_v61, %v1776_v59 }
  0xf7   : > { %v1746_v58 = vpop.f32.mrf.mxu0  ;;  %v1779_v62 = vpop.f32.mrf.mxu1 }
  0xf8   : > { %v780_v34 = vadd.f32 %v1778_v19, %v1744_v18  ;;  %v1747_v17 = vadd.f32 %v1746_v58, %v1745_v56 }
  0xf9   : > { %v1748_v60 = vpop.f32.mrf.mxu0  ;;  %v1780_v0 = vpop.f32.mrf.mxu1 }
  0xfa   : > { %v1781_v26 = vadd.f32 %v1780_v0, %v1779_v62 }
  0xfb   : > { %v1749_v63 = vpop.f32.mrf.mxu0  ;;  %v1782_v2 = vpop.f32.mrf.mxu1 }
  0xfc   : > { %v1750_v35 = vadd.f32 %v1749_v63, %v1748_v60  ;;  %v781_v40 = vadd.f32 %v1781_v26, %v1747_v17 }
  0xfd   : > { %v1751_v1 = vpop.f32.mrf.mxu0  ;;  %v1783_v5 = vpop.f32.mrf.mxu1 }
  0xfe   : > { %v1784_v41 = vadd.f32 %v1783_v5, %v1782_v2 }
  0xff   : > { %v1752_v3 = vpop.f32.mrf.mxu0  ;;  %v1785_v7 = vpop.f32.mrf.mxu1 }
 0x100   : > { %v1753_v47 = vadd.f32 %v1752_v3, %v1751_v1  ;;  %v782_v51 = vadd.f32 %v1784_v41, %v1750_v35 }
 0x101   : > { %v1754_v6 = vpop.f32.mrf.mxu0  ;;  %v1786_v4 = vpop.f32.mrf.mxu1 }
 0x102   : > { %v1787_v48 = vadd.f32 %v1786_v4, %v1785_v7 }
 0x103   : > { %v1755_v8 = vpop.f32.mrf.mxu0  ;;  %v1788_v12 = vpop.f32.mrf.mxu1 }
 0x104   : > { %v783_v61 = vadd.f32 %v1787_v48, %v1753_v47  ;;  %v1756_v62 = vadd.f32 %v1755_v8, %v1754_v6 }
 0x105   : > { %v1789_v14 = vpop.f32.mrf.mxu1 }
 0x106   : > { %v1790_v63 = vadd.f32 %v1789_v14, %v1788_v12 }
 0x108   : > { %v784_v14 = vadd.f32 %v1790_v63, %v1756_v62 }
 0x10d   : > { %v1807_v11 = vpop.f32.mrf.mxu0 }
 0x10f   : > { %v1808_v13 = vpop.f32.mrf.mxu0  ;;  %v1841_v21 = vpop.f32.mrf.mxu1 }
 0x110   : > { %v1809_v15 = vadd.f32 %v1808_v13, %v1807_v11 }
 0x111   : > { %v1810_v20 = vpop.f32.mrf.mxu0  ;;  %v1842_v24 = vpop.f32.mrf.mxu1 }
 0x112   : > { %v1081_v22 = vadd.f32 %v1809_v15, %v779_v16  ;;  %v1843_v27 = vadd.f32 %v1842_v24, %v1841_v21 }
 0x113   : > { %v1811_v23 = vpop.f32.mrf.mxu0  ;;  %v1844_v30 = vpop.f32.mrf.mxu1 }
 0x114   : > { %v1812_v25 = vadd.f32 %v1811_v23, %v1810_v20  ;;  %v1342_v31 = vadd.f32 %v1843_v27, %v1081_v22 }
 0x115   : > { %v1813_v28 = vpop.f32.mrf.mxu0  ;;  %v1845_v36 = vpop.f32.mrf.mxu1 }
 0x116   : > { %v1082_v32 = vadd.f32 %v1812_v25, %v780_v34  ;;  %v1367_v37 = vadd.f32 %v2301_v29, %v1342_v31  ;;  %v1846_v39 = vadd.f32 %v1845_v36, %v1844_v30 }
 0x117   : > { %v1814_v33 = vpop.f32.mrf.mxu0  ;;  %v1847_v43 = vpop.f32.mrf.mxu1 }
 0x118   : > { %v1815_v38 = vadd.f32 %v1814_v33, %v1813_v28  ;;  %v1343_v44 = vadd.f32 %v1846_v39, %v1082_v32  ;;  %v1379_v52 = vmul.f32 0.01, %v1367_v37  ;;  %vm1373_vm2 = vcmp.ge.f32.partialorder %v1367_v37, 0.0 }
 0x119   : > { %v1816_v42 = vpop.f32.mrf.mxu0  ;;  %v1848_v49 = vpop.f32.mrf.mxu1 }
 0x11a   : > { %v1083_v45 = vadd.f32 %v1815_v38, %v781_v40  ;;  %v1368_v53 = vadd.f32 %v2301_v29, %v1343_v44  ;;  %v1849_v54 = vadd.f32 %v1848_v49, %v1847_v43  ;;  %v1385_v2 = vsel %vm1373_vm2, %v1367_v37, %v1379_v52 }
 0x11b   : > { %v1817_v46 = vpop.f32.mrf.mxu0  ;;  %v1850_v56 = vpop.f32.mrf.mxu1 }
 0x11c   : > { %v1818_v50 = vadd.f32 %v1817_v46, %v1816_v42  ;;  %vm1374_vm3 = vcmp.ge.f32.partialorder %v1368_v53, 0.0  ;;  %v1380_v57 = vmul.f32 0.01, %v1368_v53  ;;  %v1344_v58 = vadd.f32 %v1849_v54, %v1083_v45 }
 0x11d   : > { %v1819_v55 = vpop.f32.mrf.mxu0  ;;  %v1851_v0 = vpop.f32.mrf.mxu1 }
 0x11e   : > { %v1084_v59 = vadd.f32 %v1818_v50, %v782_v51  ;;  %v1386_v3 = vsel %vm1374_vm3, %v1368_v53, %v1380_v57  ;;  %v1369_v5 = vadd.f32 %v2301_v29, %v1344_v58  ;;  %v1852_v7 = vadd.f32 %v1851_v0, %v1850_v56 }
 0x11f   : > { %v1820_v60 = vpop.f32.mrf.mxu0  ;;  %v1709_v9 = vpack.c.bf16 %v1386_v3, %v1385_v2  ;;  %v1853_v10 = vpop.f32.mrf.mxu1 }
 0x120   : > { %v1821_v1 = vadd.f32 %v1820_v60, %v1819_v55  ;;  %v1345_v11 = vadd.f32 %v1852_v7, %v1084_v59  ;;  %v1381_v15 = vmul.f32 0.01, %v1369_v5  ;;  %vm1375_vm4 = vcmp.ge.f32.partialorder %v1369_v5, 0.0 }
 0x121   : > { %v1822_v4 = vpop.f32.mrf.mxu0  ;;  %1710 = vst [vmem:[%s2313_s10] sm:$0xff] %v1709_v9   ;;  %v1854_v8 = vpop.f32.mrf.mxu1 }
 0x122   : > { %v1085_v13 = vadd.f32 %v1821_v1, %v783_v61  ;;  %v1370_v16 = vadd.f32 %v2301_v29, %v1345_v11  ;;  %v1855_v18 = vadd.f32 %v1854_v8, %v1853_v10  ;;  %v1387_v24 = vsel %vm1375_vm4, %v1369_v5, %v1381_v15 }
 0x123   : > { %v1823_v6 = vpop.f32.mrf.mxu0  ;;  %v1856_v19 = vpop.f32.mrf.mxu1 }
 0x124   : > { %v1824_v12 = vadd.f32 %v1823_v6, %v1822_v4  ;;  %vm1376_vm5 = vcmp.ge.f32.partialorder %v1370_v16, 0.0  ;;  %v1382_v20 = vmul.f32 0.01, %v1370_v16  ;;  %v1346_v21 = vadd.f32 %v1855_v18, %v1085_v13 }
 0x125   : > { %v1857_v23 = vpop.f32.mrf.mxu1 }
 0x126   : > { %v1086_v22 = vadd.f32 %v1824_v12, %v784_v14  ;;  %v1388_v25 = vsel %vm1376_vm5, %v1370_v16, %v1382_v20  ;;  %v1371_v34 = vadd.f32 %v2301_v29, %v1346_v21  ;;  %v1858_v17 = vadd.f32 %v1857_v23, %v1856_v19 }
 0x127   : > { %v1714_v26 = vpack.c.bf16 %v1388_v25, %v1387_v24 }
 0x128   : > { %v1347_v27 = vadd.f32 %v1858_v17, %v1086_v22  ;;  %v1383_v28 = vmul.f32 0.01, %v1371_v34  ;;  %vm1377_vm6 = vcmp.ge.f32.partialorder %v1371_v34, 0.0 }
 0x129   : > { %1721 = vst [vmem:[%s2313_s10 + $0x8] sm:$0xff] %v1714_v26  }
 0x12a   : > { %v1372_v30 = vadd.f32 %v2301_v29, %v1347_v27  ;;  %v1389_v32 = vsel %vm1377_vm6, %v1371_v34, %v1383_v28 }
 0x12c   : > { %vm1378_vm7 = vcmp.ge.f32.partialorder %v1372_v30, 0.0  ;;  %v1384_v31 = vmul.f32 0.01, %v1372_v30 }
 0x12e   : > { %v1390_v33 = vsel %vm1378_vm7, %v1372_v30, %v1384_v31 }
 0x12f   : > { %v1719_v35 = vpack.c.bf16 %v1390_v33, %v1389_v32 }
 0x131   : > { %1722 = vst [vmem:[%s2313_s10 + $0x10] sm:$0xff] %v1719_v35  }
 0x132 PF: > { %s14_s15 = sadd.s32 1, %s1953_s15  }
 0x133   : > { %p11_p6 = scmp.ge.s32.totalorder %s14_s15, 6  }
 0x135   :  { %13 = sbr.rel (!%p11_p6) target bundleno = 1 (0x1), region = 72 }

// kernel: discriminator_forward.6
= control target key start
LH: loop header
LB: loop body
LE: loop exit
PB: predicated region body
PF: predicated region fallthrough
CT: control target
= control target key end

     0   :  { %s3506_s15 = smov 0   ;;  %s4396_s0 = inlined_call_operand.vmem [shape: bf16[80,512], index: 0, kind: input, shape index: {}, may-alias: {0,1}]   ;;  %s4397_s1 = inlined_call_operand.vmem [shape: bf16[80,512], index: 1, kind: input, shape index: {}, may-alias: {0,1}]   ;;  %s4398_s2 = inlined_call_operand.vmem [shape: bf16[4,512,256], index: 2, kind: input, shape index: {}]   ;;  %s4399_s3 = inlined_call_operand.vmem [shape: f32[1,256], index: 3, kind: input, shape index: {}]   ;;  %s4400_s4 = inlined_call_operand.vmem [shape: bf16[64,256], index: 4, kind: output, shape index: {}]  }
   0x1 LB: > { %s2556_s16 = sadd.s32 4294967295, %s3479_s15   ;;  %p2560_p0 = scmp.ge.s32.totalorder %s3479_s15, 1  ;;  %s3479_s15 = sphi %s3506_s15, %s14_s15  }
   0x2   : > { %p180_p1 = scmp.lt.s32.totalorder %s3479_s15, 5 }
   0x4   : > { %p181_p2 = pnand %p2560_p0, %p180_p1 }
   0x5   : > { %s3606_s29 = sshll.u32 (!%p181_p2), %s2556_s16, 1 }
   0x6   : > { %184 = sbr.rel (%p181_p2) target bundleno = 481 (0x1e1), region = 36  ;;  %p216_p3 = scmp.lt.s32.totalorder (!%p181_p2), %s3606_s29, 9 }
   0x7   : > { %s3052_s26 = sadd.s32 (!%p181_p2), 2, %s3606_s29  ;;  %p232_p5 = scmp.lt.s32.totalorder (!%p181_p2), %s3606_s29, 7 }
   0x8   : > { %p224_p4 = scmp.lt.s32.totalorder (!%p181_p2), %s3052_s26, 9 }
   0xb   : > { %v3065_v0 = vld [vmem:[%s4398_s2 + $0x74] ss:$8 sps:$4 sm:$0xff]   ;;  %v3069_v2 = vld [vmem:[%s4398_s2 + $0x70] ss:$8 sps:$4 sm:$0xff]   ;;  %v3071_v4 = vld [vmem:[%s4398_s2 + $0x64] ss:$8 sps:$4 sm:$0xff]  }
   0xc   : > { %v3067_v1 = vld [vmem:[%s4398_s2 + $0x174] ss:$8 sps:$4 sm:$0xff]   ;;  %662 = vmatprep.subr.bf16.mxu0 %v3065_v0  ;;  %v3070_v3 = vld [vmem:[%s4398_s2 + $0x170] ss:$8 sps:$4 sm:$0xff]   ;;  %v3073_v5 = vld [vmem:[%s4398_s2 + $0x164] ss:$8 sps:$4 sm:$0xff]  }
   0xd   : > { %705 = vmatprep.subr.bf16.mxu1 %v3067_v1  ;;  %663 = vmatpush1.bf16.msra.mxu0 %v3069_v2  ;;  %v3075_v6 = vld [vmem:[%s4398_s2 + $0x60] ss:$8 sps:$4 sm:$0xff]   ;;  %v3077_v8 = vld [vmem:[%s4398_s2 + $0x54] ss:$8 sps:$4 sm:$0xff]   ;;  %v3081_v10 = vld [vmem:[%s4398_s2 + $0x50] ss:$8 sps:$4 sm:$0xff]  }
   0xe   : > { %706 = vmatpush1.bf16.msra.mxu1 %v3070_v3  ;;  %664 = vmatprep.subr.bf16.mxu0 %v3071_v4  ;;  %v3076_v7 = vld [vmem:[%s4398_s2 + $0x160] ss:$8 sps:$4 sm:$0xff]   ;;  %v3079_v9 = vld [vmem:[%s4398_s2 + $0x154] ss:$8 sps:$4 sm:$0xff]   ;;  %v3082_v11 = vld [vmem:[%s4398_s2 + $0x150] ss:$8 sps:$4 sm:$0xff]  }
   0xf   : > { %707 = vmatprep.subr.bf16.mxu1 %v3073_v5  ;;  %v3083_v12 = vld [vmem:[%s4398_s2 + $0x44] ss:$8 sps:$4 sm:$0xff]   ;;  %v3087_v14 = vld [vmem:[%s4398_s2 + $0x40] ss:$8 sps:$4 sm:$0xff]   ;;  %v3089_v16 = vld [vmem:[%s4398_s2 + $0x34] ss:$8 sps:$4 sm:$0xff]  }
  0x10   : > { %v3085_v13 = vld [vmem:[%s4398_s2 + $0x144] ss:$8 sps:$4 sm:$0xff]   ;;  %v3088_v15 = vld [vmem:[%s4398_s2 + $0x140] ss:$8 sps:$4 sm:$0xff]   ;;  %v3091_v17 = vld [vmem:[%s4398_s2 + $0x134] ss:$8 sps:$4 sm:$0xff]  }
  0x11   : > { %665 = vmatpush1.bf16.msra.mxu0 %v3075_v6  ;;  %v3093_v18 = vld [vmem:[%s4398_s2 + $0x30] ss:$8 sps:$4 sm:$0xff]   ;;  %v3095_v20 = vld [vmem:[%s4398_s2 + $0x24] ss:$8 sps:$4 sm:$0xff]   ;;  %v3099_v22 = vld [vmem:[%s4398_s2 + $0x20] ss:$8 sps:$4 sm:$0xff]  }
  0x12   : > { %708 = vmatpush1.bf16.msra.mxu1 %v3076_v7  ;;  %666 = vmatprep.subr.bf16.mxu0 %v3077_v8  ;;  %v3094_v19 = vld [vmem:[%s4398_s2 + $0x130] ss:$8 sps:$4 sm:$0xff]   ;;  %v3097_v21 = vld [vmem:[%s4398_s2 + $0x124] ss:$8 sps:$4 sm:$0xff]   ;;  %v3100_v23 = vld [vmem:[%s4398_s2 + $0x120] ss:$8 sps:$4 sm:$0xff]  }
  0x13   : > { %709 = vmatprep.subr.bf16.mxu1 %v3079_v9  ;;  %v3101_v24 = vld [vmem:[%s4398_s2 + $0x14] ss:$8 sps:$4 sm:$0xff]   ;;  %v3105_v26 = vld [vmem:[%s4398_s2 + $0x10] ss:$8 sps:$4 sm:$0xff]   ;;  %v3107_v28 = vld [vmem:[%s4398_s2 + $0x4] ss:$8 sps:$4 sm:$0xff]  }
  0x14   : > { %v3103_v25 = vld [vmem:[%s4398_s2 + $0x114] ss:$8 sps:$4 sm:$0xff]   ;;  %v3106_v27 = vld [vmem:[%s4398_s2 + $0x110] ss:$8 sps:$4 sm:$0xff]   ;;  %v3109_v29 = vld [vmem:[%s4398_s2 + $0x104] ss:$8 sps:$4 sm:$0xff]  }
  0x15   : > { %667 = vmatpush1.bf16.msra.mxu0 %v3081_v10  ;;  %v3111_v30 = vld [vmem:[%s4398_s2] ss:$8 sps:$4 sm:$0xff]   ;;  %v3113_v32 = vld [vmem:[%s4398_s2 + $0xf4] ss:$8 sps:$4 sm:$0xff]   ;;  %v3117_v34 = vld [vmem:[%s4398_s2 + $0xf0] ss:$8 sps:$4 sm:$0xff]  }
  0x16   : > { %710 = vmatpush1.bf16.msra.mxu1 %v3082_v11  ;;  %668 = vmatprep.subr.bf16.mxu0 %v3083_v12  ;;  %v3112_v31 = vld [vmem:[%s4398_s2 + $0x100] ss:$8 sps:$4 sm:$0xff]   ;;  %v3115_v33 = vld [vmem:[%s4398_s2 + $0x1f4] ss:$8 sps:$4 sm:$0xff]   ;;  %v3118_v35 = vld [vmem:[%s4398_s2 + $0x1f0] ss:$8 sps:$4 sm:$0xff]  }
  0x17   : > { %711 = vmatprep.subr.bf16.mxu1 %v3085_v13  ;;  %v3119_v36 = vld [vmem:[%s4398_s2 + $0xe4] ss:$8 sps:$4 sm:$0xff]   ;;  %s217_s19 = scalar_select %p216_p3, %s3606_s29, 9  ;;  %v3123_v38 = vld [vmem:[%s4398_s2 + $0xe0] ss:$8 sps:$4 sm:$0xff]   ;;  %vm2005_vm2 = vcmask 1044480  }
  0x18   : > { %v3121_v37 = vld [vmem:[%s4398_s2 + $0x1e4] ss:$8 sps:$4 sm:$0xff]   ;;  %v3124_v39 = vld [vmem:[%s4398_s2 + $0x1e0] ss:$8 sps:$4 sm:$0xff]   ;;  %v3125_v40 = vld [vmem:[%s4398_s2 + $0xd4] ss:$8 sps:$4 sm:$0xff]  }
  0x19   : > { %669 = vmatpush1.bf16.msra.mxu0 %v3087_v14  ;;  %s3050_s28 = sshll.u32 %s217_s19, 4  ;;  %v3127_v41 = vld [vmem:[%s4398_s2 + $0x1d4] ss:$8 sps:$4 sm:$0xff]   ;;  %v3129_v42 = vld [vmem:[%s4398_s2 + $0xd0] ss:$8 sps:$4 sm:$0xff]   ;;  %s4402_s26 = smov (!%p224_p4, %s3052_s26), 9 }
  0x1a   : > { %712 = vmatpush1.bf16.msra.mxu1 %v3088_v15  ;;  %670 = vmatprep.subr.bf16.mxu0 %v3089_v16  ;;  %v3130_v43 = vld [vmem:[%s4398_s2 + $0x1d0] ss:$8 sps:$4 sm:$0xff]   ;;  %s220_s11 = scalar_lea.vmem %s4396_s0, %s3050_s28  ;;  %v3131_v44 = vld [vmem:[%s4398_s2 + $0xc4] ss:$8 sps:$4 sm:$0xff]   ;;  %v3135_v46 = vld [vmem:[%s4398_s2 + $0xc0] ss:$8 sps:$4 sm:$0xff]  }
  0x1b   : > { %713 = vmatprep.subr.bf16.mxu1 %v3091_v17  ;;  %v3133_v45 = vld [vmem:[%s4398_s2 + $0x1c4] ss:$8 sps:$4 sm:$0xff]   ;;  %v3136_v47 = vld [vmem:[%s4398_s2 + $0x1c0] ss:$8 sps:$4 sm:$0xff]   ;;  %v3667_v49 = vld [vmem:[%s220_s11 + $0x10] sm:$0xff]  ;;  %s3053_s25 = sshll.u32 %s4402_s26, 4 }
  0x1c   : > { %v238_v48 = vld [vmem:[%s220_s11] sm:$0xff]  ;;  %v239_v50 = vld [vmem:[%s220_s11 + $0x8] sm:$0xff]  ;;  %v3669_v51 = vld [vmem:[%s220_s11 + $0x18] sm:$0xff]  ;;  %244 = vst [vmem:[#allocation2 + $0x18] sm:$0xff] %v3667_v49  ;;  %s228_s16 = scalar_lea.vmem %s4397_s1, %s3053_s25  ;;  %vm849_vm0 = vsmask.f32 7424 }
  0x1d   : > { %671 = vmatpush1.bf16.msra.mxu0 %v3093_v18  ;;  %242 = vst [vmem:[#allocation2 + $0x30] sm:$0xff] %v238_v48  ;;  %v3137_v52 = vld [vmem:[%s4398_s2 + $0xb4] ss:$8 sps:$4 sm:$0xff]   ;;  %v3676_v53 = vcombine.high %v238_v48, %v3667_v49  ;;  %243 = vst [vmem:[#allocation2] sm:$0xff] %v239_v50  ;;  %v3683_v55 = vcombine.high %v239_v50, %v3669_v51  ;;  %v3141_v56 = vld [vmem:[%s4398_s2 + $0xb0] ss:$8 sps:$4 sm:$0xff]   ;;  %v3736_v8 = vcombine.low %v238_v48, %v3667_v49 }
  0x1e   : > { %714 = vmatpush1.bf16.msra.mxu1 %v3094_v19  ;;  %672 = vmatprep.subr.bf16.mxu0 %v3095_v20  ;;  %245 = vst [vmem:[#allocation2 + $0x10] sm:$0xff] %v3669_v51  ;;  %v3139_v54 = vld [vmem:[%s4398_s2 + $0x1b4] ss:$8 sps:$4 sm:$0xff]   ;;  %v3142_v57 = vld [vmem:[%s4398_s2 + $0x1b0] ss:$8 sps:$4 sm:$0xff]   ;;  %v3739_v9 = vcombine.low %v239_v50, %v3669_v51  ;;  %s4404_s29 = smov (!%p232_p5, %s3606_s29), 7 }
  0x1f   : > { %715 = vmatprep.subr.bf16.mxu1 %v3097_v21  ;;  %694 = vmatprep.mubr.bf16.mxu0 %v3676_v53  ;;  %v3143_v58 = vld [vmem:[%s4398_s2 + $0xa4] ss:$8 sps:$4 sm:$0xff]   ;;  %v3147_v60 = vld [vmem:[%s4398_s2 + $0xa0] ss:$8 sps:$4 sm:$0xff]   ;;  %v3149_v62 = vld [vmem:[%s4398_s2 + $0x94] ss:$8 sps:$4 sm:$0xff]  }
  0x20   : > { %737 = vmatprep.mubr.bf16.mxu1 %v3683_v55  ;;  %v3145_v59 = vld [vmem:[%s4398_s2 + $0x1a4] ss:$8 sps:$4 sm:$0xff]   ;;  %v3148_v61 = vld [vmem:[%s4398_s2 + $0x1a0] ss:$8 sps:$4 sm:$0xff]   ;;  %v3151_v63 = vld [vmem:[%s4398_s2 + $0x194] ss:$8 sps:$4 sm:$0xff]  }
  0x21   : > { %673 = vmatpush1.bf16.msra.mxu0 %v3099_v22  ;;  %v3153_v0 = vld [vmem:[%s4398_s2 + $0x90] ss:$8 sps:$4 sm:$0xff]   ;;  %v3155_v2 = vld [vmem:[%s4398_s2 + $0x84] ss:$8 sps:$4 sm:$0xff]   ;;  %v3159_v4 = vld [vmem:[%s4398_s2 + $0x80] ss:$8 sps:$4 sm:$0xff]  }
  0x22   : > { %716 = vmatpush1.bf16.msra.mxu1 %v3100_v23  ;;  %674 = vmatprep.subr.bf16.mxu0 %v3101_v24  ;;  %v3154_v1 = vld [vmem:[%s4398_s2 + $0x190] ss:$8 sps:$4 sm:$0xff]   ;;  %v3157_v3 = vld [vmem:[%s4398_s2 + $0x184] ss:$8 sps:$4 sm:$0xff]   ;;  %v3160_v5 = vld [vmem:[%s4398_s2 + $0x180] ss:$8 sps:$4 sm:$0xff]  }
  0x23   : > { %717 = vmatprep.subr.bf16.mxu1 %v3103_v25  ;;  %v3167_v6 = vld [vmem:[%s4398_s2 + $0x274] ss:$8 sps:$4 sm:$0xff]   ;;  %v3165_v10 = vld [vmem:[%s4398_s2 + $0x270] ss:$8 sps:$4 sm:$0xff]   ;;  %v3173_v12 = vld [vmem:[%s4398_s2 + $0x264] ss:$8 sps:$4 sm:$0xff]  }
  0x24   : > { %v3170_v7 = vld [vmem:[%s4398_s2 + $0x374] ss:$8 sps:$4 sm:$0xff]   ;;  %v3168_v11 = vld [vmem:[%s4398_s2 + $0x370] ss:$8 sps:$4 sm:$0xff]   ;;  %v3176_v13 = vld [vmem:[%s4398_s2 + $0x364] ss:$8 sps:$4 sm:$0xff]  }
  0x25   : > { %675 = vmatpush1.bf16.msra.mxu0 %v3105_v26  ;;  %v3171_v14 = vld [vmem:[%s4398_s2 + $0x260] ss:$8 sps:$4 sm:$0xff]   ;;  %v3179_v16 = vld [vmem:[%s4398_s2 + $0x254] ss:$8 sps:$4 sm:$0xff]   ;;  %v3177_v18 = vld [vmem:[%s4398_s2 + $0x250] ss:$8 sps:$4 sm:$0xff]  }
  0x26   : > { %718 = vmatpush1.bf16.msra.mxu1 %v3106_v27  ;;  %676 = vmatprep.subr.bf16.mxu0 %v3107_v28  ;;  %v3174_v15 = vld [vmem:[%s4398_s2 + $0x360] ss:$8 sps:$4 sm:$0xff]   ;;  %v3182_v17 = vld [vmem:[%s4398_s2 + $0x354] ss:$8 sps:$4 sm:$0xff]   ;;  %v3180_v19 = vld [vmem:[%s4398_s2 + $0x350] ss:$8 sps:$4 sm:$0xff]  }
  0x27   : > { %719 = vmatprep.subr.bf16.mxu1 %v3109_v29  ;;  %v3185_v20 = vld [vmem:[%s4398_s2 + $0x244] ss:$8 sps:$4 sm:$0xff]   ;;  %v3183_v22 = vld [vmem:[%s4398_s2 + $0x240] ss:$8 sps:$4 sm:$0xff]   ;;  %v3191_v24 = vld [vmem:[%s4398_s2 + $0x234] ss:$8 sps:$4 sm:$0xff]  }
  0x28   : > { %v3188_v21 = vld [vmem:[%s4398_s2 + $0x344] ss:$8 sps:$4 sm:$0xff]   ;;  %v3186_v23 = vld [vmem:[%s4398_s2 + $0x340] ss:$8 sps:$4 sm:$0xff]   ;;  %v3194_v25 = vld [vmem:[%s4398_s2 + $0x334] ss:$8 sps:$4 sm:$0xff]  }
  0x29   : > { %677 = vmatpush1.bf16.msra.mxu0 %v3111_v30  ;;  %v3189_v26 = vld [vmem:[%s4398_s2 + $0x230] ss:$8 sps:$4 sm:$0xff]   ;;  %v3197_v28 = vld [vmem:[%s4398_s2 + $0x224] ss:$8 sps:$4 sm:$0xff]   ;;  %v3195_v30 = vld [vmem:[%s4398_s2 + $0x220] ss:$8 sps:$4 sm:$0xff]  }
  0x2a   : > { %720 = vmatpush1.bf16.msra.mxu1 %v3112_v31  ;;  %678 = vmatprep.subr.bf16.mxu0 %v3113_v32  ;;  %v3192_v27 = vld [vmem:[%s4398_s2 + $0x330] ss:$8 sps:$4 sm:$0xff]   ;;  %v3200_v29 = vld [vmem:[%s4398_s2 + $0x324] ss:$8 sps:$4 sm:$0xff]   ;;  %v3198_v31 = vld [vmem:[%s4398_s2 + $0x320] ss:$8 sps:$4 sm:$0xff]  }
  0x2b   : > { %721 = vmatprep.subr.bf16.mxu1 %v3115_v33  ;;  %v3203_v32 = vld [vmem:[%s4398_s2 + $0x214] ss:$8 sps:$4 sm:$0xff]   ;;  %v3213_v48 = vld [vmem:[%s4398_s2 + $0x2f0] ss:$8 sps:$4 sm:$0xff]   ;;  %vm1417_vm1 = vsmask.f32 5376 }
  0x2c   : > { %v3206_v33 = vld [vmem:[%s4398_s2 + $0x314] ss:$8 sps:$4 sm:$0xff]   ;;  %s3054_s11 = sshll.u32 %s4404_s29, 3 }
  0x2d   : > { %679 = vmatpush2.bf16.msra.mxu0 %v3117_v34  ;;  %v3201_v34 = vld [vmem:[%s4398_s2 + $0x210] ss:$8 sps:$4 sm:$0xff]   ;;  %s236_s14 = scalar_lea.vmem %s4400_s4, %s3054_s11 }
  0x2e   : > { %722 = vmatpush2.bf16.msra.mxu1 %v3118_v35  ;;  %680 = vmatprep.subr.bf16.mxu0 %v3119_v36  ;;  %v3204_v35 = vld [vmem:[%s4398_s2 + $0x310] ss:$8 sps:$4 sm:$0xff]   ;;  %v246_v36 = vld [vmem:[%s228_s16] sm:$0xff] }
  0x2f   : > { %723 = vmatprep.subr.bf16.mxu1 %v3121_v37  ;;  %250 = vst [vmem:[#allocation2 + $0x8] sm:$0xff] %v246_v36  ;;  %v247_v37 = vld [vmem:[%s228_s16 + $0x8] sm:$0xff] }
  0x30   : > { %251 = vst [vmem:[#allocation2 + $0x20] sm:$0xff] %v247_v37 }
  0x31   : > { %681 = vmatpush2.bf16.msra.mxu0 %v3123_v38  ;;  %v3209_v38 = vld [vmem:[%s4398_s2 + $0x204] ss:$8 sps:$4 sm:$0xff]  }
  0x32   : > { %724 = vmatpush2.bf16.msra.mxu1 %v3124_v39  ;;  %682 = vmatprep.subr.bf16.mxu0 %v3125_v40  ;;  %v3212_v39 = vld [vmem:[%s4398_s2 + $0x304] ss:$8 sps:$4 sm:$0xff]   ;;  %v865_v40 = vshll.u32 %v3676_v53, 16 }
  0x33   : > { %725 = vmatprep.subr.bf16.mxu1 %v3127_v41  ;;  %v889_v41 = vshll.u32 %v3683_v55, 16 }
  0x35   : > { %683 = vmatpush2.bf16.msra.mxu0 %v3129_v42  ;;  %v3207_v42 = vld [vmem:[%s4398_s2 + $0x200] ss:$8 sps:$4 sm:$0xff]  }
  0x36   : > { %726 = vmatpush2.bf16.msra.mxu1 %v3130_v43  ;;  %684 = vmatprep.subr.bf16.mxu0 %v3131_v44  ;;  %v3210_v43 = vld [vmem:[%s4398_s2 + $0x300] ss:$8 sps:$4 sm:$0xff]   ;;  %v3215_v44 = vld [vmem:[%s4398_s2 + $0x2f4] ss:$8 sps:$4 sm:$0xff]  }
  0x37   : > { %727 = vmatprep.subr.bf16.mxu1 %v3133_v45  ;;  %v3218_v45 = vld [vmem:[%s4398_s2 + $0x3f4] ss:$8 sps:$4 sm:$0xff]   ;;  %v3849_v50 = vld [vmem:[#allocation2 + $0x8] sm:$0x11] }
  0x39   : > { %685 = vmatpush2.bf16.msra.mxu0 %v3135_v46  ;;  %v863_v46 = vshrl.u32 %v3676_v53, 16  ;;  %v3216_v53 = vld [vmem:[%s4398_s2 + $0x3f0] ss:$8 sps:$4 sm:$0xff]  }
  0x3a   : > { %728 = vmatpush2.bf16.msra.mxu1 %v3136_v47  ;;  %686 = vmatprep.subr.bf16.mxu0 %v3137_v52  ;;  %v867_v47 = vrot.slane %v865_v40, 1  ;;  %v887_v52 = vshrl.u32 %v3683_v55, 16  ;;  %v3224_v55 = vld [vmem:[%s4398_s2 + $0x3e4] ss:$8 sps:$4 sm:$0xff]  }
  0x3b   : > { %729 = vmatprep.subr.bf16.mxu1 %v3139_v54  ;;  %v891_v54 = vrot.slane %v889_v41, 1 }
  0x3d   : > { %687 = vmatpush2.bf16.msra.mxu0 %v3141_v56  ;;  %v2707_v56 = vcombine.high %v3849_v50, %v3849_v50 }
  0x3e   : > { %730 = vmatpush2.bf16.msra.mxu1 %v3142_v57  ;;  %688 = vmatprep.subr.bf16.mxu0 %v3143_v58  ;;  %v3854_v57 = vld [vmem:[#allocation2 + $0x20] sm:$0x11] }
  0x3f   : > { %731 = vmatprep.subr.bf16.mxu1 %v3145_v59  ;;  %v3221_v58 = vld [vmem:[%s4398_s2 + $0x2e4] ss:$8 sps:$4 sm:$0xff]   ;;  %v2709_v59 = vcombine.high %v3854_v57, %v3854_v57 }
  0x41   : > { %689 = vmatpush2.bf16.msra.mxu0 %v3147_v60  ;;  %v868_v60 = vor.u32 %v867_v47, %v863_v46  ;;  %v3265_v46 = vld [vmem:[%s4398_s2 + $0x470] ss:$8 sps:$4 sm:$0xff]  }
  0x42   : > { %732 = vmatpush2.bf16.msra.mxu1 %v3148_v61  ;;  %690 = vmatprep.subr.bf16.mxu0 %v3149_v62  ;;  %v870_v61 = vshll.u32 %v2707_v56, 16  ;;  %v892_v62 = vor.u32 %v891_v54, %v887_v52  ;;  %v3273_v52 = vld [vmem:[%s4398_s2 + $0x464] ss:$8 sps:$4 sm:$0xff]   ;;  %v3271_v56 = vld [vmem:[%s4398_s2 + $0x460] ss:$8 sps:$4 sm:$0xff]  }
  0x43   : > { %733 = vmatprep.subr.bf16.mxu1 %v3151_v63  ;;  %v894_v63 = vshll.u32 %v2709_v59, 16  ;;  %v3276_v54 = vld [vmem:[%s4398_s2 + $0x564] ss:$8 sps:$4 sm:$0xff]  }
  0x44   : > { %v3986_v59 = vld [vmem:[#allocation2 + $0x8] sm:$0x77] }
  0x45   : > { %691 = vmatpush2.bf16.msra.mxu0 %v3153_v0  ;;  %v3219_v0 = vld [vmem:[%s4398_s2 + $0x2e0] ss:$8 sps:$4 sm:$0xff]  }
  0x46   : > { %734 = vmatpush2.bf16.msra.mxu1 %v3154_v1  ;;  %692 = vmatprep.subr.bf16.mxu0 %v3155_v2  ;;  %v872_v1 = vrot.slane %v870_v61, 1  ;;  %v3222_v2 = vld [vmem:[%s4398_s2 + $0x3e0] ss:$8 sps:$4 sm:$0xff]  }
  0x47   : > { %735 = vmatprep.subr.bf16.mxu1 %v3157_v3  ;;  %v896_v3 = vrot.slane %v894_v63, 1  ;;  %v3992_v61 = vld [vmem:[#allocation2 + $0x20] sm:$0x77]  ;;  %v2843_v63 = vcombine.high %v3986_v59, %v3986_v59 }
  0x49   : > { %693 = vmatpush2.bf16.msra.mxu0 %v3159_v4  ;;  %v3227_v4 = vld [vmem:[%s4398_s2 + $0x2d4] ss:$8 sps:$4 sm:$0xff]  }
  0x4a   : > { %736 = vmatpush2.bf16.msra.mxu1 %v3160_v5  ;;  %1222 = vmatprep.subr.bf16.mxu0 %v3167_v6  ;;  %v3230_v5 = vld [vmem:[%s4398_s2 + $0x3d4] ss:$8 sps:$4 sm:$0xff]   ;;  %v873_v6 = vsel %vm849_vm0, %v868_v60, %v872_v1  ;;  %v3990_v60 = vld [vmem:[#allocation2] sm:$0xcc]  ;;  %v2845_v1 = vcombine.high %v3992_v61, %v3992_v61 }
  0x4b   : > { %1265 = vmatprep.subr.bf16.mxu1 %v3170_v7  ;;  %v897_v7 = vsel %vm849_vm0, %v892_v62, %v896_v3  ;;  %v3282_v62 = vld [vmem:[%s4398_s2 + $0x554] ss:$8 sps:$4 sm:$0xff]  }
  0x4c   : > { %695 = vmatmul.mubr.bf16.vlgmr.msra.gmra.mxu0 %v3736_v8 }
  0x4d   : > { %738 = vmatmul.mubr.bf16.vlgmr.msra.gmra.mxu1 %v3739_v9  ;;  %1223 = vmatpush1.bf16.msra.mxu0 %v3165_v10  ;;  %v3225_v10 = vld [vmem:[%s4398_s2 + $0x2d0] ss:$8 sps:$4 sm:$0xff]  }
  0x4e   : > { %1266 = vmatpush1.bf16.msra.mxu1 %v3168_v11  ;;  %1224 = vmatprep.subr.bf16.mxu0 %v3173_v12  ;;  %v3228_v11 = vld [vmem:[%s4398_s2 + $0x3d0] ss:$8 sps:$4 sm:$0xff]   ;;  %v3233_v12 = vld [vmem:[%s4398_s2 + $0x2c4] ss:$8 sps:$4 sm:$0xff]  }
  0x4f   : > { %1267 = vmatprep.subr.bf16.mxu1 %v3176_v13  ;;  %1254 = vmatprep.mubr.bf16.mxu0 %v873_v6  ;;  %v3236_v13 = vld [vmem:[%s4398_s2 + $0x3c4] ss:$8 sps:$4 sm:$0xff]   ;;  %v1447_v6 = vshll.u32 %v2843_v63, 16 }
  0x50   : > { %1297 = vmatprep.mubr.bf16.mxu1 %v897_v7 }
  0x51   : > { %1225 = vmatpush1.bf16.msra.mxu0 %v3171_v14  ;;  %v3231_v14 = vld [vmem:[%s4398_s2 + $0x2c0] ss:$8 sps:$4 sm:$0xff]  }
  0x52   : > { %1268 = vmatpush1.bf16.msra.mxu1 %v3174_v15  ;;  %1226 = vmatprep.subr.bf16.mxu0 %v3179_v16  ;;  %v3234_v15 = vld [vmem:[%s4398_s2 + $0x3c0] ss:$8 sps:$4 sm:$0xff]   ;;  %v3239_v16 = vld [vmem:[%s4398_s2 + $0x2b4] ss:$8 sps:$4 sm:$0xff]  }
  0x53   : > { %1269 = vmatprep.subr.bf16.mxu1 %v3182_v17  ;;  %v3242_v17 = vld [vmem:[%s4398_s2 + $0x3b4] ss:$8 sps:$4 sm:$0xff]  }
  0x55   : > { %1227 = vmatpush1.bf16.msra.mxu0 %v3177_v18  ;;  %v3237_v18 = vld [vmem:[%s4398_s2 + $0x2b0] ss:$8 sps:$4 sm:$0xff]  }
  0x56   : > { %1270 = vmatpush1.bf16.msra.mxu1 %v3180_v19  ;;  %1228 = vmatprep.subr.bf16.mxu0 %v3185_v20  ;;  %v3240_v19 = vld [vmem:[%s4398_s2 + $0x3b0] ss:$8 sps:$4 sm:$0xff]   ;;  %v3245_v20 = vld [vmem:[%s4398_s2 + $0x2a4] ss:$8 sps:$4 sm:$0xff]  }
  0x57   : > { %1271 = vmatprep.subr.bf16.mxu1 %v3188_v21  ;;  %v3248_v21 = vld [vmem:[%s4398_s2 + $0x3a4] ss:$8 sps:$4 sm:$0xff]  }
  0x59   : > { %1229 = vmatpush1.bf16.msra.mxu0 %v3183_v22  ;;  %v3243_v22 = vld [vmem:[%s4398_s2 + $0x2a0] ss:$8 sps:$4 sm:$0xff]  }
  0x5a   : > { %1272 = vmatpush1.bf16.msra.mxu1 %v3186_v23  ;;  %1230 = vmatprep.subr.bf16.mxu0 %v3191_v24  ;;  %v853_v23 = vshll.u32 %v3736_v8, 16  ;;  %v3246_v24 = vld [vmem:[%s4398_s2 + $0x3a0] ss:$8 sps:$4 sm:$0xff]  }
  0x5b   : > { %1273 = vmatprep.subr.bf16.mxu1 %v3194_v25  ;;  %v3251_v25 = vld [vmem:[%s4398_s2 + $0x294] ss:$8 sps:$4 sm:$0xff]  }
  0x5d   : > { %1231 = vmatpush1.bf16.msra.mxu0 %v3189_v26  ;;  %v2706_v26 = vcombine.low %v3849_v50, %v3849_v50  ;;  %v3268_v50 = vld [vmem:[%s4398_s2 + $0x570] ss:$8 sps:$4 sm:$0xff]  }
  0x5e   : > { %1274 = vmatpush1.bf16.msra.mxu1 %v3192_v27  ;;  %1232 = vmatprep.subr.bf16.mxu0 %v3197_v28  ;;  %v2708_v27 = vcombine.low %v3854_v57, %v3854_v57  ;;  %v877_v28 = vshll.u32 %v3739_v9, 16  ;;  %v3274_v57 = vld [vmem:[%s4398_s2 + $0x560] ss:$8 sps:$4 sm:$0xff]  }
  0x5f   : > { %1275 = vmatprep.subr.bf16.mxu1 %v3200_v29  ;;  %v3254_v29 = vld [vmem:[%s4398_s2 + $0x394] ss:$8 sps:$4 sm:$0xff]   ;;  %v858_v36 = vshll.u32 %v2706_v26, 16  ;;  %v3286_v26 = vld [vmem:[%s4398_s2 + $0x540] ss:$8 sps:$4 sm:$0xff]  }
  0x60   : > { %v879_v37 = vrot.slane %v877_v28, 1 }
  0x61   : > { %1233 = vmatpush1.bf16.msra.mxu0 %v3195_v30  ;;  %v851_v30 = vshrl.u32 %v3736_v8, 16  ;;  %v882_v8 = vshll.u32 %v2708_v27, 16  ;;  %v860_v41 = vrot.slane %v858_v36, 1  ;;  %v3291_v27 = vld [vmem:[%s4398_s2 + $0x434] ss:$8 sps:$4 sm:$0xff]  }
  0x62   : > { %1276 = vmatpush1.bf16.msra.mxu1 %v3198_v31  ;;  %1234 = vmatprep.subr.bf16.mxu0 %v3203_v32  ;;  %v875_v31 = vshrl.u32 %v3739_v9, 16  ;;  %v3249_v32 = vld [vmem:[%s4398_s2 + $0x290] ss:$8 sps:$4 sm:$0xff]   ;;  %v3260_v9 = vld [vmem:[%s4398_s2 + $0x384] ss:$8 sps:$4 sm:$0xff]  }
  0x63   : > { %1277 = vmatprep.subr.bf16.mxu1 %v3206_v33  ;;  %v3252_v33 = vld [vmem:[%s4398_s2 + $0x390] ss:$8 sps:$4 sm:$0xff]   ;;  %v3295_v36 = vld [vmem:[%s4398_s2 + $0x420] ss:$8 sps:$4 sm:$0xff]  }
  0x65   : > { %1235 = vmatpush1.bf16.msra.mxu0 %v3201_v34  ;;  %v855_v34 = vrot.slane %v853_v23, 1  ;;  %v3283_v23 = vld [vmem:[%s4398_s2 + $0x440] ss:$8 sps:$4 sm:$0xff]  }
  0x66   : > { %1278 = vmatpush1.bf16.msra.mxu1 %v3204_v35  ;;  %1236 = vmatprep.subr.bf16.mxu0 %v3209_v38  ;;  %v3257_v35 = vld [vmem:[%s4398_s2 + $0x284] ss:$8 sps:$4 sm:$0xff]   ;;  %v3255_v38 = vld [vmem:[%s4398_s2 + $0x280] ss:$8 sps:$4 sm:$0xff]  }
  0x67   : > { %1279 = vmatprep.subr.bf16.mxu1 %v3212_v39  ;;  %v3258_v39 = vld [vmem:[%s4398_s2 + $0x380] ss:$8 sps:$4 sm:$0xff]   ;;  %v856_v40 = vor.u32 %v855_v34, %v851_v30  ;;  %v3297_v34 = vld [vmem:[%s4398_s2 + $0x424] ss:$8 sps:$4 sm:$0xff]  }
  0x69   : > { %1237 = vmatpush1.bf16.msra.mxu0 %v3207_v42  ;;  %v880_v42 = vor.u32 %v879_v37, %v875_v31  ;;  %v861_v47 = vsel %vm849_vm0, %v856_v40, %v860_v41  ;;  %v3298_v37 = vld [vmem:[%s4398_s2 + $0x520] ss:$8 sps:$4 sm:$0xff]   ;;  %v3309_v40 = vld [vmem:[%s4398_s2 + $0x404] ss:$8 sps:$4 sm:$0xff]  }
  0x6a   : > { %1280 = vmatpush1.bf16.msra.mxu1 %v3210_v43  ;;  %1238 = vmatprep.subr.bf16.mxu0 %v3215_v44  ;;  %v884_v43 = vrot.slane %v882_v8, 1  ;;  %v3267_v44 = vld [vmem:[%s4398_s2 + $0x474] ss:$8 sps:$4 sm:$0xff]   ;;  %v3312_v41 = vld [vmem:[%s4398_s2 + $0x504] ss:$8 sps:$4 sm:$0xff]  }
  0x6b   : > { %1281 = vmatprep.subr.bf16.mxu1 %v3218_v45  ;;  %v3270_v45 = vld [vmem:[%s4398_s2 + $0x574] ss:$8 sps:$4 sm:$0xff]  }
  0x6c   : > { %v3303_v8 = vld [vmem:[%s4398_s2 + $0x414] ss:$8 sps:$4 sm:$0xff]  }
  0x6d   : > { %1239 = vmatpush2.bf16.msra.mxu0 %v3213_v48  ;;  %v885_v48 = vsel %vm849_vm0, %v880_v42, %v884_v43  ;;  %v3307_v42 = vld [vmem:[%s4398_s2 + $0x400] ss:$8 sps:$4 sm:$0xff]  }
  0x6e   : > { %1282 = vmatpush2.bf16.msra.mxu1 %v3216_v53  ;;  %1240 = vmatprep.subr.bf16.mxu0 %v3221_v58  ;;  %v3279_v53 = vld [vmem:[%s4398_s2 + $0x454] ss:$8 sps:$4 sm:$0xff]   ;;  %v3310_v43 = vld [vmem:[%s4398_s2 + $0x500] ss:$8 sps:$4 sm:$0xff]  }
  0x6f   : > { %1283 = vmatprep.subr.bf16.mxu1 %v3224_v55  ;;  %v3984_v58 = vld [vmem:[#allocation2 + $0x30] sm:$0xcc] }
  0x70   : > { %v2839_v55 = vcombine.high %v3984_v58, %v3667_v49  ;;  %v3277_v49 = vld [vmem:[%s4398_s2 + $0x450] ss:$8 sps:$4 sm:$0xff]  }
  0x71   : > { %1241 = vmatpush2.bf16.msra.mxu0 %v3219_v0  ;;  %v2841_v0 = vcombine.high %v3990_v60, %v3669_v51  ;;  %v3285_v51 = vld [vmem:[%s4398_s2 + $0x444] ss:$8 sps:$4 sm:$0xff]  }
  0x72   : > { %1284 = vmatpush2.bf16.msra.mxu1 %v3222_v2  ;;  %1242 = vmatprep.subr.bf16.mxu0 %v3227_v4  ;;  %v3280_v2 = vld [vmem:[%s4398_s2 + $0x550] ss:$8 sps:$4 sm:$0xff]   ;;  %v1436_v3 = vshrl.u32 %v2839_v55, 16  ;;  %v1439_v4 = vshll.u32 %v2839_v55, 16 }
  0x73   : > { %1285 = vmatprep.subr.bf16.mxu1 %v3230_v5  ;;  %v1444_v5 = vshrl.u32 %v2843_v63, 16  ;;  %v1470_v7 = vshrl.u32 %v2841_v0, 16  ;;  %v3328_v55 = vld [vmem:[%s4398_s2 + $0x5d0] ss:$8 sps:$4 sm:$0xff]   ;;  %v3336_v63 = vld [vmem:[%s4398_s2 + $0x5c4] ss:$8 sps:$4 sm:$0xff]  }
  0x75   : > { %1243 = vmatpush2.bf16.msra.mxu0 %v3225_v10  ;;  %v1473_v10 = vshll.u32 %v2841_v0, 16  ;;  %v3331_v0 = vld [vmem:[%s4398_s2 + $0x4c0] ss:$8 sps:$4 sm:$0xff]  }
  0x76   : > { %1286 = vmatpush2.bf16.msra.mxu1 %v3228_v11  ;;  %1244 = vmatprep.subr.bf16.mxu0 %v3233_v12  ;;  %v1438_v11 = vrot.slane %v1436_v3, 2  ;;  %v1441_v12 = vrot.slane %v1439_v4, 3  ;;  %v3471_v3 = vld [vmem:[#allocation2 + $0x18] sm:$0xff] }
  0x77   : > { %1287 = vmatprep.subr.bf16.mxu1 %v3236_v13  ;;  %v1478_v13 = vshrl.u32 %v2845_v1, 16  ;;  %v2838_v4 = vcombine.low %v3984_v58, %v3471_v3  ;;  %v3345_v58 = vld [vmem:[%s4398_s2 + $0x4a4] ss:$8 sps:$4 sm:$0xff]   ;;  %v3377_v3 = vld [vmem:[%s4398_s2 + $0x650] ss:$8 sps:$4 sm:$0xff]  }
  0x79   : > { %1245 = vmatpush2.bf16.msra.mxu0 %v3231_v14  ;;  %v1481_v14 = vshll.u32 %v2845_v1, 16  ;;  %v3334_v1 = vld [vmem:[%s4398_s2 + $0x5c0] ss:$8 sps:$4 sm:$0xff]  }
  0x7a   : > { %1288 = vmatpush2.bf16.msra.mxu1 %v3234_v15  ;;  %1246 = vmatprep.subr.bf16.mxu0 %v3239_v16  ;;  %v3288_v15 = vld [vmem:[%s4398_s2 + $0x544] ss:$8 sps:$4 sm:$0xff]   ;;  %v1446_v16 = vrot.slane %v1444_v5, 2  ;;  %v3337_v5 = vld [vmem:[%s4398_s2 + $0x4b0] ss:$8 sps:$4 sm:$0xff]  }
  0x7b   : > { %1289 = vmatprep.subr.bf16.mxu1 %v3242_v17  ;;  %v1449_v17 = vrot.slane %v1447_v6, 3  ;;  %v3340_v6 = vld [vmem:[%s4398_s2 + $0x5b0] ss:$8 sps:$4 sm:$0xff]  }
  0x7d   : > { %1247 = vmatpush2.bf16.msra.mxu0 %v3237_v18  ;;  %v1472_v18 = vrot.slane %v1470_v7, 2  ;;  %v2842_v7 = vcombine.low %v3986_v59, %v3986_v59  ;;  %v3343_v59 = vld [vmem:[%s4398_s2 + $0x4a0] ss:$8 sps:$4 sm:$0xff]  }
  0x7e   : > { %1290 = vmatpush2.bf16.msra.mxu1 %v3240_v19  ;;  %1248 = vmatprep.subr.bf16.mxu0 %v3245_v20  ;;  %v1475_v19 = vrot.slane %v1473_v10, 3  ;;  %v1442_v20 = vor.u32 %v1441_v12, %v1438_v11  ;;  %v3472_v10 = vld [vmem:[#allocation2 + $0x10] sm:$0xff]  ;;  %v2844_v11 = vcombine.low %v3992_v61, %v3992_v61  ;;  %v3348_v12 = vld [vmem:[%s4398_s2 + $0x5a4] ss:$8 sps:$4 sm:$0xff]  }
  0x7f   : > { %1291 = vmatprep.subr.bf16.mxu1 %v3248_v21  ;;  %v1480_v21 = vrot.slane %v1478_v13, 2  ;;  %v1419_v13 = vshrl.u32 %v2838_v4, 16 }
  0x81   : > { %1249 = vmatpush2.bf16.msra.mxu0 %v3243_v22  ;;  %v1483_v22 = vrot.slane %v1481_v14, 3  ;;  %v1422_v14 = vshll.u32 %v2838_v4, 16  ;;  %v3380_v4 = vld [vmem:[%s4398_s2 + $0x750] ss:$8 sps:$4 sm:$0xff]  }
  0x82   : > { %1292 = vmatpush2.bf16.msra.mxu1 %v3246_v24  ;;  %1250 = vmatprep.subr.bf16.mxu0 %v3251_v25  ;;  %v1450_v24 = vor.u32 %v1449_v17, %v1446_v16  ;;  %v1476_v25 = vor.u32 %v1475_v19, %v1472_v18  ;;  %v1430_v16 = vshll.u32 %v2842_v7, 16  ;;  %v1461_v18 = vshrl.u32 %v2844_v11, 16 }
  0x83   : > { %1293 = vmatprep.subr.bf16.mxu1 %v3254_v29  ;;  %v1484_v28 = vor.u32 %v1483_v22, %v1480_v21  ;;  %v3294_v29 = vld [vmem:[%s4398_s2 + $0x534] ss:$8 sps:$4 sm:$0xff]   ;;  %v1464_v19 = vshll.u32 %v2844_v11, 16  ;;  %v3349_v22 = vld [vmem:[%s4398_s2 + $0x490] ss:$8 sps:$4 sm:$0xff]  }
  0x84   : > { %v1451_v30 = vsel %vm1417_vm1, %v1442_v20, %v1450_v24  ;;  %v3351_v20 = vld [vmem:[%s4398_s2 + $0x494] ss:$8 sps:$4 sm:$0xff]   ;;  %v1424_v24 = vrot.slane %v1422_v14, 3  ;;  %v3389_v11 = vld [vmem:[%s4398_s2 + $0x630] ss:$8 sps:$4 sm:$0xff]  }
  0x85   : > { %1251 = vmatpush2.bf16.msra.mxu0 %v3249_v32  ;;  %v1485_v31 = vsel %vm1417_vm1, %v1476_v25, %v1484_v28  ;;  %v3289_v32 = vld [vmem:[%s4398_s2 + $0x430] ss:$8 sps:$4 sm:$0xff]   ;;  %v3354_v21 = vld [vmem:[%s4398_s2 + $0x594] ss:$8 sps:$4 sm:$0xff]   ;;  %v3398_v14 = vld [vmem:[%s4398_s2 + $0x720] ss:$8 sps:$4 sm:$0xff]  }
  0x86   : > { %1294 = vmatpush2.bf16.msra.mxu1 %v3252_v33  ;;  %1252 = vmatprep.subr.bf16.mxu0 %v3257_v35  ;;  %v3292_v33 = vld [vmem:[%s4398_s2 + $0x530] ss:$8 sps:$4 sm:$0xff]   ;;  %v3300_v35 = vld [vmem:[%s4398_s2 + $0x524] ss:$8 sps:$4 sm:$0xff]  }
  0x87   : > { %1295 = vmatprep.subr.bf16.mxu1 %v3260_v9  ;;  %v3306_v9 = vld [vmem:[%s4398_s2 + $0x514] ss:$8 sps:$4 sm:$0xff]   ;;  %v3352_v25 = vld [vmem:[%s4398_s2 + $0x590] ss:$8 sps:$4 sm:$0xff]  }
  0x89   : > { %1253 = vmatpush2.bf16.msra.mxu0 %v3255_v38  ;;  %v3301_v38 = vld [vmem:[%s4398_s2 + $0x410] ss:$8 sps:$4 sm:$0xff]  }
  0x8a   : > { %1296 = vmatpush2.bf16.msra.mxu1 %v3258_v39  ;;  %1810 = vmatprep.subr.bf16.mxu0 %v3267_v44  ;;  %v3304_v39 = vld [vmem:[%s4398_s2 + $0x510] ss:$8 sps:$4 sm:$0xff]   ;;  %v3315_v44 = vld [vmem:[%s4398_s2 + $0x4f4] ss:$8 sps:$4 sm:$0xff]  }
  0x8b   : > { %1853 = vmatprep.subr.bf16.mxu1 %v3270_v45  ;;  %v3318_v45 = vld [vmem:[%s4398_s2 + $0x5f4] ss:$8 sps:$4 sm:$0xff]  }
  0x8c   : > { %1255 = vmatmul.mubr.bf16.vlgmr.msra.gmra.mxu0 %v861_v47  ;;  %v3316_v47 = vld [vmem:[%s4398_s2 + $0x5f0] ss:$8 sps:$4 sm:$0xff]  }
  0x8d   : > { %1298 = vmatmul.mubr.bf16.vlgmr.msra.gmra.mxu1 %v885_v48  ;;  %1811 = vmatpush1.bf16.msra.mxu0 %v3265_v46  ;;  %v3313_v46 = vld [vmem:[%s4398_s2 + $0x4f0] ss:$8 sps:$4 sm:$0xff]   ;;  %v3321_v48 = vld [vmem:[%s4398_s2 + $0x4e4] ss:$8 sps:$4 sm:$0xff]  }
  0x8e   : > { %1854 = vmatpush1.bf16.msra.mxu1 %v3268_v50  ;;  %1812 = vmatprep.subr.bf16.mxu0 %v3273_v52  ;;  %v3324_v50 = vld [vmem:[%s4398_s2 + $0x5e4] ss:$8 sps:$4 sm:$0xff]   ;;  %v3319_v52 = vld [vmem:[%s4398_s2 + $0x4e0] ss:$8 sps:$4 sm:$0xff]  }
  0x8f   : > { %1855 = vmatprep.subr.bf16.mxu1 %v3276_v54  ;;  %1842 = vmatprep.mubr.bf16.mxu0 %v1451_v30  ;;  %v3322_v54 = vld [vmem:[%s4398_s2 + $0x5e0] ss:$8 sps:$4 sm:$0xff]   ;;  %v1463_v30 = vrot.slane %v1461_v18, 2  ;;  %v3409_v18 = vld [vmem:[%s4398_s2 + $0x604] ss:$8 sps:$4 sm:$0xff]  }
  0x90   : > { %1885 = vmatprep.mubr.bf16.mxu1 %v1485_v31  ;;  %v1466_v31 = vrot.slane %v1464_v19, 3  ;;  %v3412_v19 = vld [vmem:[%s4398_s2 + $0x704] ss:$8 sps:$4 sm:$0xff]  }
  0x91   : > { %1813 = vmatpush1.bf16.msra.mxu0 %v3271_v56  ;;  %v3327_v56 = vld [vmem:[%s4398_s2 + $0x4d4] ss:$8 sps:$4 sm:$0xff]  }
  0x92   : > { %1856 = vmatpush1.bf16.msra.mxu1 %v3274_v57  ;;  %1814 = vmatprep.subr.bf16.mxu0 %v3279_v53  ;;  %v3330_v57 = vld [vmem:[%s4398_s2 + $0x5d4] ss:$8 sps:$4 sm:$0xff]   ;;  %v3325_v53 = vld [vmem:[%s4398_s2 + $0x4d0] ss:$8 sps:$4 sm:$0xff]  }
  0x93   : > { %1857 = vmatprep.subr.bf16.mxu1 %v3282_v62  ;;  %v3333_v62 = vld [vmem:[%s4398_s2 + $0x4c4] ss:$8 sps:$4 sm:$0xff]  }
  0x95   : > { %1815 = vmatpush1.bf16.msra.mxu0 %v3277_v49  ;;  %v3339_v49 = vld [vmem:[%s4398_s2 + $0x4b4] ss:$8 sps:$4 sm:$0xff]  }
  0x96   : > { %1858 = vmatpush1.bf16.msra.mxu1 %v3280_v2  ;;  %1816 = vmatprep.subr.bf16.mxu0 %v3285_v51  ;;  %v3342_v2 = vld [vmem:[%s4398_s2 + $0x5b4] ss:$8 sps:$4 sm:$0xff]   ;;  %v2840_v51 = vcombine.low %v3990_v60, %v3472_v10  ;;  %v3346_v60 = vld [vmem:[%s4398_s2 + $0x5a0] ss:$8 sps:$4 sm:$0xff]  }
  0x97   : > { %1859 = vmatprep.subr.bf16.mxu1 %v3288_v15  ;;  %v1427_v15 = vshrl.u32 %v2842_v7, 16  ;;  %v3383_v7 = vld [vmem:[%s4398_s2 + $0x640] ss:$8 sps:$4 sm:$0xff]  }
  0x98   : > { %v1453_v17 = vshrl.u32 %v2840_v51, 16  ;;  %v1456_v61 = vshll.u32 %v2840_v51, 16  ;;  %v3386_v10 = vld [vmem:[%s4398_s2 + $0x740] ss:$8 sps:$4 sm:$0xff]   ;;  %v3391_v51 = vld [vmem:[%s4398_s2 + $0x634] ss:$8 sps:$4 sm:$0xff]  }
  0x99   : > { %1817 = vmatpush1.bf16.msra.mxu0 %v3283_v23  ;;  %v1421_v23 = vrot.slane %v1419_v13, 2  ;;  %v3395_v13 = vld [vmem:[%s4398_s2 + $0x620] ss:$8 sps:$4 sm:$0xff]  }
  0x9a   : > { %1860 = vmatpush1.bf16.msra.mxu1 %v3286_v26  ;;  %1818 = vmatprep.subr.bf16.mxu0 %v3291_v27  ;;  %v1429_v26 = vrot.slane %v1427_v15, 2  ;;  %v1432_v27 = vrot.slane %v1430_v16, 3  ;;  %v1455_v28 = vrot.slane %v1453_v17, 2  ;;  %v3403_v15 = vld [vmem:[%s4398_s2 + $0x614] ss:$8 sps:$4 sm:$0xff]  }
  0x9b   : > { %1861 = vmatprep.subr.bf16.mxu1 %v3294_v29  ;;  %v1458_v29 = vrot.slane %v1456_v61, 3  ;;  %v3406_v16 = vld [vmem:[%s4398_s2 + $0x714] ss:$8 sps:$4 sm:$0xff]   ;;  %v3401_v17 = vld [vmem:[%s4398_s2 + $0x610] ss:$8 sps:$4 sm:$0xff]  }
  0x9c   : > { %v3404_v61 = vld [vmem:[%s4398_s2 + $0x710] ss:$8 sps:$4 sm:$0xff]  }
  0x9d   : > { %1819 = vmatpush1.bf16.msra.mxu0 %v3289_v32  ;;  %v4161_v32 = vld [vmem:[#allocation2 + $0x8] sm:$0x77] }
  0x9e   : > { %1862 = vmatpush1.bf16.msra.mxu1 %v3292_v33  ;;  %1820 = vmatprep.subr.bf16.mxu0 %v3297_v34  ;;  %v4163_v33 = vld [vmem:[#allocation2 + $0x20] sm:$0x77] }
  0x9f   : > { %1863 = vmatprep.subr.bf16.mxu1 %v3300_v35  ;;  %v3357_v34 = vld [vmem:[%s4398_s2 + $0x484] ss:$8 sps:$4 sm:$0xff]  }
  0xa0   : > { %v3360_v35 = vld [vmem:[%s4398_s2 + $0x584] ss:$8 sps:$4 sm:$0xff]  }
  0xa1   : > { %1821 = vmatpush1.bf16.msra.mxu0 %v3295_v36  ;;  %v1425_v36 = vor.u32 %v1424_v24, %v1421_v23  ;;  %v3418_v23 = vld [vmem:[%s4398_s2 + $0x7f4] ss:$8 sps:$4 sm:$0xff]   ;;  %v3413_v24 = vld [vmem:[%s4398_s2 + $0x6f0] ss:$8 sps:$4 sm:$0xff]  }
  0xa2   : > { %1864 = vmatpush1.bf16.msra.mxu1 %v3298_v37  ;;  %1822 = vmatprep.subr.bf16.mxu0 %v3303_v8  ;;  %v3461_v37 = vld [vmem:[#allocation2 + $0x34] ss:$-24 sps:$4 sm:$0xf8]   ;;  %v2979_v8 = vcombine.high %v4161_v32, %v4161_v32 }
  0xa3   : > { %1865 = vmatprep.subr.bf16.mxu1 %v3306_v9  ;;  %v3464_v9 = vld [vmem:[#allocation2 + $0x4] ss:$16 sps:$4 sm:$0xf8]  }
  0xa5   : > { %1823 = vmatpush1.bf16.msra.mxu0 %v3301_v38  ;;  %v2981_v38 = vcombine.high %v4163_v33, %v4163_v33 }
  0xa6   : > { %1866 = vmatpush1.bf16.msra.mxu1 %v3304_v39  ;;  %1824 = vmatprep.subr.bf16.mxu0 %v3309_v40  ;;  %v3355_v39 = vld [vmem:[%s4398_s2 + $0x480] ss:$8 sps:$4 sm:$0xff]  }
  0xa7   : > { %1867 = vmatprep.subr.bf16.mxu1 %v3312_v41  ;;  %v3358_v40 = vld [vmem:[%s4398_s2 + $0x580] ss:$8 sps:$4 sm:$0xff]   ;;  %v1433_v41 = vor.u32 %v1432_v27, %v1429_v26  ;;  %v3421_v26 = vld [vmem:[%s4398_s2 + $0x6e4] ss:$8 sps:$4 sm:$0xff]  }
  0xa8   : > { %v3424_v27 = vld [vmem:[%s4398_s2 + $0x7e4] ss:$8 sps:$4 sm:$0xff]  }
  0xa9   : > { %1825 = vmatpush1.bf16.msra.mxu0 %v3307_v42  ;;  %v1459_v42 = vor.u32 %v1458_v29, %v1455_v28  ;;  %v3419_v28 = vld [vmem:[%s4398_s2 + $0x6e0] ss:$8 sps:$4 sm:$0xff]  }
  0xaa   : > { %1868 = vmatpush1.bf16.msra.mxu1 %v3310_v43  ;;  %1826 = vmatprep.subr.bf16.mxu0 %v3315_v44  ;;  %v1467_v43 = vor.u32 %v1466_v31, %v1463_v30  ;;  %v3367_v44 = vld [vmem:[%s4398_s2 + $0x674] ss:$8 sps:$4 sm:$0xff]   ;;  %v3422_v29 = vld [vmem:[%s4398_s2 + $0x7e0] ss:$8 sps:$4 sm:$0xff]  }
  0xab   : > { %1869 = vmatprep.subr.bf16.mxu1 %v3318_v45  ;;  %v3370_v45 = vld [vmem:[%s4398_s2 + $0x774] ss:$8 sps:$4 sm:$0xff]  }
  0xac   : > { %v3427_v30 = vld [vmem:[%s4398_s2 + $0x6d4] ss:$8 sps:$4 sm:$0xff]  }
  0xad   : > { %1827 = vmatpush2.bf16.msra.mxu0 %v3313_v46  ;;  %v2009_v46 = vrot.slane %v3461_v37, 3  ;;  %v3430_v31 = vld [vmem:[%s4398_s2 + $0x7d4] ss:$8 sps:$4 sm:$0xff]   ;;  %v3436_v37 = vld [vmem:[%s4398_s2 + $0x7c4] ss:$8 sps:$4 sm:$0xff]  }
  0xae   : > { %1870 = vmatpush2.bf16.msra.mxu1 %v3316_v47  ;;  %1828 = vmatprep.subr.bf16.mxu0 %v3321_v48  ;;  %v2010_v47 = vrot.slane %v2979_v8, 3  ;;  %v2015_v48 = vrot.slane %v3464_v9, 3  ;;  %v3431_v8 = vld [vmem:[%s4398_s2 + $0x6c0] ss:$8 sps:$4 sm:$0xff]  }
  0xaf   : > { %1871 = vmatprep.subr.bf16.mxu1 %v3324_v50  ;;  %v2016_v50 = vrot.slane %v2981_v38, 3  ;;  %v3434_v9 = vld [vmem:[%s4398_s2 + $0x7c0] ss:$8 sps:$4 sm:$0xff]   ;;  %v3439_v38 = vld [vmem:[%s4398_s2 + $0x6b4] ss:$8 sps:$4 sm:$0xff]  }
  0xb1   : > { %1829 = vmatpush2.bf16.msra.mxu0 %v3319_v52  ;;  %v1434_v52 = vsel %vm1417_vm1, %v1425_v36, %v1433_v41  ;;  %v3433_v36 = vld [vmem:[%s4398_s2 + $0x6c4] ss:$8 sps:$4 sm:$0xff]   ;;  %v3440_v41 = vld [vmem:[%s4398_s2 + $0x7b0] ss:$8 sps:$4 sm:$0xff]  }
  0xb2   : > { %1872 = vmatpush2.bf16.msra.mxu1 %v3322_v54  ;;  %1830 = vmatprep.subr.bf16.mxu0 %v3327_v56  ;;  %v1468_v54 = vsel %vm1417_vm1, %v1459_v42, %v1467_v43  ;;  %v3365_v56 = vld [vmem:[%s4398_s2 + $0x670] ss:$8 sps:$4 sm:$0xff]   ;;  %v3445_v42 = vld [vmem:[%s4398_s2 + $0x6a4] ss:$8 sps:$4 sm:$0xff]  }
  0xb3   : > { %1873 = vmatprep.subr.bf16.mxu1 %v3330_v57  ;;  %v3368_v57 = vld [vmem:[%s4398_s2 + $0x770] ss:$8 sps:$4 sm:$0xff]   ;;  %v3448_v43 = vld [vmem:[%s4398_s2 + $0x7a4] ss:$8 sps:$4 sm:$0xff]  }
  0xb5   : > { %1831 = vmatpush2.bf16.msra.mxu0 %v3325_v53  ;;  %v3373_v53 = vld [vmem:[%s4398_s2 + $0x664] ss:$8 sps:$4 sm:$0xff]  }
  0xb6   : > { %1874 = vmatpush2.bf16.msra.mxu1 %v3328_v55  ;;  %1832 = vmatprep.subr.bf16.mxu0 %v3333_v62  ;;  %v3376_v55 = vld [vmem:[%s4398_s2 + $0x764] ss:$8 sps:$4 sm:$0xff]   ;;  %v2011_v62 = vsel %vm2005_vm2, %v2009_v46, %v2010_v47  ;;  %v3451_v46 = vld [vmem:[%s4398_s2 + $0x694] ss:$8 sps:$4 sm:$0xff]  }
  0xb7   : > { %1875 = vmatprep.subr.bf16.mxu1 %v3336_v63  ;;  %v2017_v63 = vsel %vm2005_vm2, %v2015_v48, %v2016_v50  ;;  %v3454_v47 = vld [vmem:[%s4398_s2 + $0x794] ss:$8 sps:$4 sm:$0xff]   ;;  %v3449_v48 = vld [vmem:[%s4398_s2 + $0x690] ss:$8 sps:$4 sm:$0xff]  }
  0xb8   : > { %v3452_v50 = vld [vmem:[%s4398_s2 + $0x790] ss:$8 sps:$4 sm:$0xff]  }
  0xb9   : > { %1833 = vmatpush2.bf16.msra.mxu0 %v3331_v0  ;;  %v3371_v0 = vld [vmem:[%s4398_s2 + $0x660] ss:$8 sps:$4 sm:$0xff]  }
  0xba   : > { %1876 = vmatpush2.bf16.msra.mxu1 %v3334_v1  ;;  %1834 = vmatprep.subr.bf16.mxu0 %v3339_v49  ;;  %v3374_v1 = vld [vmem:[%s4398_s2 + $0x760] ss:$8 sps:$4 sm:$0xff]   ;;  %v3379_v49 = vld [vmem:[%s4398_s2 + $0x654] ss:$8 sps:$4 sm:$0xff]  }
  0xbb   : > { %1877 = vmatprep.subr.bf16.mxu1 %v3342_v2  ;;  %v3382_v2 = vld [vmem:[%s4398_s2 + $0x754] ss:$8 sps:$4 sm:$0xff]  }
  0xbd   : > { %1835 = vmatpush2.bf16.msra.mxu0 %v3337_v5  ;;  %v3385_v5 = vld [vmem:[%s4398_s2 + $0x644] ss:$8 sps:$4 sm:$0xff]  }
  0xbe   : > { %1878 = vmatpush2.bf16.msra.mxu1 %v3340_v6  ;;  %1836 = vmatprep.subr.bf16.mxu0 %v3345_v58  ;;  %v3388_v6 = vld [vmem:[%s4398_s2 + $0x744] ss:$8 sps:$4 sm:$0xff]   ;;  %v3394_v58 = vld [vmem:[%s4398_s2 + $0x734] ss:$8 sps:$4 sm:$0xff]  }
  0xbf   : > { %1879 = vmatprep.subr.bf16.mxu1 %v3348_v12  ;;  %v3392_v12 = vld [vmem:[%s4398_s2 + $0x730] ss:$8 sps:$4 sm:$0xff]  }
  0xc1   : > { %1837 = vmatpush2.bf16.msra.mxu0 %v3343_v59  ;;  %v3397_v59 = vld [vmem:[%s4398_s2 + $0x624] ss:$8 sps:$4 sm:$0xff]  }
  0xc2   : > { %1880 = vmatpush2.bf16.msra.mxu1 %v3346_v60  ;;  %1838 = vmatprep.subr.bf16.mxu0 %v3351_v20  ;;  %v3400_v60 = vld [vmem:[%s4398_s2 + $0x724] ss:$8 sps:$4 sm:$0xff]   ;;  %v3407_v20 = vld [vmem:[%s4398_s2 + $0x600] ss:$8 sps:$4 sm:$0xff]  }
  0xc3   : > { %1881 = vmatprep.subr.bf16.mxu1 %v3354_v21  ;;  %v3410_v21 = vld [vmem:[%s4398_s2 + $0x700] ss:$8 sps:$4 sm:$0xff]  }
  0xc5   : > { %1839 = vmatpush2.bf16.msra.mxu0 %v3349_v22  ;;  %v3415_v22 = vld [vmem:[%s4398_s2 + $0x6f4] ss:$8 sps:$4 sm:$0xff]  }
  0xc6   : > { %1882 = vmatpush2.bf16.msra.mxu1 %v3352_v25  ;;  %1840 = vmatprep.subr.bf16.mxu0 %v3357_v34  ;;  %v3416_v25 = vld [vmem:[%s4398_s2 + $0x7f0] ss:$8 sps:$4 sm:$0xff]  }
  0xc7   : > { %1883 = vmatprep.subr.bf16.mxu1 %v3360_v35  ;;  %v3425_v34 = vld [vmem:[%s4398_s2 + $0x6d0] ss:$8 sps:$4 sm:$0xff]  }
  0xc8   : > { %v3428_v35 = vld [vmem:[%s4398_s2 + $0x7d0] ss:$8 sps:$4 sm:$0xff]  }
  0xc9   : > { %1841 = vmatpush2.bf16.msra.mxu0 %v3355_v39  ;;  %v3442_v39 = vld [vmem:[%s4398_s2 + $0x7b4] ss:$8 sps:$4 sm:$0xff]  }
  0xca   : > { %1884 = vmatpush2.bf16.msra.mxu1 %v3358_v40  ;;  %2342 = vmatprep.subr.bf16.mxu0 %v3367_v44  ;;  %v3437_v40 = vld [vmem:[%s4398_s2 + $0x6b0] ss:$8 sps:$4 sm:$0xff]   ;;  %v3443_v44 = vld [vmem:[%s4398_s2 + $0x6a0] ss:$8 sps:$4 sm:$0xff]  }
  0xcb   : > { %2385 = vmatprep.subr.bf16.mxu1 %v3370_v45  ;;  %v3446_v45 = vld [vmem:[%s4398_s2 + $0x7a0] ss:$8 sps:$4 sm:$0xff]  }
  0xcc   : > { %1843 = vmatmul.mubr.bf16.vlgmr.msra.gmra.mxu0 %v1434_v52  ;;  %v3467_v52 = vld [vmem:[#allocation2 + $0x30] ss:$-24 sps:$4 sm:$0xf8]  }
  0xcd   : > { %1886 = vmatmul.mubr.bf16.vlgmr.msra.gmra.mxu1 %v1468_v54  ;;  %2343 = vmatpush1.bf16.msra.mxu0 %v3365_v56  ;;  %v2978_v54 = vcombine.low %v4161_v32, %v4161_v32  ;;  %v3469_v56 = vld [vmem:[#allocation2] ss:$16 sps:$4 sm:$0xf8]  }
  0xce   : > { %2386 = vmatpush1.bf16.msra.mxu1 %v3368_v57  ;;  %2344 = vmatprep.subr.bf16.mxu0 %v3373_v53  ;;  %v2980_v57 = vcombine.low %v4163_v33, %v4163_v33  ;;  %v3457_v53 = vld [vmem:[%s4398_s2 + $0x684] ss:$8 sps:$4 sm:$0xff]   ;;  %v3458_v32 = vld [vmem:[%s4398_s2 + $0x780] ss:$8 sps:$4 sm:$0xff]   ;;  %v2006_v33 = vrot.slane %v3467_v52, 3 }
  0xcf   : > { %2387 = vmatprep.subr.bf16.mxu1 %v3376_v55  ;;  %2374 = vmatprep.mubr.bf16.mxu0 %v2011_v62  ;;  %v3460_v55 = vld [vmem:[%s4398_s2 + $0x784] ss:$8 sps:$4 sm:$0xff]   ;;  %v3455_v62 = vld [vmem:[%s4398_s2 + $0x680] ss:$8 sps:$4 sm:$0xff]  }
  0xd0   : > { %2417 = vmatprep.mubr.bf16.mxu1 %v2017_v63  ;;  %v2007_v63 = vrot.slane %v2978_v54, 3 }
  0xd1   : > { %2345 = vmatpush1.bf16.msra.mxu0 %v3371_v0  ;;  %v2012_v0 = vrot.slane %v3469_v56, 3 }
  0xd2   : > { %2388 = vmatpush1.bf16.msra.mxu1 %v3374_v1  ;;  %2346 = vmatprep.subr.bf16.mxu0 %v3379_v49  ;;  %v2013_v1 = vrot.slane %v2980_v57, 3  ;;  %v2008_v49 = vsel %vm2005_vm2, %v2006_v33, %v2007_v63 }
  0xd3   : > { %2389 = vmatprep.subr.bf16.mxu1 %v3382_v2 }
  0xd4   : > { %v2014_v2 = vsel %vm2005_vm2, %v2012_v0, %v2013_v1 }
  0xd5   : > { %2347 = vmatpush1.bf16.msra.mxu0 %v3377_v3 }
  0xd6   : > { %2390 = vmatpush1.bf16.msra.mxu1 %v3380_v4  ;;  %2348 = vmatprep.subr.bf16.mxu0 %v3385_v5 }
  0xd7   : > { %2391 = vmatprep.subr.bf16.mxu1 %v3388_v6 }
  0xd9   : > { %2349 = vmatpush1.bf16.msra.mxu0 %v3383_v7 }
  0xda   : > { %2392 = vmatpush1.bf16.msra.mxu1 %v3386_v10  ;;  %2350 = vmatprep.subr.bf16.mxu0 %v3391_v51 }
  0xdb   : > { %2393 = vmatprep.subr.bf16.mxu1 %v3394_v58 }
  0xdd   : > { %2351 = vmatpush1.bf16.msra.mxu0 %v3389_v11 }
  0xde   : > { %2394 = vmatpush1.bf16.msra.mxu1 %v3392_v12  ;;  %2352 = vmatprep.subr.bf16.mxu0 %v3397_v59 }
  0xdf   : > { %2395 = vmatprep.subr.bf16.mxu1 %v3400_v60 }
  0xe1   : > { %2353 = vmatpush1.bf16.msra.mxu0 %v3395_v13 }
  0xe2   : > { %2396 = vmatpush1.bf16.msra.mxu1 %v3398_v14  ;;  %2354 = vmatprep.subr.bf16.mxu0 %v3403_v15 }
  0xe3   : > { %2397 = vmatprep.subr.bf16.mxu1 %v3406_v16 }
  0xe5   : > { %2355 = vmatpush1.bf16.msra.mxu0 %v3401_v17 }
  0xe6   : > { %2398 = vmatpush1.bf16.msra.mxu1 %v3404_v61  ;;  %2356 = vmatprep.subr.bf16.mxu0 %v3409_v18  ;;  %v2446_v18 = vlaneseq }
  0xe7   : > { %2399 = vmatprep.subr.bf16.mxu1 %v3412_v19 }
  0xe9   : > { %2357 = vmatpush1.bf16.msra.mxu0 %v3407_v20 }
  0xea   : > { %2400 = vmatpush1.bf16.msra.mxu1 %v3410_v21  ;;  %2358 = vmatprep.subr.bf16.mxu0 %v3415_v22  ;;  %v2447_v21 = vshrl.u32 %v2446_v18, 7 }
  0xeb   : > { %2401 = vmatprep.subr.bf16.mxu1 %v3418_v23 }
  0xed   : > { %2359 = vmatpush2.bf16.msra.mxu0 %v3413_v24 }
  0xee   : > { %2402 = vmatpush2.bf16.msra.mxu1 %v3416_v25  ;;  %2360 = vmatprep.subr.bf16.mxu0 %v3421_v26  ;;  %v2448_v25 = vsub.s32 0, %v2447_v21 }
  0xef   : > { %2403 = vmatprep.subr.bf16.mxu1 %v3424_v27 }
  0xf1   : > { %2361 = vmatpush2.bf16.msra.mxu0 %v3419_v28 }
  0xf2   : > { %2404 = vmatpush2.bf16.msra.mxu1 %v3422_v29  ;;  %2362 = vmatprep.subr.bf16.mxu0 %v3427_v30  ;;  %v2444_v29 = vld [vmem:[%s4399_s3] sm:$0x3] }
  0xf3   : > { %2405 = vmatprep.subr.bf16.mxu1 %v3430_v31 }
  0xf5   : > { %2363 = vmatpush2.bf16.msra.mxu0 %v3425_v34  ;;  %v2452_v34 = vsub.s32 1, %v2447_v21 }
  0xf6   : > { %2406 = vmatpush2.bf16.msra.mxu1 %v3428_v35  ;;  %2364 = vmatprep.subr.bf16.mxu0 %v3433_v36 }
  0xf7   : > { %2407 = vmatprep.subr.bf16.mxu1 %v3436_v37 }
  0xf9   : > { %2365 = vmatpush2.bf16.msra.mxu0 %v3431_v8 }
  0xfa   : > { %2408 = vmatpush2.bf16.msra.mxu1 %v3434_v9  ;;  %2366 = vmatprep.subr.bf16.mxu0 %v3439_v38 }
  0xfb   : > { %2409 = vmatprep.subr.bf16.mxu1 %v3442_v39 }
  0xfd   : > { %2367 = vmatpush2.bf16.msra.mxu0 %v3437_v40  ;;  %v2449_v40 = vrot.slane %v2444_v29, %v2448_v25 }
  0xfe   : > { %2410 = vmatpush2.bf16.msra.mxu1 %v3440_v41  ;;  %2368 = vmatprep.subr.bf16.mxu0 %v3445_v42 }
  0xff   : > { %2411 = vmatprep.subr.bf16.mxu1 %v3448_v43 }
 0x101   : > { %2369 = vmatpush2.bf16.msra.mxu0 %v3443_v44 }
 0x102   : > { %2412 = vmatpush2.bf16.msra.mxu1 %v3446_v45  ;;  %2370 = vmatprep.subr.bf16.mxu0 %v3451_v46 }
 0x103   : > { %2413 = vmatprep.subr.bf16.mxu1 %v3454_v47 }
 0x105   : > { %2371 = vmatpush2.bf16.msra.mxu0 %v3449_v48  ;;  %v2453_v48 = vrot.slane %v2444_v29, %v2452_v34 }
 0x106   : > { %2414 = vmatpush2.bf16.msra.mxu1 %v3452_v50  ;;  %2372 = vmatprep.subr.bf16.mxu0 %v3457_v53 }
 0x107   : > { %2415 = vmatprep.subr.bf16.mxu1 %v3460_v55 }
 0x109   : > { %2373 = vmatpush2.bf16.msra.mxu0 %v3455_v62 }
 0x10a   : > { %2416 = vmatpush2.bf16.msra.mxu1 %v3458_v32 }
 0x10c   : > { %2375 = vmatmul.mubr.bf16.vlgmr.msra.gmra.mxu0 %v2008_v49  ;;  %v696_v3 = vpop.f32.mrf.mxu0 }
 0x10d   : > { %2418 = vmatmul.mubr.bf16.vlgmr.msra.gmra.mxu1 %v2014_v2  ;;  %v739_v4 = vpop.f32.mrf.mxu1 }
 0x10e   : > { %v698_v5 = vpop.f32.mrf.mxu0  ;;  %v740_v26 = vadd.f32 %v739_v4, %v696_v3 }
 0x10f   : > { %v741_v6 = vpop.f32.mrf.mxu1 }
 0x110   : > { %v700_v7 = vpop.f32.mrf.mxu0  ;;  %v742_v35 = vadd.f32 %v741_v6, %v698_v5 }
 0x111   : > { %v743_v10 = vpop.f32.mrf.mxu1 }
 0x112   : > { %v702_v51 = vpop.f32.mrf.mxu0  ;;  %v744_v9 = vadd.f32 %v743_v10, %v700_v7 }
 0x113   : > { %v745_v58 = vpop.f32.mrf.mxu1 }
 0x114   : > { %v746_v57 = vadd.f32 %v745_v58, %v702_v51 }
 0x14c   : > { %v1256_v11 = vpop.f32.mrf.mxu0 }
 0x14d   : > { %v1299_v12 = vpop.f32.mrf.mxu1 }
 0x14e   : > { %v1258_v59 = vpop.f32.mrf.mxu0  ;;  %v1300_v24 = vadd.f32 %v1299_v12, %v1256_v11 }
 0x14f   : > { %v1301_v60 = vpop.f32.mrf.mxu1 }
 0x150   : > { %v1260_v13 = vpop.f32.mrf.mxu0  ;;  %v1302_v27 = vadd.f32 %v1301_v60, %v1258_v59  ;;  %v1312_v36 = vadd.f32 %v1300_v24, %v740_v26 }
 0x151   : > { %v1303_v14 = vpop.f32.mrf.mxu1 }
 0x152   : > { %v1262_v15 = vpop.f32.mrf.mxu0  ;;  %v1304_v37 = vadd.f32 %v1303_v14, %v1260_v13  ;;  %v1313_v41 = vadd.f32 %v1302_v27, %v742_v35 }
 0x153   : > { %v1305_v16 = vpop.f32.mrf.mxu1 }
 0x154   : > { %v1306_v45 = vadd.f32 %v1305_v16, %v1262_v15  ;;  %v1314_v50 = vadd.f32 %v1304_v37, %v744_v9 }
 0x156   : > { %v1315_v1 = vadd.f32 %v1306_v45, %v746_v57 }
 0x18c   : > { %v1844_v17 = vpop.f32.mrf.mxu0 }
 0x18d   : > { %v1887_v61 = vpop.f32.mrf.mxu1 }
 0x18e   : > { %v1846_v19 = vpop.f32.mrf.mxu0  ;;  %v1888_v28 = vadd.f32 %v1887_v61, %v1844_v17 }
 0x18f   : > { %v1889_v20 = vpop.f32.mrf.mxu1 }
 0x190   : > { %v1848_v22 = vpop.f32.mrf.mxu0  ;;  %v1890_v8 = vadd.f32 %v1889_v20, %v1846_v19  ;;  %v1900_v42 = vadd.f32 %v1888_v28, %v1312_v36 }
 0x191   : > { %v1891_v23 = vpop.f32.mrf.mxu1 }
 0x192   : > { %v1850_v30 = vpop.f32.mrf.mxu0  ;;  %v1892_v43 = vadd.f32 %v1891_v23, %v1848_v22  ;;  %v1901_v52 = vadd.f32 %v1890_v8, %v1313_v41 }
 0x193   : > { %v1893_v31 = vpop.f32.mrf.mxu1 }
 0x194   : > { %v1894_v53 = vadd.f32 %v1893_v31, %v1850_v30  ;;  %v1902_v32 = vadd.f32 %v1892_v43, %v1314_v50 }
 0x196   : > { %v1903_v6 = vadd.f32 %v1894_v53, %v1315_v1 }
 0x1cc   : > { %v2376_v38 = vpop.f32.mrf.mxu0 }
 0x1cd   : > { %v2419_v39 = vpop.f32.mrf.mxu1 }
 0x1ce   : > { %v2420_v44 = vadd.f32 %v2419_v39, %v2376_v38  ;;  %v2378_v46 = vpop.f32.mrf.mxu0 }
 0x1cf   : > { %v2421_v47 = vpop.f32.mrf.mxu1 }
 0x1d0   : > { %v2432_v54 = vadd.f32 %v2420_v44, %v1900_v42  ;;  %v2422_v56 = vadd.f32 %v2421_v47, %v2378_v46  ;;  %v2380_v55 = vpop.f32.mrf.mxu0 }
 0x1d1   : > { %v2423_v62 = vpop.f32.mrf.mxu1 }
 0x1d2   : > { %v2456_v33 = vadd.f32 %v2449_v40, %v2432_v54  ;;  %v2433_v63 = vadd.f32 %v2422_v56, %v1901_v52  ;;  %v2424_v0 = vadd.f32 %v2423_v62, %v2380_v55  ;;  %v2382_v49 = vpop.f32.mrf.mxu0 }
 0x1d3   : > { %v2425_v2 = vpop.f32.mrf.mxu1 }
 0x1d4   : > { %v2464_v3 = vmul.f32 0.01, %v2456_v33  ;;  %v2457_v4 = vadd.f32 %v2453_v48, %v2433_v63  ;;  %v2434_v5 = vadd.f32 %v2424_v0, %v1902_v32  ;;  %vm2460_vm3 = vcmp.ge.f32.partialorder %v2456_v33, 0.0 }
 0x1d5   : > { %v2426_v7 = vadd.f32 %v2425_v2, %v2382_v49 }
 0x1d6   : > { %vm2461_vm4 = vcmp.ge.f32.partialorder %v2457_v4, 0.0  ;;  %v2465_v10 = vmul.f32 0.01, %v2457_v4  ;;  %v2458_v51 = vadd.f32 %v2449_v40, %v2434_v5  ;;  %v2468_v11 = vsel %vm2460_vm3, %v2456_v33, %v2464_v3 }
 0x1d7   : > { %v2435_v58 = vadd.f32 %v2426_v7, %v1903_v6 }
 0x1d8   : > { %v2469_v12 = vsel %vm2461_vm4, %v2457_v4, %v2465_v10  ;;  %v2466_v60 = vmul.f32 0.01, %v2458_v51  ;;  %vm2462_vm5 = vcmp.ge.f32.partialorder %v2458_v51, 0.0 }
 0x1d9   : > { %v3055_v59 = vpack.c.bf16 %v2469_v12, %v2468_v11  ;;  %v2459_v13 = vadd.f32 %v2453_v48, %v2435_v58 }
 0x1da   : > { %v2470_v15 = vsel %vm2462_vm5, %v2458_v51, %v2466_v60 }
 0x1db   : > { %2484 = vst [vmem:[%s236_s14] sm:$0xff] %v3055_v59  ;;  %vm2463_vm6 = vcmp.ge.f32.partialorder %v2459_v13, 0.0  ;;  %v2467_v14 = vmul.f32 0.01, %v2459_v13 }
 0x1dd   : > { %v2471_v16 = vsel %vm2463_vm6, %v2459_v13, %v2467_v14 }
 0x1de   : > { %v3056_v17 = vpack.c.bf16 %v2471_v16, %v2470_v15 }
 0x1e0   : > { %2485 = vst [vmem:[%s236_s14 + $0x8] sm:$0xff] %v3056_v17 }
 0x1e1 PF: > { %s14_s15 = sadd.s32 1, %s3479_s15  }
 0x1e2   : > { %p11_p6 = scmp.ge.s32.totalorder %s14_s15, 6  }
 0x1e4   :  { %13 = sbr.rel (!%p11_p6) target bundleno = 1 (0x1), region = 72 }

// kernel: discriminator_forward.7
= control target key start
LH: loop header
LB: loop body
LE: loop exit
PB: predicated region body
PF: predicated region fallthrough
CT: control target
= control target key end

     0   :  { %s3440_s15 = smov 0   ;;  %s4073_s0 = inlined_call_operand.vmem [shape: bf16[128,256], index: 0, kind: input, shape index: {}, may-alias: {0,1}]   ;;  %s4074_s1 = inlined_call_operand.vmem [shape: bf16[128,256], index: 1, kind: input, shape index: {}, may-alias: {0,1}]   ;;  %s4075_s2 = inlined_call_operand.vmem [shape: bf16[9,256,128], index: 2, kind: input, shape index: {}]   ;;  %s4076_s3 = inlined_call_operand.vmem [shape: f32[1,128], index: 3, kind: input, shape index: {}]   ;;  %s4077_s4 = inlined_call_operand.vmem [shape: f32[96,128], index: 4, kind: output, shape index: {}]  }
   0x1 LB: > { %s2489_s16 = sadd.s32 4294967295, %s3413_s15   ;;  %p2493_p0 = scmp.ge.s32.totalorder %s3413_s15, 1  ;;  %s3413_s15 = sphi %s3440_s15, %s14_s15  }
   0x2   : > { %p180_p1 = scmp.lt.s32.totalorder %s3413_s15, 4 }
   0x4   : > { %p181_p2 = pnand %p2493_p0, %p180_p1 }
   0x6   : > { %184 = sbr.rel (%p181_p2) target bundleno = 381 (0x17d), region = 36 }
   0xb   : > { %v3235_v0 = vld [vmem:[%s4075_s2 + $0x78] sm:$0xff]   ;;  %v3239_v4 = vld [vmem:[%s4075_s2 + $0x70] sm:$0xff]   ;;  %v3243_v8 = vld [vmem:[%s4075_s2 + $0x68] sm:$0xff]   ;;  %s3498_s25 = sshll.u32 %s2489_s16, 2  ;;  %vm517_vm0 = vsmask.f32 7424 }
   0xc   : > { %v3236_v1 = vld [vmem:[%s4075_s2 + $0xf8] sm:$0xff]   ;;  %2959 = vmatprep.subr.bf16.mxu0 %v3235_v0  ;;  %v3240_v5 = vld [vmem:[%s4075_s2 + $0xf0] sm:$0xff]   ;;  %v3244_v9 = vld [vmem:[%s4075_s2 + $0xe8] sm:$0xff]   ;;  %p215_p3 = scmp.lt.s32.totalorder %s3498_s25, 15  ;;  %s2957_s14 = sadd.s32 4, %s3498_s25  ;;  %vm778_vm1 = vcmask 1046528  }
   0xd   : > { %v3237_v2 = vld [vmem:[%s4075_s2 + $0x38] sm:$0xff]   ;;  %2987 = vmatprep.subr.bf16.mxu1 %v3236_v1  ;;  %v3241_v6 = vld [vmem:[%s4075_s2 + $0x30] sm:$0xff]   ;;  %v3245_v10 = vld [vmem:[%s4075_s2 + $0x28] sm:$0xff]   ;;  %p223_p4 = scmp.lt.s32.totalorder %s2957_s14, 15  ;;  %vm1009_vm2 = vcmask 1044480   ;;  %vm1727_vm4 = vcmask 1045504  }
   0xe   : > { %v3238_v3 = vld [vmem:[%s4075_s2 + $0xb8] sm:$0xff]   ;;  %2960 = vmatpush3.bf16.msra.mxu0 %v3237_v2  ;;  %v3242_v7 = vld [vmem:[%s4075_s2 + $0xb0] sm:$0xff]   ;;  %v3246_v11 = vld [vmem:[%s4075_s2 + $0xa8] sm:$0xff]   ;;  %s216_s13 = scalar_select %p215_p3, %s3498_s25, 15  ;;  %vm1240_vm3 = vsmask.f32 4352 }
   0xf   : > { %2988 = vmatpush3.bf16.msra.mxu1 %v3238_v3  ;;  %2961 = vmatprep.subr.bf16.mxu0 %v3239_v4  ;;  %v3247_v12 = vld [vmem:[%s4075_s2 + $0x60] sm:$0xff]   ;;  %v3251_v16 = vld [vmem:[%s4075_s2 + $0x58] sm:$0xff]   ;;  %v3255_v20 = vld [vmem:[%s4075_s2 + $0x50] sm:$0xff]   ;;  %s4087_s14 = smov (!%p223_p4, %s2957_s14), 15  ;;  %vm1958_vm5 = vsmask.f32 5376 }
  0x10   : > { %2989 = vmatprep.subr.bf16.mxu1 %v3240_v5  ;;  %v3248_v13 = vld [vmem:[%s4075_s2 + $0xe0] sm:$0xff]   ;;  %v3252_v17 = vld [vmem:[%s4075_s2 + $0xd8] sm:$0xff]   ;;  %v3256_v21 = vld [vmem:[%s4075_s2 + $0xd0] sm:$0xff]   ;;  %s2955_s24 = sshll.u32 %s216_s13, 3  ;;  %s2958_s20 = sshll.u32 %s4087_s14, 3 }
  0x11   : > { %v3249_v14 = vld [vmem:[%s4075_s2 + $0x20] sm:$0xff]   ;;  %v3253_v18 = vld [vmem:[%s4075_s2 + $0x18] sm:$0xff]   ;;  %v3257_v22 = vld [vmem:[%s4075_s2 + $0x10] sm:$0xff]   ;;  %s219_s7 = scalar_lea.vmem %s4073_s0, %s2955_s24  ;;  %s3647_s30 = scalar_lea.vmem %s4074_s1, %s2958_s20 }
  0x12   : > { %2962 = vmatpush3.bf16.msra.mxu0 %v3241_v6  ;;  %v3250_v15 = vld [vmem:[%s4075_s2 + $0xa0] sm:$0xff]   ;;  %v3254_v19 = vld [vmem:[%s4075_s2 + $0x98] sm:$0xff]   ;;  %v3258_v23 = vld [vmem:[%s4075_s2 + $0x90] sm:$0xff]   ;;  %p231_p5 = scmp.lt.s32.totalorder %s3498_s25, 11 }
  0x13   : > { %2990 = vmatpush3.bf16.msra.mxu1 %v3242_v7  ;;  %2963 = vmatprep.subr.bf16.mxu0 %v3243_v8  ;;  %v3259_v24 = vld [vmem:[%s4075_s2 + $0x48] sm:$0xff]   ;;  %v3263_v28 = vld [vmem:[%s4075_s2 + $0x40] sm:$0xff]   ;;  %v3555_v34 = vld [vmem:[%s219_s7 + $0x10] sm:$0xff] }
  0x14   : > { %2991 = vmatprep.subr.bf16.mxu1 %v3244_v9  ;;  %v3260_v25 = vld [vmem:[%s4075_s2 + $0xc8] sm:$0xff]   ;;  %v3264_v29 = vld [vmem:[%s4075_s2 + $0xc0] sm:$0xff]   ;;  %v3560_v37 = vld [vmem:[%s219_s7 + $0x18] sm:$0xff]  ;;  %243 = vst [vmem:[#allocation2 + $0x18] sm:$0xff] %v3555_v34  ;;  %s4089_s25 = smov (!%p231_p5, %s3498_s25), 11 }
  0x15   : > { %v3261_v26 = vld [vmem:[%s4075_s2 + $0x8] sm:$0xff]   ;;  %v3265_v30 = vld [vmem:[%s4075_s2] sm:$0xff]   ;;  %244 = vst [vmem:[#allocation2 + $0x10] sm:$0xff] %v3560_v37  ;;  %v3566_v38 = vcombine.high %v3555_v34, %v3560_v37  ;;  %v3570_v39 = vcombine.low %v3555_v34, %v3560_v37  ;;  %v3271_v40 = vld [vmem:[%s4075_s2 + $0x178] sm:$0xff]   ;;  %s2501_s8 = sshll.u32 %s4089_s25, 3 }
  0x16   : > { %2964 = vmatpush3.bf16.msra.mxu0 %v3245_v10  ;;  %v3262_v27 = vld [vmem:[%s4075_s2 + $0x88] sm:$0xff]   ;;  %v3266_v31 = vld [vmem:[%s4075_s2 + $0x80] sm:$0xff]   ;;  %v3272_v45 = vld [vmem:[%s4075_s2 + $0x1f8] sm:$0xff]   ;;  %s234_s12 = scalar_lea.vmem %s4077_s4, %s2501_s8 }
  0x17   : > { %2992 = vmatpush3.bf16.msra.mxu1 %v3246_v11  ;;  %2965 = vmatprep.subr.bf16.mxu0 %v3247_v12  ;;  %v237_v32 = vld [vmem:[%s219_s7] sm:$0xff]  ;;  %v3553_v33 = vld [vmem:[%s219_s7 + $0x8] sm:$0xff]  ;;  %v3273_v46 = vld [vmem:[%s4075_s2 + $0x138] sm:$0xff]   ;;  %v538_v47 = vshll.u32 %v3566_v38, 16  ;;  %v526_v48 = vshll.u32 %v3570_v39, 16 }
  0x18   : > { %2993 = vmatprep.subr.bf16.mxu1 %v3248_v13  ;;  %241 = vst [vmem:[#allocation2 + $0x30] sm:$0xff] %v237_v32  ;;  %242 = vst [vmem:[#allocation2] sm:$0xff] %v3553_v33  ;;  %v2502_v35 = vcombine.low %v237_v32, %v3553_v33  ;;  %v2503_v36 = vcombine.high %v237_v32, %v3553_v33  ;;  %v3274_v53 = vld [vmem:[%s4075_s2 + $0x1b8] sm:$0xff]   ;;  %v3275_v54 = vld [vmem:[%s4075_s2 + $0x170] sm:$0xff]  }
  0x19   : > { %v3586_v51 = vrot.slane %v538_v47, 1  ;;  %v3590_v52 = vrot.slane %v526_v48, 1  ;;  %v3276_v57 = vld [vmem:[%s4075_s2 + $0x1f0] sm:$0xff]   ;;  %v3279_v62 = vld [vmem:[%s4075_s2 + $0x168] sm:$0xff]   ;;  %v3283_v2 = vld [vmem:[%s4075_s2 + $0x160] sm:$0xff]  }
  0x1a   : > { %2966 = vmatpush3.bf16.msra.mxu0 %v3249_v14  ;;  %437 = vmatprep.mubr.bf16.mxu0 %v2503_v36  ;;  %v531_v41 = vshrl.u32 %v2503_v36, 16  ;;  %v533_v42 = vshll.u32 %v2503_v36, 16  ;;  %v519_v43 = vshrl.u32 %v2502_v35, 16  ;;  %v521_v44 = vshll.u32 %v2502_v35, 16  ;;  %v3277_v60 = vld [vmem:[%s4075_s2 + $0x130] sm:$0xff]   ;;  %v3280_v63 = vld [vmem:[%s4075_s2 + $0x1e8] sm:$0xff]  }
  0x1b   : > { %2994 = vmatpush3.bf16.msra.mxu1 %v3250_v15  ;;  %2967 = vmatprep.subr.bf16.mxu0 %v3251_v16  ;;  %v3278_v61 = vld [vmem:[%s4075_s2 + $0x1b0] sm:$0xff]   ;;  %v3281_v0 = vld [vmem:[%s4075_s2 + $0x128] sm:$0xff]   ;;  %v3284_v3 = vld [vmem:[%s4075_s2 + $0x1e0] sm:$0xff]   ;;  %v550_v15 = vshrl.u32 %v3566_v38, 16 }
  0x1c   : > { %2995 = vmatprep.subr.bf16.mxu1 %v3252_v17  ;;  %v535_v49 = vrot.slane %v533_v42, 1  ;;  %v523_v50 = vrot.slane %v521_v44, 1  ;;  %v3282_v1 = vld [vmem:[%s4075_s2 + $0x1a8] sm:$0xff]   ;;  %v3285_v4 = vld [vmem:[%s4075_s2 + $0x120] sm:$0xff]   ;;  %v3287_v6 = vld [vmem:[%s4075_s2 + $0x158] sm:$0xff]   ;;  %v542_v17 = vshrl.u32 %v3570_v39, 16 }
  0x1d   : > { %v3286_v5 = vld [vmem:[%s4075_s2 + $0x1a0] sm:$0xff]   ;;  %v3288_v7 = vld [vmem:[%s4075_s2 + $0x1d8] sm:$0xff]   ;;  %v3293_v11 = vld [vmem:[%s4075_s2 + $0x150] sm:$0xff]  }
  0x1e   : > { %2968 = vmatpush3.bf16.msra.mxu0 %v3253_v18  ;;  %v536_v55 = vor.u32 %v535_v49, %v531_v41  ;;  %v524_v56 = vor.u32 %v523_v50, %v519_v43  ;;  %v3289_v8 = vld [vmem:[%s4075_s2 + $0x118] sm:$0xff]   ;;  %v3659_v10 = vld [vmem:[%s3647_s30] sm:$0xff]  ;;  %v3294_v12 = vld [vmem:[%s4075_s2 + $0x1d0] sm:$0xff]  }
  0x1f   : > { %2996 = vmatpush3.bf16.msra.mxu1 %v3254_v19  ;;  %2969 = vmatprep.subr.bf16.mxu0 %v3255_v20  ;;  %v3290_v9 = vld [vmem:[%s4075_s2 + $0x198] sm:$0xff]   ;;  %249 = vst [vmem:[#allocation2 + $0x8] sm:$0xff] %v3659_v10  ;;  %v3295_v13 = vld [vmem:[%s4075_s2 + $0x110] sm:$0xff]   ;;  %v3297_v16 = vld [vmem:[%s4075_s2 + $0x148] sm:$0xff]  }
  0x20   : > { %2997 = vmatprep.subr.bf16.mxu1 %v3256_v21  ;;  %v541_v58 = vsel %vm517_vm0, %v536_v55, %v3586_v51  ;;  %v529_v59 = vsel %vm517_vm0, %v524_v56, %v3590_v52  ;;  %v3296_v14 = vld [vmem:[%s4075_s2 + $0x190] sm:$0xff]   ;;  %v3298_v18 = vld [vmem:[%s4075_s2 + $0x1c8] sm:$0xff]   ;;  %v3303_v32 = vld [vmem:[%s4075_s2 + $0x100] sm:$0xff]   ;;  %v1011_v56 = vrot.slane %v3570_v39, 3 }
  0x21   : > { %690 = vmatprep.mubr.bf16.mxu1 %v541_v58  ;;  %v3299_v20 = vld [vmem:[%s4075_s2 + $0x108] sm:$0xff]   ;;  %v3305_v41 = vld [vmem:[%s4075_s2 + $0x278] sm:$0xff]   ;;  %v719_v42 = vld [vmem:[#allocation2 + $0x30] sm:$0xee] }
  0x22   : > { %2970 = vmatpush3.bf16.msra.mxu0 %v3257_v22  ;;  %v950_v43 = vld [vmem:[#allocation2 + $0x30] sm:$0x88]  ;;  %v2609_v49 = vcombine.high %v719_v42, %v3553_v33 }
  0x23   : > { %2998 = vmatpush3.bf16.msra.mxu1 %v3258_v23  ;;  %2971 = vmatprep.subr.bf16.mxu0 %v3259_v24  ;;  %v3300_v23 = vld [vmem:[%s4075_s2 + $0x188] sm:$0xff]   ;;  %v780_v24 = vrot.slane %v3570_v39, 1  ;;  %v2662_v50 = vcombine.low %v950_v43, %v3553_v33 }
  0x24   : > { %2999 = vmatprep.subr.bf16.mxu1 %v3260_v25  ;;  %v3301_v25 = vld [vmem:[%s4075_s2 + $0x140] sm:$0xff]   ;;  %v782_v55 = vrot.slane %v2609_v49, 1  ;;  %v3335_v49 = vld [vmem:[%s4075_s2 + $0x208] sm:$0xff]  }
  0x25   : > { %v1010_v58 = vrot.slane %v2662_v50, 3  ;;  %v1272_v50 = vrot.slane %v538_v47, 4  ;;  %v2720_v47 = vcombine.low %v3659_v10, %v3659_v10 }
  0x26   : > { %2972 = vmatpush3.bf16.msra.mxu0 %v3261_v26  ;;  %v462_v19 = vld [vmem:[#allocation2 + $0x8] sm:$0x11]  ;;  %v783_v26 = vrot.slane %v3566_v38, 1 }
  0x27   : > { %3000 = vmatpush3.bf16.msra.mxu1 %v3262_v27  ;;  %2973 = vmatprep.subr.bf16.mxu0 %v3263_v28  ;;  %v2559_v21 = vcombine.high %v462_v19, %v462_v19  ;;  %v2558_v22 = vcombine.low %v462_v19, %v462_v19  ;;  %v552_v27 = vor.u32 %v550_v15, %v3586_v51 }
  0x28   : > { %3001 = vmatprep.subr.bf16.mxu1 %v3264_v29  ;;  %v544_v29 = vor.u32 %v542_v17, %v3590_v52  ;;  %v2663_v51 = vcombine.high %v950_v43, %v3553_v33  ;;  %v1014_v52 = vrot.slane %v3566_v38, 3  ;;  %v2721_v43 = vcombine.high %v3659_v10, %v3659_v10 }
  0x29   : > { %v554_v28 = vshll.u32 %v2559_v21, 16 }
  0x2a   : > { %2974 = vmatpush3.bf16.msra.mxu0 %v3265_v30  ;;  %v546_v30 = vshll.u32 %v2558_v22, 16  ;;  %v3319_v22 = vld [vmem:[%s4075_s2 + $0x2a8] sm:$0xff]  }
  0x2b   : > { %3002 = vmatpush3.bf16.msra.mxu1 %v3266_v31  ;;  %3015 = vmatprep.subr.bf16.mxu0 %v3271_v40  ;;  %v3302_v31 = vld [vmem:[%s4075_s2 + $0x1c0] sm:$0xff]  }
  0x2c   : > { %3043 = vmatprep.subr.bf16.mxu1 %v3272_v45  ;;  %v548_v36 = vrot.slane %v546_v30, 1  ;;  %v3304_v40 = vld [vmem:[%s4075_s2 + $0x180] sm:$0xff]   ;;  %v2771_v30 = vcombine.high %v3553_v33, %v3555_v34 }
  0x2d   : > { %438 = vmatmul.mubr.bf16.vlgmr.msra.gmra.mxu0 %v2502_v35  ;;  %v556_v35 = vrot.slane %v554_v28, 1  ;;  %v3322_v28 = vld [vmem:[%s4075_s2 + $0x2e0] sm:$0xff]  }
  0x2e   : > { %3016 = vmatpush3.bf16.msra.mxu0 %v3273_v46  ;;  %445 = vmatprep.mubr.bf16.mxu0 %v3566_v38  ;;  %v549_v45 = vsel %vm517_vm0, %v544_v29, %v548_v36  ;;  %v2608_v46 = vcombine.low %v719_v42, %v3553_v33  ;;  %v3325_v29 = vld [vmem:[%s4075_s2 + $0x258] sm:$0xff]   ;;  %v3329_v36 = vld [vmem:[%s4075_s2 + $0x250] sm:$0xff]   ;;  %v1252_v38 = vrot.slane %v542_v17, 3 }
  0x2f   : > { %3017 = vmatprep.subr.bf16.mxu0 %v3275_v54  ;;  %691 = vmatmul.mubr.bf16.vlgmr.msra.gmra.mxu1 %v529_v59  ;;  %v557_v44 = vsel %vm517_vm0, %v552_v27, %v556_v35  ;;  %v1013_v59 = vrot.slane %v2663_v51, 3  ;;  %v3323_v27 = vld [vmem:[%s4075_s2 + $0x220] sm:$0xff]   ;;  %v3326_v35 = vld [vmem:[%s4075_s2 + $0x2d8] sm:$0xff]   ;;  %v3330_v42 = vld [vmem:[%s4075_s2 + $0x2d0] sm:$0xff]  }
  0x30   : > { %3044 = vmatpush3.bf16.msra.mxu1 %v3274_v53  ;;  %698 = vmatprep.mubr.bf16.mxu1 %v557_v44  ;;  %v3306_v53 = vld [vmem:[%s4075_s2 + $0x2f8] sm:$0xff]   ;;  %v779_v54 = vrot.slane %v2608_v46, 1  ;;  %v3333_v44 = vld [vmem:[%s4075_s2 + $0x248] sm:$0xff]   ;;  %v1269_v46 = vrot.slane %v550_v15, 3  ;;  %v3337_v15 = vld [vmem:[%s4075_s2 + $0x240] sm:$0xff]  }
  0x31   : > { %3045 = vmatprep.subr.bf16.mxu1 %v3276_v57  ;;  %v3307_v57 = vld [vmem:[%s4075_s2 + $0x238] sm:$0xff]   ;;  %v3334_v51 = vld [vmem:[%s4075_s2 + $0x2c8] sm:$0xff]  }
  0x32   : > { %3018 = vmatpush3.bf16.msra.mxu0 %v3277_v60  ;;  %v784_v60 = vsel %vm778_vm1, %v782_v55, %v783_v26  ;;  %v3339_v55 = vld [vmem:[%s4075_s2 + $0x200] sm:$0xff]  }
  0x33   : > { %3019 = vmatprep.subr.bf16.mxu0 %v3279_v62  ;;  %v3309_v62 = vld [vmem:[%s4075_s2 + $0x270] sm:$0xff]  }
  0x34   : > { %3046 = vmatpush3.bf16.msra.mxu1 %v3278_v61  ;;  %v781_v61 = vsel %vm778_vm1, %v779_v54, %v780_v24  ;;  %v3336_v54 = vld [vmem:[%s4075_s2 + $0x288] sm:$0xff]  }
  0x35   : > { %446 = vmatmul.mubr.bf16.gmra.mxu0 %v3570_v39  ;;  %3047 = vmatprep.subr.bf16.mxu1 %v3280_v63  ;;  %v1015_v63 = vsel %vm1009_vm2, %v1013_v59, %v1014_v52  ;;  %v3340_v39 = vld [vmem:[%s4075_s2 + $0x280] sm:$0xff]  }
  0x36   : > { %3020 = vmatpush3.bf16.msra.mxu0 %v3281_v0  ;;  %921 = vmatprep.mubr.bf16.mxu0 %v784_v60  ;;  %v3308_v0 = vld [vmem:[%s4075_s2 + $0x2b8] sm:$0xff]  }
  0x37   : > { %3021 = vmatprep.subr.bf16.mxu0 %v3283_v2  ;;  %699 = vmatmul.mubr.bf16.gmra.mxu1 %v549_v45  ;;  %v1012_v2 = vsel %vm1009_vm2, %v1010_v58, %v1011_v56  ;;  %v3332_v45 = vld [vmem:[%s4075_s2 + $0x290] sm:$0xff]  }
  0x38   : > { %3048 = vmatpush3.bf16.msra.mxu1 %v3282_v1  ;;  %1152 = vmatprep.mubr.bf16.mxu1 %v1015_v63  ;;  %v3310_v1 = vld [vmem:[%s4075_s2 + $0x2f0] sm:$0xff]  }
  0x39   : > { %3049 = vmatprep.subr.bf16.mxu1 %v3284_v3  ;;  %v3311_v3 = vld [vmem:[%s4075_s2 + $0x230] sm:$0xff]  }
  0x3a   : > { %3022 = vmatpush3.bf16.msra.mxu0 %v3285_v4  ;;  %v723_v4 = vld [vmem:[#allocation2 + $0x8] sm:$0x11]  ;;  %v1181_v58 = vld [vmem:[#allocation2 + $0x30] sm:$0x88] }
  0x3b   : > { %3023 = vmatprep.subr.bf16.mxu0 %v3287_v6  ;;  %v2612_v6 = vcombine.low %v723_v4, %v723_v4  ;;  %v2716_v59 = vcombine.low %v1181_v58, %v3553_v33  ;;  %v2717_v60 = vcombine.high %v1181_v58, %v3553_v33  ;;  %v1668_v58 = vld [vmem:[#allocation2] sm:$0xcc] }
  0x3c   : > { %3050 = vmatpush3.bf16.msra.mxu1 %v3286_v5  ;;  %v2613_v5 = vcombine.high %v723_v4, %v723_v4 }
  0x3d   : > { %3051 = vmatprep.subr.bf16.mxu1 %v3288_v7  ;;  %v3315_v7 = vld [vmem:[%s4075_s2 + $0x268] sm:$0xff]   ;;  %v1259_v63 = vshrl.u32 %v2717_v60, 16 }
  0x3e   : > { %3024 = vmatpush3.bf16.msra.mxu0 %v3289_v8  ;;  %v3312_v8 = vld [vmem:[%s4075_s2 + $0x2b0] sm:$0xff]  }
  0x3f   : > { %3025 = vmatprep.subr.bf16.mxu0 %v3293_v11  ;;  %v785_v11 = vrot.slane %v2612_v6, 1  ;;  %v1279_v6 = vshll.u32 %v2720_v47, 16 }
  0x40   : > { %3052 = vmatpush3.bf16.msra.mxu1 %v3290_v9  ;;  %v787_v9 = vrot.slane %v2613_v5, 1  ;;  %v3344_v5 = vld [vmem:[%s4075_s2 + $0x3f8] sm:$0xff]  }
  0x41   : > { %3053 = vmatprep.subr.bf16.mxu1 %v3294_v12  ;;  %v954_v12 = vld [vmem:[#allocation2 + $0x8] sm:$0x77]  ;;  %v786_v19 = vsel %vm778_vm1, %v780_v24, %v785_v11 }
  0x42   : > { %3026 = vmatpush3.bf16.msra.mxu0 %v3295_v13  ;;  %v2667_v13 = vcombine.high %v954_v12, %v954_v12 }
  0x43   : > { %3027 = vmatprep.subr.bf16.mxu0 %v3297_v16  ;;  %v2666_v16 = vcombine.low %v954_v12, %v954_v12  ;;  %v2770_v12 = vcombine.low %v3553_v33, %v3555_v34 }
  0x44   : > { %3054 = vmatpush3.bf16.msra.mxu1 %v3296_v14  ;;  %v3318_v14 = vld [vmem:[%s4075_s2 + $0x228] sm:$0xff]   ;;  %v1018_v21 = vrot.slane %v2667_v13, 3  ;;  %v3345_v13 = vld [vmem:[%s4075_s2 + $0x338] sm:$0xff]  }
  0x45   : > { %3055 = vmatprep.subr.bf16.mxu1 %v3298_v18  ;;  %v788_v18 = vsel %vm778_vm1, %v783_v26, %v787_v9 }
  0x46   : > { %3028 = vmatpush3.bf16.msra.mxu0 %v3299_v20  ;;  %v3316_v20 = vld [vmem:[%s4075_s2 + $0x2e8] sm:$0xff]   ;;  %v1019_v24 = vsel %vm1009_vm2, %v1014_v52, %v1018_v21  ;;  %v1285_v52 = vshrl.u32 %v2721_v43, 16  ;;  %v3348_v21 = vld [vmem:[%s4075_s2 + $0x3f0] sm:$0xff]  }
  0x47   : > { %3029 = vmatprep.subr.bf16.mxu0 %v3301_v25  ;;  %v3321_v25 = vld [vmem:[%s4075_s2 + $0x260] sm:$0xff]  }
  0x48   : > { %3056 = vmatpush3.bf16.msra.mxu1 %v3300_v23  ;;  %v1016_v23 = vrot.slane %v2666_v16, 3  ;;  %v1287_v17 = vrot.slane %v1285_v52, 3  ;;  %v3368_v52 = vld [vmem:[%s4075_s2 + $0x390] sm:$0xff]  }
  0x49   : > { %3057 = vmatprep.subr.bf16.mxu1 %v3302_v31  ;;  %v3324_v31 = vld [vmem:[%s4075_s2 + $0x2a0] sm:$0xff]  }
  0x4a   : > { %3030 = vmatpush3.bf16.msra.mxu0 %v3303_v32  ;;  %v1017_v26 = vsel %vm1009_vm2, %v1011_v56, %v1016_v23  ;;  %v3327_v32 = vld [vmem:[%s4075_s2 + $0x218] sm:$0xff]   ;;  %v1255_v56 = vrot.slane %v526_v48, 4  ;;  %v1276_v48 = vshrl.u32 %v2720_v47, 16  ;;  %v3347_v23 = vld [vmem:[%s4075_s2 + $0x370] sm:$0xff]   ;;  %v3374_v47 = vld [vmem:[%s4075_s2 + $0x3c0] sm:$0xff]  }
  0x4b   : > { %3071 = vmatprep.subr.bf16.mxu0 %v3305_v41  ;;  %v3331_v41 = vld [vmem:[%s4075_s2 + $0x210] sm:$0xff]  }
  0x4c   : > { %3058 = vmatpush3.bf16.msra.mxu1 %v3304_v40  ;;  %v3328_v40 = vld [vmem:[%s4075_s2 + $0x298] sm:$0xff]   ;;  %v1256_v4 = vor.u32 %v1255_v56, %v1252_v38  ;;  %v3372_v38 = vld [vmem:[%s4075_s2 + $0x388] sm:$0xff]   ;;  %v3375_v56 = vld [vmem:[%s4075_s2 + $0x300] sm:$0xff]  }
  0x4d   : > { %3099 = vmatprep.subr.bf16.mxu1 %v3306_v53  ;;  %922 = vmatmul.mubr.bf16.vlgmr.msra.gmra.mxu0 %v781_v61  ;;  %v1288_v53 = vshll.u32 %v2721_v43, 16  ;;  %v3343_v61 = vld [vmem:[%s4075_s2 + $0x378] sm:$0xff]  }
  0x4e   : > { %3072 = vmatpush3.bf16.msra.mxu0 %v3307_v57  ;;  %929 = vmatprep.mubr.bf16.mxu0 %v788_v18  ;;  %v3338_v57 = vld [vmem:[%s4075_s2 + $0x2c0] sm:$0xff]   ;;  %v3362_v43 = vld [vmem:[%s4075_s2 + $0x3d8] sm:$0xff]  }
  0x4f   : > { %3073 = vmatprep.subr.bf16.mxu0 %v3309_v62  ;;  %1153 = vmatmul.mubr.bf16.vlgmr.msra.gmra.mxu1 %v1012_v2  ;;  %v1290_v62 = vrot.slane %v1288_v53, 4  ;;  %v1245_v2 = vshll.u32 %v2716_v59, 16  ;;  %v3369_v53 = vld [vmem:[%s4075_s2 + $0x348] sm:$0xff]  }
  0x50   : > { %3100 = vmatpush3.bf16.msra.mxu1 %v3308_v0  ;;  %1160 = vmatprep.mubr.bf16.mxu1 %v1019_v24  ;;  %v1262_v0 = vshll.u32 %v2717_v60, 16 }
  0x51   : > { %3101 = vmatprep.subr.bf16.mxu1 %v3310_v1  ;;  %v1242_v1 = vshrl.u32 %v2716_v59, 16  ;;  %v1247_v11 = vrot.slane %v1245_v2, 4  ;;  %v3952_v59 = vld [vmem:[#allocation2 + $0x10] sm:$0xff] }
  0x52   : > { %3074 = vmatpush3.bf16.msra.mxu0 %v3311_v3  ;;  %v1273_v3 = vor.u32 %v1272_v50, %v1269_v46  ;;  %v3364_v46 = vld [vmem:[%s4075_s2 + $0x398] sm:$0xff]   ;;  %v3365_v50 = vld [vmem:[%s4075_s2 + $0x350] sm:$0xff]  }
  0x53   : > { %3075 = vmatprep.subr.bf16.mxu0 %v3315_v7  ;;  %v1261_v7 = vrot.slane %v1259_v63, 3  ;;  %v1244_v9 = vrot.slane %v1242_v1, 3 }
  0x54   : > { %3102 = vmatpush3.bf16.msra.mxu1 %v3312_v8  ;;  %v1264_v8 = vrot.slane %v1262_v0, 4  ;;  %v3381_v0 = vld [vmem:[%s4075_s2 + $0x478] sm:$0xff]  }
  0x55   : > { %930 = vmatmul.mubr.bf16.gmra.mxu0 %v786_v19  ;;  %3103 = vmatprep.subr.bf16.mxu1 %v3316_v20  ;;  %v1248_v18 = vor.u32 %v1247_v11, %v1244_v9  ;;  %v3346_v19 = vld [vmem:[%s4075_s2 + $0x3b8] sm:$0xff]   ;;  %v1278_v20 = vrot.slane %v1276_v48, 3  ;;  %v3962_v48 = vcombine.high %v3952_v59, %v3659_v10 }
  0x56   : > { %3076 = vmatpush3.bf16.msra.mxu0 %v3318_v14  ;;  %v1291_v14 = vor.u32 %v1290_v62, %v1287_v17  ;;  %v1265_v16 = vor.u32 %v1264_v8, %v1261_v7  ;;  %v3950_v17 = vld [vmem:[#allocation2 + $0x18] sm:$0xff]  ;;  %v1899_v62 = vld [vmem:[#allocation2] sm:$0xcc] }
  0x57   : > { %3077 = vmatprep.subr.bf16.mxu0 %v3321_v25  ;;  %1161 = vmatmul.mubr.bf16.gmra.mxu1 %v1017_v26  ;;  %v1257_v34 = vsel %vm1240_vm3, %v1248_v18, %v1256_v4  ;;  %v3349_v25 = vld [vmem:[%s4075_s2 + $0x330] sm:$0xff]   ;;  %v2773_v26 = vcombine.high %v3560_v37, %v3659_v10  ;;  %v2822_v60 = vcombine.low %v1668_v58, %v3950_v17  ;;  %v3382_v7 = vld [vmem:[%s4075_s2 + $0x438] sm:$0xff]  }
  0x58   : > { %3104 = vmatpush3.bf16.msra.mxu1 %v3319_v22  ;;  %1639 = vmatprep.mubr.bf16.mxu1 %v2771_v30  ;;  %v1281_v22 = vrot.slane %v1279_v6, 4  ;;  %v1274_v33 = vsel %vm1240_vm3, %v1265_v16, %v1273_v3  ;;  %v1292_v24 = vsel %vm1240_vm3, %v1273_v3, %v1291_v14  ;;  %v3353_v30 = vld [vmem:[%s4075_s2 + $0x368] sm:$0xff]   ;;  %v2876_v63 = vcombine.low %v1899_v62, %v3950_v17 }
  0x59   : > { %3105 = vmatprep.subr.bf16.mxu1 %v3322_v28  ;;  %1425 = vmatprep.mubr.bf16.mxu0 %v1274_v33  ;;  %v1728_v1 = vrot.slane %v2822_v60, 2  ;;  %v2877_v3 = vcombine.high %v1899_v62, %v3950_v17  ;;  %v1988_v6 = vshll.u32 %v3962_v48, 16  ;;  %v3383_v33 = vld [vmem:[%s4075_s2 + $0x470] sm:$0xff]   ;;  %v2172_v62 = vld [vmem:[#allocation2] sm:$0x88] }
  0x5a   : > { %3078 = vmatpush3.bf16.msra.mxu0 %v3323_v27  ;;  %v3350_v27 = vld [vmem:[%s4075_s2 + $0x3b0] sm:$0xff]   ;;  %v1282_v28 = vor.u32 %v1281_v22, %v1278_v20  ;;  %v1960_v11 = vshrl.u32 %v2876_v63, 16 }
  0x5b   : > { %3079 = vmatprep.subr.bf16.mxu0 %v3325_v29  ;;  %v3354_v29 = vld [vmem:[%s4075_s2 + $0x3e8] sm:$0xff]   ;;  %v1977_v8 = vshrl.u32 %v2877_v3, 16  ;;  %v1980_v9 = vshll.u32 %v2877_v3, 16  ;;  %v1990_v16 = vrot.slane %v1988_v6, 3  ;;  %v3395_v3 = vld [vmem:[%s4075_s2 + $0x450] sm:$0xff]  }
  0x5c   : > { %3106 = vmatpush3.bf16.msra.mxu1 %v3324_v31  ;;  %v3355_v31 = vld [vmem:[%s4075_s2 + $0x328] sm:$0xff]  }
  0x5d   : > { %3107 = vmatprep.subr.bf16.mxu1 %v3326_v35  ;;  %v3356_v35 = vld [vmem:[%s4075_s2 + $0x3a8] sm:$0xff]   ;;  %v1982_v20 = vrot.slane %v1980_v9, 3 }
  0x5e   : > { %3080 = vmatpush3.bf16.msra.mxu0 %v3327_v32  ;;  %v2772_v32 = vcombine.low %v3560_v37, %v3659_v10  ;;  %v3359_v37 = vld [vmem:[%s4075_s2 + $0x320] sm:$0xff]   ;;  %v3397_v9 = vld [vmem:[%s4075_s2 + $0x448] sm:$0xff]  }
  0x5f   : > { %3081 = vmatprep.subr.bf16.mxu0 %v3329_v36  ;;  %v1283_v36 = vsel %vm1240_vm3, %v1256_v4, %v1282_v28 }
  0x60   : > { %3108 = vmatpush3.bf16.msra.mxu1 %v3328_v40  ;;  %v3358_v40 = vld [vmem:[%s4075_s2 + $0x3e0] sm:$0xff]  }
  0x61   : > { %3109 = vmatprep.subr.bf16.mxu1 %v3330_v42  ;;  %v3360_v42 = vld [vmem:[%s4075_s2 + $0x3a0] sm:$0xff]  }
  0x62   : > { %3082 = vmatpush3.bf16.msra.mxu0 %v3331_v41  ;;  %v3357_v41 = vld [vmem:[%s4075_s2 + $0x360] sm:$0xff]  }
  0x63   : > { %3083 = vmatprep.subr.bf16.mxu0 %v3333_v44  ;;  %v3361_v44 = vld [vmem:[%s4075_s2 + $0x358] sm:$0xff]  }
  0x64   : > { %3110 = vmatpush3.bf16.msra.mxu1 %v3332_v45  ;;  %v3363_v45 = vld [vmem:[%s4075_s2 + $0x318] sm:$0xff]  }
  0x65   : > { %3111 = vmatprep.subr.bf16.mxu1 %v3334_v51  ;;  %v3367_v51 = vld [vmem:[%s4075_s2 + $0x310] sm:$0xff]  }
  0x66   : > { %3084 = vmatpush3.bf16.msra.mxu0 %v3335_v49  ;;  %v3366_v49 = vld [vmem:[%s4075_s2 + $0x3d0] sm:$0xff]  }
  0x67   : > { %3085 = vmatprep.subr.bf16.mxu0 %v3337_v15  ;;  %v3370_v15 = vld [vmem:[%s4075_s2 + $0x3c8] sm:$0xff]  }
  0x68   : > { %3112 = vmatpush3.bf16.msra.mxu1 %v3336_v54  ;;  %v3371_v54 = vld [vmem:[%s4075_s2 + $0x308] sm:$0xff]  }
  0x69   : > { %3113 = vmatprep.subr.bf16.mxu1 %v3338_v57  ;;  %v3376_v57 = vld [vmem:[%s4075_s2 + $0x380] sm:$0xff]  }
  0x6a   : > { %3086 = vmatpush3.bf16.msra.mxu0 %v3339_v55  ;;  %v3373_v55 = vld [vmem:[%s4075_s2 + $0x340] sm:$0xff]  }
  0x6b   : > { %3127 = vmatprep.subr.bf16.mxu0 %v3343_v61  ;;  %v2823_v61 = vcombine.high %v1668_v58, %v3950_v17 }
  0x6c   : > { %3114 = vmatpush3.bf16.msra.mxu1 %v3340_v39  ;;  %v3958_v39 = vcombine.low %v3952_v59, %v3659_v10  ;;  %v1985_v10 = vshrl.u32 %v3962_v48, 16 }
  0x6d   : > { %3155 = vmatprep.subr.bf16.mxu1 %v3344_v5  ;;  %1426 = vmatmul.mubr.bf16.vlgmr.msra.gmra.mxu0 %v1257_v34  ;;  %v1731_v2 = vrot.slane %v2823_v61, 2  ;;  %v1732_v5 = vrot.slane %v3962_v48, 2  ;;  %v246_v34 = vld [vmem:[%s3647_s30 + $0x8] sm:$0xff]  ;;  %v3394_v48 = vld [vmem:[%s4075_s2 + $0x418] sm:$0xff]  }
  0x6e   : > { %3128 = vmatpush3.bf16.msra.mxu0 %v3345_v13  ;;  %1433 = vmatprep.mubr.bf16.mxu0 %v1292_v24  ;;  %v1729_v4 = vrot.slane %v3958_v39, 2  ;;  %v1987_v14 = vrot.slane %v1985_v10, 2  ;;  %v1971_v24 = vshll.u32 %v3958_v39, 16  ;;  %250 = vst [vmem:[#allocation2 + $0x20] sm:$0xff] %v246_v34 }
  0x6f   : > { %1640 = vmatmul.mubr.bf16.vlgmr.msra.gmra.mxu1 %v2770_v12  ;;  %3129 = vmatprep.subr.bf16.mxu0 %v3347_v23  ;;  %v1963_v12 = vshll.u32 %v2876_v63, 16  ;;  %v1733_v13 = vsel %vm1727_vm4, %v1731_v2, %v1732_v5  ;;  %v2175_v63 = vld [vmem:[#allocation2 + $0x8] sm:$0xff] }
  0x70   : > { %3156 = vmatpush3.bf16.msra.mxu1 %v3346_v19  ;;  %1647 = vmatprep.mubr.bf16.mxu1 %v2773_v26  ;;  %v1730_v18 = vsel %vm1727_vm4, %v1728_v1, %v1729_v4  ;;  %v1979_v19 = vrot.slane %v1977_v8, 2  ;;  %v1991_v23 = vor.u32 %v1990_v16, %v1987_v14  ;;  %v3396_v8 = vld [vmem:[%s4075_s2 + $0x410] sm:$0xff]   ;;  %v3398_v14 = vld [vmem:[%s4075_s2 + $0x408] sm:$0xff]   ;;  %v2930_v16 = vcombine.low %v2172_v62, %v3950_v17 }
  0x71   : > { %3157 = vmatprep.subr.bf16.mxu1 %v3348_v21  ;;  %v1962_v21 = vrot.slane %v1960_v11, 2  ;;  %v1965_v22 = vrot.slane %v1963_v12, 3 }
  0x72   : > { %3130 = vmatpush3.bf16.msra.mxu0 %v3349_v25  ;;  %v1968_v25 = vshrl.u32 %v3958_v39, 16  ;;  %v1983_v26 = vor.u32 %v1982_v20, %v1979_v19  ;;  %v2931_v39 = vcombine.high %v2172_v62, %v3950_v17  ;;  %v3399_v19 = vld [vmem:[%s4075_s2 + $0x440] sm:$0xff]  }
  0x73   : > { %3131 = vmatprep.subr.bf16.mxu0 %v3353_v30  ;;  %v3384_v30 = vld [vmem:[%s4075_s2 + $0x430] sm:$0xff]   ;;  %v3400_v20 = vld [vmem:[%s4075_s2 + $0x400] sm:$0xff]  }
  0x74   : > { %3158 = vmatpush3.bf16.msra.mxu1 %v3350_v27  ;;  %v1966_v27 = vor.u32 %v1965_v22, %v1962_v21  ;;  %v1970_v28 = vrot.slane %v1968_v25, 2  ;;  %v2234_v10 = vrot.slane %v2931_v39, 3  ;;  %v2231_v21 = vrot.slane %v2930_v16, 3 }
  0x75   : > { %3159 = vmatprep.subr.bf16.mxu1 %v3354_v29  ;;  %1434 = vmatmul.mubr.bf16.gmra.mxu0 %v1283_v36  ;;  %v1973_v29 = vrot.slane %v1971_v24, 3  ;;  %v2176_v1 = vld [vmem:[#allocation2 + $0x20] sm:$0x77] }
  0x76   : > { %3132 = vmatpush3.bf16.msra.mxu0 %v3355_v31  ;;  %1870 = vmatprep.mubr.bf16.mxu0 %v1733_v13  ;;  %v3387_v31 = vld [vmem:[%s4075_s2 + $0x468] sm:$0xff]   ;;  %v2934_v17 = vcombine.low %v2176_v1, %v2176_v1 }
  0x77   : > { %1648 = vmatmul.mubr.bf16.gmra.mxu1 %v2772_v32  ;;  %3133 = vmatprep.subr.bf16.mxu0 %v3357_v41  ;;  %v1992_v32 = vsel %vm1958_vm5, %v1983_v26, %v1991_v23  ;;  %v1672_v41 = vld [vmem:[#allocation2 + $0x20] sm:$0x33] }
  0x78   : > { %3160 = vmatpush3.bf16.msra.mxu1 %v3356_v35  ;;  %2143 = vmatprep.mubr.bf16.mxu1 %v1992_v32  ;;  %v1974_v35 = vor.u32 %v1973_v29, %v1970_v28 }
  0x79   : > { %3161 = vmatprep.subr.bf16.mxu1 %v3358_v40  ;;  %v3389_v40 = vld [vmem:[%s4075_s2 + $0x428] sm:$0xff]  }
  0x7a   : > { %3134 = vmatpush3.bf16.msra.mxu0 %v3359_v37  ;;  %v1975_v36 = vsel %vm1958_vm5, %v1966_v27, %v1974_v35  ;;  %v1903_v37 = vld [vmem:[#allocation2 + $0x20] sm:$0x77] }
  0x7b   : > { %3135 = vmatprep.subr.bf16.mxu0 %v3361_v44  ;;  %v2826_v44 = vcombine.low %v1672_v41, %v1672_v41 }
  0x7c   : > { %3162 = vmatpush3.bf16.msra.mxu1 %v3360_v42  ;;  %v3391_v42 = vld [vmem:[%s4075_s2 + $0x460] sm:$0xff]  }
  0x7d   : > { %3163 = vmatprep.subr.bf16.mxu1 %v3362_v43  ;;  %v2827_v43 = vcombine.high %v1672_v41, %v1672_v41 }
  0x7e   : > { %3136 = vmatpush3.bf16.msra.mxu0 %v3363_v45  ;;  %v2881_v45 = vcombine.high %v1903_v37, %v1903_v37 }
  0x7f   : > { %3137 = vmatprep.subr.bf16.mxu0 %v3365_v50  ;;  %v1734_v50 = vrot.slane %v2826_v44, 2 }
  0x80   : > { %3164 = vmatpush3.bf16.msra.mxu1 %v3364_v46  ;;  %v2880_v46 = vcombine.low %v1903_v37, %v1903_v37 }
  0x81   : > { %3165 = vmatprep.subr.bf16.mxu1 %v3366_v49  ;;  %v1736_v49 = vrot.slane %v2827_v43, 2 }
  0x82   : > { %3138 = vmatpush3.bf16.msra.mxu0 %v3367_v51  ;;  %v2003_v51 = vshrl.u32 %v2881_v45, 16 }
  0x83   : > { %3139 = vmatprep.subr.bf16.mxu0 %v3369_v53  ;;  %v1997_v53 = vshll.u32 %v2880_v46, 16 }
  0x84   : > { %3166 = vmatpush3.bf16.msra.mxu1 %v3368_v52  ;;  %v2006_v52 = vshll.u32 %v2881_v45, 16 }
  0x85   : > { %3167 = vmatprep.subr.bf16.mxu1 %v3370_v15  ;;  %v1994_v15 = vshrl.u32 %v2880_v46, 16  ;;  %v1999_v60 = vrot.slane %v1997_v53, 3 }
  0x86   : > { %3140 = vmatpush3.bf16.msra.mxu0 %v3371_v54  ;;  %v3392_v54 = vld [vmem:[%s4075_s2 + $0x420] sm:$0xff]  }
  0x87   : > { %3141 = vmatprep.subr.bf16.mxu0 %v3373_v55  ;;  %v1735_v55 = vsel %vm1727_vm4, %v1729_v4, %v1734_v50  ;;  %v1996_v58 = vrot.slane %v1994_v15, 2  ;;  %v2933_v4 = vcombine.high %v3952_v59, %v2175_v63 }
  0x88   : > { %3168 = vmatpush3.bf16.msra.mxu1 %v3372_v38  ;;  %v3393_v38 = vld [vmem:[%s4075_s2 + $0x458] sm:$0xff]  }
  0x89   : > { %3169 = vmatprep.subr.bf16.mxu1 %v3374_v47  ;;  %v1737_v47 = vsel %vm1727_vm4, %v1732_v5, %v1736_v49  ;;  %v2235_v6 = vrot.slane %v2933_v4, 3 }
  0x8a   : > { %3142 = vmatpush3.bf16.msra.mxu0 %v3375_v56  ;;  %v2005_v56 = vrot.slane %v2003_v51, 2 }
  0x8b   : > { %3183 = vmatprep.subr.bf16.mxu0 %v3381_v0  ;;  %v2236_v11 = vsel %vm1009_vm2, %v2234_v10, %v2235_v6 }
  0x8c   : > { %3170 = vmatpush3.bf16.msra.mxu1 %v3376_v57  ;;  %v2008_v57 = vrot.slane %v2006_v52, 3 }
  0x8d   : > { %3211 = vmatprep.subr.bf16.mxu1 %v3381_v0  ;;  %1871 = vmatmul.mubr.bf16.vlgmr.msra.gmra.mxu0 %v1730_v18  ;;  %v2000_v0 = vor.u32 %v1999_v60, %v1996_v58  ;;  %v2932_v18 = vcombine.low %v3952_v59, %v2175_v63 }
  0x8e   : > { %3184 = vmatpush3.bf16.msra.mxu0 %v3382_v7  ;;  %1878 = vmatprep.mubr.bf16.mxu0 %v1737_v47  ;;  %v2009_v61 = vor.u32 %v2008_v57, %v2005_v56 }
  0x8f   : > { %3185 = vmatprep.subr.bf16.mxu0 %v3383_v33  ;;  %2144 = vmatmul.mubr.bf16.vlgmr.msra.gmra.mxu1 %v1975_v36  ;;  %v2001_v5 = vsel %vm1958_vm5, %v1974_v35, %v2000_v0  ;;  %v2232_v22 = vrot.slane %v2932_v18, 3 }
  0x90   : > { %3219 = vmatpush3.bf16.msra.mxu1 %v3382_v7  ;;  %v2010_v2 = vsel %vm1958_vm5, %v1991_v23, %v2009_v61  ;;  %v2935_v7 = vcombine.high %v2176_v1, %v2176_v1 }
  0x91   : > { %3212 = vmatprep.subr.bf16.mxu1 %v3383_v33  ;;  %2151 = vmatprep.mubr.bf16.mxu1 %v2010_v2  ;;  %v2233_v59 = vsel %vm1009_vm2, %v2231_v21, %v2232_v22  ;;  %v2237_v33 = vrot.slane %v2934_v17, 3 }
  0x92   : > { %3186 = vmatpush3.bf16.msra.mxu0 %v3384_v30  ;;  %v2239_v12 = vrot.slane %v2935_v7, 3 }
  0x93   : > { %3187 = vmatprep.subr.bf16.mxu0 %v3387_v31  ;;  %v2238_v34 = vsel %vm1009_vm2, %v2232_v22, %v2237_v33 }
  0x94   : > { %3220 = vmatpush3.bf16.msra.mxu1 %v3384_v30  ;;  %v2240_v13 = vsel %vm1009_vm2, %v2235_v6, %v2239_v12 }
  0x95   : > { %3213 = vmatprep.subr.bf16.mxu1 %v3387_v31  ;;  %1879 = vmatmul.mubr.bf16.gmra.mxu0 %v1735_v55 }
  0x96   : > { %3188 = vmatpush3.bf16.msra.mxu0 %v3389_v40  ;;  %2373 = vmatprep.mubr.bf16.mxu0 %v2236_v11 }
  0x97   : > { %3189 = vmatprep.subr.bf16.mxu0 %v3391_v42  ;;  %2152 = vmatmul.mubr.bf16.gmra.mxu1 %v2001_v5 }
  0x98   : > { %3221 = vmatpush3.bf16.msra.mxu1 %v3389_v40  ;;  %2381 = vmatprep.mubr.bf16.mxu1 %v2240_v13 }
  0x99   : > { %3214 = vmatprep.subr.bf16.mxu1 %v3391_v42 }
  0x9a   : > { %3190 = vmatpush3.bf16.msra.mxu0 %v3392_v54 }
  0x9b   : > { %3191 = vmatprep.subr.bf16.mxu0 %v3393_v38 }
  0x9c   : > { %3222 = vmatpush3.bf16.msra.mxu1 %v3392_v54 }
  0x9d   : > { %3215 = vmatprep.subr.bf16.mxu1 %v3393_v38 }
  0x9e   : > { %3192 = vmatpush3.bf16.msra.mxu0 %v3394_v48 }
  0x9f   : > { %3193 = vmatprep.subr.bf16.mxu0 %v3395_v3 }
  0xa0   : > { %3223 = vmatpush3.bf16.msra.mxu1 %v3394_v48 }
  0xa1   : > { %3216 = vmatprep.subr.bf16.mxu1 %v3395_v3 }
  0xa2   : > { %3194 = vmatpush3.bf16.msra.mxu0 %v3396_v8 }
  0xa3   : > { %3195 = vmatprep.subr.bf16.mxu0 %v3397_v9 }
  0xa4   : > { %3224 = vmatpush3.bf16.msra.mxu1 %v3396_v8 }
  0xa5   : > { %3217 = vmatprep.subr.bf16.mxu1 %v3397_v9 }
  0xa6   : > { %3196 = vmatpush3.bf16.msra.mxu0 %v3398_v14 }
  0xa7   : > { %3197 = vmatprep.subr.bf16.mxu0 %v3399_v19 }
  0xa8   : > { %3225 = vmatpush3.bf16.msra.mxu1 %v3398_v14 }
  0xa9   : > { %3218 = vmatprep.subr.bf16.mxu1 %v3399_v19 }
  0xaa   : > { %3198 = vmatpush3.bf16.msra.mxu0 %v3400_v20 }
  0xac   : > { %3226 = vmatpush3.bf16.msra.mxu1 %v3400_v20 }
  0xad   : > { %2374 = vmatmul.mubr.bf16.vlgmr.msra.gmra.mxu0 %v2233_v59 }
  0xaf   : > { %2382 = vmatmul.mubr.bf16.vlgmr.msra.gmra.mxu1 %v2238_v34 }
  0xed   : > { %v2975_v23 = vpop.f32.mrf.mxu0 }
  0xef   : > { %v2976_v25 = vpop.f32.mrf.mxu0  ;;  %v3003_v26 = vpop.f32.mrf.mxu1 }
  0xf0   : > { %v2977_v13 = vadd.f32 %v2976_v25, %v2975_v23 }
  0xf1   : > { %v2978_v24 = vpop.f32.mrf.mxu0  ;;  %v3004_v29 = vpop.f32.mrf.mxu1 }
  0xf2   : > { %v3005_v14 = vadd.f32 %v3004_v29, %v3003_v26 }
  0xf3   : > { %v2979_v27 = vpop.f32.mrf.mxu0  ;;  %v3006_v31 = vpop.f32.mrf.mxu1 }
  0xf4   : > { %v711_v20 = vadd.f32 %v3005_v14, %v2977_v13  ;;  %v2980_v21 = vadd.f32 %v2979_v27, %v2978_v24 }
  0xf5   : > { %v2981_v28 = vpop.f32.mrf.mxu0  ;;  %v3007_v35 = vpop.f32.mrf.mxu1 }
  0xf6   : > { %v3008_v22 = vadd.f32 %v3007_v35, %v3006_v31 }
  0xf7   : > { %v2982_v30 = vpop.f32.mrf.mxu0  ;;  %v3009_v36 = vpop.f32.mrf.mxu1 }
  0xf8   : > { %v2983_v59 = vadd.f32 %v2982_v30, %v2981_v28 }
  0xf9   : > { %v4045_v32 = vpop.f32.mrf.mxu0  ;;  %v3010_v37 = vpop.f32.mrf.mxu1 }
  0xfa   : > { %4078 = vst [vmem:[#allocation4_spill] sm:$0xff] %v4045_v32  ;;  %v3011_v33 = vadd.f32 %v3010_v37, %v3009_v36 }
  0xfb   : > { %v2985_v40 = vpop.f32.mrf.mxu0  ;;  %v3012_v43 = vpop.f32.mrf.mxu1 }
  0xfc   : > { %v713_v29 = vadd.f32 %v3011_v33, %v2983_v59 }
  0xfd   : > { %v3013_v45 = vpop.f32.mrf.mxu1 }
  0xfe   : > { %v3014_v13 = vadd.f32 %v3013_v45, %v3012_v43 }
 0x10d   : > { %v3031_v41 = vpop.f32.mrf.mxu0 }
 0x10f   : > { %v3032_v42 = vpop.f32.mrf.mxu0  ;;  %v3059_v46 = vpop.f32.mrf.mxu1 }
 0x110   : > { %v3033_v19 = vadd.f32 %v3032_v42, %v3031_v41  ;;  %v4082_v41 = vld [vmem:[#allocation4_spill] sm:$0xff] }
 0x111   : > { %v3034_v44 = vpop.f32.mrf.mxu0  ;;  %v3060_v50 = vpop.f32.mrf.mxu1  ;;  %v2986_v42 = vadd.f32 %v2985_v40, %v4082_v41 }
 0x112   : > { %v3061_v23 = vadd.f32 %v3060_v50, %v3059_v46 }
 0x113   : > { %v3035_v49 = vpop.f32.mrf.mxu0  ;;  %v3062_v52 = vpop.f32.mrf.mxu1 }
 0x115   : > { %v3037_v51 = vpop.f32.mrf.mxu0  ;;  %v3063_v53 = vpop.f32.mrf.mxu1 }
 0x116   : > { %v3064_v36 = vadd.f32 %v3063_v53, %v3062_v52 }
 0x117   : > { %v3038_v15 = vpop.f32.mrf.mxu0  ;;  %v3065_v38 = vpop.f32.mrf.mxu1 }
 0x118   : > { %v3039_v32 = vadd.f32 %v3038_v15, %v3037_v51 }
 0x119   : > { %v3040_v54 = vpop.f32.mrf.mxu0  ;;  %v3066_v55 = vpop.f32.mrf.mxu1 }
 0x11a   : > { %v944_v35 = vadd.f32 %v3039_v32, %v713_v29  ;;  %v3067_v28 = vadd.f32 %v3066_v55, %v3065_v38 }
 0x11b   : > { %v3041_v47 = vpop.f32.mrf.mxu0  ;;  %v4047_v57 = vpop.f32.mrf.mxu1 }
 0x11c   : > { %4079 = vst [vmem:[#allocation5_spill] sm:$0xff] %v4047_v57  ;;  %v942_v57 = vadd.f32 %v3033_v19, %v711_v20  ;;  %v3042_v30 = vadd.f32 %v3041_v47, %v3040_v54  ;;  %v1175_v43 = vadd.f32 %v3067_v28, %v944_v35 }
 0x11d   : > { %v3069_v60 = vpop.f32.mrf.mxu1 }
 0x11e   : > { %v1173_v24 = vadd.f32 %v3061_v23, %v942_v57 }
 0x123   : > { %v4083_v57 = vld [vmem:[#allocation5_spill] sm:$0xff] }
 0x12d   : > { %v3087_v56 = vpop.f32.mrf.mxu0 }
 0x12f   : > { %v3088_v58 = vpop.f32.mrf.mxu0  ;;  %v3115_v62 = vpop.f32.mrf.mxu1 }
 0x130   : > { %v3089_v25 = vadd.f32 %v3088_v58, %v3087_v56  ;;  %v3070_v58 = vadd.f32 %v3069_v60, %v4083_v57 }
 0x131   : > { %v3090_v61 = vpop.f32.mrf.mxu0  ;;  %v3116_v0 = vpop.f32.mrf.mxu1 }
 0x132   : > { %v1446_v37 = vadd.f32 %v3089_v25, %v1173_v24  ;;  %v3117_v15 = vadd.f32 %v3116_v0, %v3115_v62 }
 0x133   : > { %v3091_v63 = vpop.f32.mrf.mxu0  ;;  %v3118_v39 = vpop.f32.mrf.mxu1 }
 0x134   : > { %v1660_v32 = vadd.f32 %v3117_v15, %v1446_v37 }
 0x135   : > { %v3093_v48 = vpop.f32.mrf.mxu0  ;;  %v3119_v2 = vpop.f32.mrf.mxu1 }
 0x136   : > { %v3120_v55 = vadd.f32 %v3119_v2, %v3118_v39 }
 0x137   : > { %v3094_v1 = vpop.f32.mrf.mxu0  ;;  %v3121_v3 = vpop.f32.mrf.mxu1 }
 0x138   : > { %v3095_v51 = vadd.f32 %v3094_v1, %v3093_v48 }
 0x139   : > { %v3096_v4 = vpop.f32.mrf.mxu0  ;;  %v3122_v5 = vpop.f32.mrf.mxu1 }
 0x13a   : > { %v1448_v54 = vadd.f32 %v3095_v51, %v1175_v43  ;;  %v3123_v52 = vadd.f32 %v3122_v5, %v3121_v3 }
 0x13b   : > { %v3097_v10 = vpop.f32.mrf.mxu0  ;;  %v4049_v7 = vpop.f32.mrf.mxu1 }
 0x13c   : > { %4080 = vst [vmem:[#allocation6_spill] sm:$0xff] %v4049_v7  ;;  %v3036_v7 = vadd.f32 %v3035_v49, %v3034_v44  ;;  %v3092_v44 = vadd.f32 %v3091_v63, %v3090_v61  ;;  %v714_v49 = vadd.f32 %v3014_v13, %v2986_v42  ;;  %v3098_v53 = vadd.f32 %v3097_v10, %v3096_v4 }
 0x13d   : > { %v4051_v9 = vpop.f32.mrf.mxu1 }
 0x13e   : > { %4081 = vst [vmem:[#allocation7_spill] sm:$0xff] %v4051_v9  ;;  %v712_v9 = vadd.f32 %v3008_v22, %v2980_v21  ;;  %v945_v45 = vadd.f32 %v3042_v30, %v714_v49 }
 0x140   : > { %v943_v27 = vadd.f32 %v3036_v7, %v712_v9  ;;  %v1176_v62 = vadd.f32 %v3070_v58, %v945_v45 }
 0x142   : > { %v1174_v50 = vadd.f32 %v3064_v36, %v943_v27  ;;  %v1449_v9 = vadd.f32 %v3098_v53, %v1176_v62 }
 0x143   : > { %v4084_v60 = vld [vmem:[#allocation6_spill] sm:$0xff] }
 0x144   : > { %v1447_v38 = vadd.f32 %v3092_v44, %v1174_v50 }
 0x145   : > { %v4085_v19 = vld [vmem:[#allocation7_spill] sm:$0xff] }
 0x146   : > { %v3126_v20 = vadd.f32 %v4085_v19, %v4084_v60 }
 0x148   : > { %v1663_v33 = vadd.f32 %v3126_v20, %v1449_v9 }
 0x14d   : > { %v3143_v6 = vpop.f32.mrf.mxu0 }
 0x14f   : > { %v3144_v8 = vpop.f32.mrf.mxu0  ;;  %v3171_v11 = vpop.f32.mrf.mxu1 }
 0x150   : > { %v3145_v56 = vadd.f32 %v3144_v8, %v3143_v6  ;;  %v1661_v6 = vadd.f32 %v3120_v55, %v1447_v38  ;;  %v1662_v8 = vadd.f32 %v3123_v52, %v1448_v54 }
 0x151   : > { %v3146_v12 = vpop.f32.mrf.mxu0  ;;  %v3172_v16 = vpop.f32.mrf.mxu1 }
 0x152   : > { %v1891_v61 = vadd.f32 %v3145_v56, %v1660_v32  ;;  %v3173_v7 = vadd.f32 %v3172_v16, %v3171_v11 }
 0x153   : > { %v3147_v18 = vpop.f32.mrf.mxu0  ;;  %v4053_v17 = vpop.f32.mrf.mxu1 }
 0x154   : > { %v3148_v63 = vadd.f32 %v3147_v18, %v3146_v12  ;;  %v2164_v3 = vadd.f32 %v3173_v7, %v1891_v61  ;;  %v2952_v18 = vld [vmem:[%s4076_s3] ss:$0 sm:$0xff] }
 0x155   : > { %v3149_v34 = vpop.f32.mrf.mxu0  ;;  %v3175_v26 = vpop.f32.mrf.mxu1 }
 0x156   : > { %v1892_v4 = vadd.f32 %v3148_v63, %v1661_v6  ;;  %v3176_v11 = vadd.f32 %v3175_v26, %v4053_v17 }
 0x157   : > { %v3150_v14 = vpop.f32.mrf.mxu0  ;;  %v3177_v31 = vpop.f32.mrf.mxu1 }
 0x158   : > { %v3151_v0 = vadd.f32 %v3150_v14, %v3149_v34  ;;  %v2165_v23 = vadd.f32 %v3176_v11, %v1892_v4 }
 0x159   : > { %v3152_v46 = vpop.f32.mrf.mxu0  ;;  %v3178_v40 = vpop.f32.mrf.mxu1 }
 0x15a   : > { %v1893_v2 = vadd.f32 %v3151_v0, %v1662_v8  ;;  %v3179_v10 = vadd.f32 %v3178_v40, %v3177_v31 }
 0x15b   : > { %v3153_v47 = vpop.f32.mrf.mxu0  ;;  %v3180_v48 = vpop.f32.mrf.mxu1 }
 0x15c   : > { %v3154_v12 = vadd.f32 %v3153_v47, %v3152_v46  ;;  %v2166_v42 = vadd.f32 %v3179_v10, %v1893_v2 }
 0x15d   : > { %v3181_v5 = vpop.f32.mrf.mxu1 }
 0x15e   : > { %v1894_v13 = vadd.f32 %v3154_v12, %v1663_v33  ;;  %v3182_v14 = vadd.f32 %v3181_v5, %v3180_v48 }
 0x160   : > { %v2167_v28 = vadd.f32 %v3182_v14, %v1894_v13 }
 0x16d   : > { %v3199_v1 = vpop.f32.mrf.mxu0 }
 0x16f   : > { %v3200_v21 = vpop.f32.mrf.mxu0  ;;  %v3205_v16 = vpop.f32.mrf.mxu1 }
 0x170   : > { %v3201_v39 = vadd.f32 %v3200_v21, %v3199_v1 }
 0x171   : > { %v3202_v22 = vpop.f32.mrf.mxu0  ;;  %v3206_v29 = vpop.f32.mrf.mxu1 }
 0x172   : > { %v2394_v59 = vadd.f32 %v3201_v39, %v2164_v3  ;;  %v3207_v24 = vadd.f32 %v3206_v29, %v3205_v16 }
 0x173   : > { %v3203_v34 = vpop.f32.mrf.mxu0  ;;  %v3208_v27 = vpop.f32.mrf.mxu1 }
 0x174   : > { %v2413_v25 = vadd.f32 %v2952_v18, %v2394_v59  ;;  %v3204_v41 = vadd.f32 %v3203_v34, %v3202_v22  ;;  %v2396_v17 = vadd.f32 %v3207_v24, %v2166_v42 }
 0x175   : > { %v3209_v35 = vpop.f32.mrf.mxu1 }
 0x176   : > { %2417 = vst [vmem:[%s234_s12] sm:$0xff] %v2413_v25  ;;  %v2395_v31 = vadd.f32 %v3204_v41, %v2165_v23  ;;  %v2415_v30 = vadd.f32 %v2952_v18, %v2396_v17  ;;  %v3210_v36 = vadd.f32 %v3209_v35, %v3208_v27 }
 0x178   : > { %v2414_v26 = vadd.f32 %v2952_v18, %v2395_v31  ;;  %2419 = vst [vmem:[%s234_s12 + $0x10] sm:$0xff] %v2415_v30  ;;  %v2397_v37 = vadd.f32 %v3210_v36, %v2167_v28 }
 0x17a   : > { %2418 = vst [vmem:[%s234_s12 + $0x8] sm:$0xff] %v2414_v26  ;;  %v2416_v44 = vadd.f32 %v2952_v18, %v2397_v37 }
 0x17c   : > { %2420 = vst [vmem:[%s234_s12 + $0x18] sm:$0xff] %v2416_v44 }
 0x17d PF: > { %s14_s15 = sadd.s32 1, %s3413_s15  }
 0x17e   : > { %p11_p6 = scmp.ge.s32.totalorder %s14_s15, 5  }
 0x180   :  { %13 = sbr.rel (!%p11_p6) target bundleno = 1 (0x1), region = 77 }

</bundles_post_ra>
